<compile_context>
chip_gen: v5e
topology: v5e:2x2
jax: 0.10.0
libtpu: 0.0.40
codegen_flags: <defaults>
</compile_context>

<pallas_src>
import jax
import jax.numpy as jnp
from jax.experimental import pallas as pl
from jax.experimental.pallas import tpu as pltpu

NUM_CLASSES = 4
SEQ_LEN = 106          # implied by fc1 in_features = 750 = 30 * 25
BATCH = 2


def _round_up(n, m):
    return (n + m - 1) // m * m


def cnn1d_kernel(x_ref, w1_ref, b1_ref, w2_ref, b2_ref, wfc1_hbm_ref, wfc2_ref,
                 out_ref, wfc1_vmem, wfc1_sem):
    # Kick off the dominant fc1-weight DMA immediately; it overlaps the whole
    # conv1/conv2 stage and is waited on only right before the fc1 matmul.
    wfc1_copy = pltpu.make_async_copy(wfc1_hbm_ref, wfc1_vmem, wfc1_sem)
    wfc1_copy.start()

    B = x_ref.shape[0]
    C1, K = w1_ref.shape              # (16, 3)   conv1 channels padded 15 -> 16
    NE = x_ref.shape[2] - 1           # 26        pooled conv1 length per phase
    P2 = NE - 1                       # 25        pooled conv2 length

    w1 = w1_ref[...]                  # (C1, K)
    b1 = b1_ref[...]                  # (C1, 1)
    w2 = w2_ref[...]                  # (C2, K*C1)  cols ordered k*C1 + c1
    b2 = b2_ref[...]                  # (C2, 1)

    # ---------- conv1 -> ReLU -> MaxPool(2,2): per-sample VPU work ----------
    # Layout: channels on sublanes, time on lanes.  Conv1 is computed directly
    # as the two pooling phases of conv2's input (ReLU and max commute with the
    # shared bias), so MaxPool never needs strided slicing.
    phase0, phase1 = [], []           # per-phase conv2 RHS blocks, (48, P2) each
    for b in range(B):                # B == 2: unrolled at trace time
        xb = x_ref[b]                 # (4, NE+1): xb[r, i] = x[4*i + r]
        # Input row at sequence position 4*i + u, hoisted once per u (dedup).
        xr = [xb[u % 4:u % 4 + 1, u // 4:u // 4 + NE] for u in range(K + 3)]

        def conv1_win(d):             # conv1 raw output at positions 4*i + d
            acc = w1[:, 0:1] * xr[d]
            for k in range(1, K):
                acc = acc + w1[:, k:k + 1] * xr[d + k]
            return acc                # (C1, NE)

        h1p_e = jnp.maximum(jnp.maximum(conv1_win(0), conv1_win(1)) + b1, 0.0)
        h1p_o = jnp.maximum(jnp.maximum(conv1_win(2), conv1_win(3)) + b1, 0.0)

        # Hoisted offset-0/offset-1 slices, reused across taps and phases.
        e0 = h1p_e[:, 0:P2]
        e1 = h1p_e[:, 1:P2 + 1]
        o0 = h1p_o[:, 0:P2]
        o1 = h1p_o[:, 1:P2 + 1]
        # conv2 input position is 2t + p + k; taps stacked along sublanes
        # (tile aligned) matching the (C2, K*C1) weight layout.
        phase0.append(jnp.concatenate([e0, o0, e1], axis=0))    # (48, P2)
        phase1.append(jnp.concatenate([o0, e1, o1], axis=0))    # (48, P2)

    # ---------- conv2: ONE batched MXU matmul over samples x phases ----------
    # RHS lane order: [phase0: s0, s1 | phase1: s0, s1]  ->  (48, 2*B*P2).
    rhs = jnp.concatenate(phase0 + phase1, axis=1)
    c2 = jnp.dot(w2, rhs, preferred_element_type=jnp.float32)   # (32, 2*B*P2)
    half = B * P2
    # ReLU + MaxPool(2,2) fused: max over the two phase halves (columns align
    # as b*P2 + t in both halves), then bias + ReLU.
    h2p = jnp.maximum(jnp.maximum(c2[:, :half], c2[:, half:]) + b2, 0.0)
    # Cast once on the dense (32, B*P2) tile (not on the assembled column).
    h2p = h2p.astype(jnp.bfloat16)

    # ---------- flatten -> fc1 RHS (800+8, B) --------------------------------
    # Feature order t*C2p + c2 per sample column; each block is 32 sublanes so
    # all concatenations are tile-aligned on the sublane axis.
    cols = []
    for b in range(B):
        blocks = [h2p[:, b * P2 + t:b * P2 + t + 1] for t in range(P2)]
        cols.append(jnp.concatenate(blocks, axis=0))            # (800, 1)
    acts = jnp.concatenate(cols, axis=1)                        # (800, B)
    # Ones rows drive the folded fc1 bias column (extra rows hit zero weights).
    acts = jnp.concatenate([acts, jnp.ones((8, B), jnp.bfloat16)], axis=0)

    # ---------- fc1 (750 -> 240), bias folded, bf16 operands, f32 acc -------
    wfc1_copy.wait()                                            # DMA done by now
    z1 = jnp.dot(wfc1_vmem[...], acts, preferred_element_type=jnp.float32)
    z1 = jnp.maximum(z1, 0.0)                                   # (240, B)
    # Dropout(p=0.1) is identity at inference (eval mode).

    # ---------- fc2 (240 -> num_classes), bias folded ------------------------
    z1_aug = jnp.concatenate([z1, jnp.ones((8, B), jnp.float32)], axis=0)
    out_ref[...] = jnp.dot(wfc2_ref[...], z1_aug,
                           preferred_element_type=jnp.float32)  # (NC, B)


def prepare_params(params):
    """One-time repack of PyTorch-layout parameters into kernel layouts.

    Transposes, channel padding, bias folding and the bf16 cast of the big fc1
    weight happen once here, not on every forward call.
    """
    w1, b1, w2, b2, wfc1, bfc1, wfc2, bfc2 = params
    C1, _, K = w1.shape                  # (15, 1, 3)
    C2 = w2.shape[0]                     # 30
    H, F = wfc1.shape                    # (240, 750)
    P2 = F // C2                         # 25
    NC = wfc2.shape[0]
    C1p = _round_up(C1, 8)               # 16
    C2p = _round_up(C2, 8)               # 32

    # conv1: (out_ch, 1, k) -> (C1p, K), zero-padded channels.
    w1_p = jnp.pad(w1[:, 0, :], ((0, C1p - C1), (0, 0)))               # (16, 3)
    b1_p = jnp.pad(b1, (0, C1p - C1)).reshape(C1p, 1)

    # conv2: (out_ch, in_ch, k) -> (C2p, K*C1p), cols ordered k*C1p + c1.
    w2_p = jnp.transpose(w2, (0, 2, 1))                                # (30, 3, 15)
    w2_p = jnp.pad(w2_p, ((0, C2p - C2), (0, 0), (0, C1p - C1)))       # (32, 3, 16)
    w2_p = w2_p.reshape(C2p, K * C1p)                                  # (32, 48)
    b2_p = jnp.pad(b2, (0, C2p - C2)).reshape(C2p, 1)

    # fc1: PyTorch flattens (B, C2, T) channel-major (feature = c*P2 + t); the
    # kernel's activation column is ordered t*C2p + c, so permute + pad the
    # weight, append the bias as column 800 (driven by a ones row in acts), and
    # store in bf16 (this array dominates HBM traffic).
    wfc1_p = jnp.transpose(wfc1.reshape(H, C2, P2), (0, 2, 1))         # (240, 25, 30)
    wfc1_p = jnp.pad(wfc1_p, ((0, 0), (0, 0), (0, C2p - C2)))          # (240, 25, 32)
    wfc1_p = wfc1_p.reshape(H, P2 * C2p)                               # (240, 800)
    wfc1_aug = jnp.concatenate(
        [wfc1_p, bfc1.reshape(H, 1), jnp.zeros((H, 7), wfc1.dtype)], axis=1)
    wfc1_aug = wfc1_aug.astype(jnp.bfloat16)                           # (240, 808)

    # fc2: bias folded as column 240 (driven by a ones row in z1_aug).
    wfc2_aug = jnp.concatenate(
        [wfc2, bfc2.reshape(NC, 1), jnp.zeros((NC, 7), wfc2.dtype)], axis=1)  # (4, 248)

    return (w1_p, b1_p, w2_p, b2_p, wfc1_aug, wfc2_aug)


def cnn1d_forward(x, prepared):
    """x: (B, 1, L) float32 (PyTorch NCL layout). Returns (B, num_classes)."""
    w1, b1, w2, b2, wfc1, wfc2 = prepared
    B, _, L = x.shape
    C2p = w2.shape[0]
    P2 = (wfc1.shape[1] - 8) // C2p
    num_classes = wfc2.shape[0]
    # Both pools must divide evenly; fc1's in_features pins the sequence length.
    assert L == 4 * P2 + 6, f"CNN1D requires seq_len == {4 * P2 + 6}, got {L}"

    # Cheap per-call input prep: mod-4 phase layout xph[b, r, i] = x[b, 0, 4i+r]
    # (time on lanes).  Padded tail is never read by the kernel.
    n_rows = P2 + 2
    xph = jnp.pad(x.reshape(B, L), ((0, 0), (0, 4 * n_rows - L)))
    xph = xph.reshape(B, n_rows, 4).transpose(0, 2, 1)                 # (B, 4, n_rows)

    out = pl.pallas_call(
        cnn1d_kernel,
        out_shape=jax.ShapeDtypeStruct((num_classes, B), jnp.float32),
        # Gridless on purpose: total footprint (<1 MiB) fits VMEM on
        # v5e/v6e/v7x; a grid would only add per-step overhead at B=2.
        in_specs=[
            pl.BlockSpec(memory_space=pltpu.MemorySpace.VMEM),   # xph
            pl.BlockSpec(memory_space=pltpu.MemorySpace.VMEM),   # w1
            pl.BlockSpec(memory_space=pltpu.MemorySpace.VMEM),   # b1
            pl.BlockSpec(memory_space=pltpu.MemorySpace.VMEM),   # w2
            pl.BlockSpec(memory_space=pltpu.MemorySpace.VMEM),   # b2
            pl.BlockSpec(memory_space=pl.ANY),                   # wfc1: manual DMA
            pl.BlockSpec(memory_space=pltpu.MemorySpace.VMEM),   # wfc2
        ],
        out_specs=pl.BlockSpec(memory_space=pltpu.MemorySpace.VMEM),
        scratch_shapes=[
            pltpu.VMEM(wfc1.shape, wfc1.dtype),                  # fc1 weight buffer
            pltpu.SemaphoreType.DMA(()),                         # its DMA semaphore
        ],
    )(xph, w1, b1, w2, b2, wfc1, wfc2)
    # (num_classes, B) -> (B, num_classes); 32-byte transpose, fused in the jit.
    return out.T


def init_params(key):
    """Deterministic init mimicking PyTorch default U(-1/sqrt(fan_in), +1/sqrt(fan_in))."""
    ks = jax.random.split(key, 8)

    def u(k, shape, fan_in):
        bound = float(fan_in) ** -0.5
        return jax.random.uniform(k, shape, jnp.float32, -bound, bound)

    w1 = u(ks[0], (15, 1, 3), 1 * 3)
    b1 = u(ks[1], (15,), 1 * 3)
    w2 = u(ks[2], (30, 15, 3), 15 * 3)
    b2 = u(ks[3], (30,), 15 * 3)
    wfc1 = u(ks[4], (240, 750), 750)
    bfc1 = u(ks[5], (240,), 750)
    wfc2 = u(ks[6], (NUM_CLASSES, 240), 240)
    bfc2 = u(ks[7], (NUM_CLASSES,), 240)
    return w1, b1, w2, b2, wfc1, bfc1, wfc2, bfc2


def reference_forward(x, params, *, quantize_fc1=False):
    """Pure-JAX reference mirroring the PyTorch module (NCL layout).

    With quantize_fc1=True, the fc1 inputs (activations, weight, bias) are
    rounded through bf16 exactly like the kernel does, for a tight check.
    """
    w1, b1, w2, b2, wfc1, bfc1, wfc2, bfc2 = params
    dn = ('NCH', 'OIH', 'NCH')
    h = jax.lax.conv_general_dilated(x, w1, (1,), 'VALID', dimension_numbers=dn)
    h = jnp.maximum(h + b1[None, :, None], 0.0)
    h = jax.lax.reduce_window(h, -jnp.inf, jax.lax.max, (1, 1, 2), (1, 1, 2), 'VALID')
    h = jax.lax.conv_general_dilated(h, w2, (1,), 'VALID', dimension_numbers=dn)
    h = jnp.maximum(h + b2[None, :, None], 0.0)
    h = jax.lax.reduce_window(h, -jnp.inf, jax.lax.max, (1, 1, 2), (1, 1, 2), 'VALID')
    h = h.reshape(h.shape[0], -1)                        # (B, 750), channel-major
    wf, bf = wfc1, bfc1
    if quantize_fc1:
        h = h.astype(jnp.bfloat16).astype(jnp.float32)
        wf = wfc1.astype(jnp.bfloat16).astype(jnp.float32)
        bf = bfc1.astype(jnp.bfloat16).astype(jnp.float32)
    h = jnp.maximum(h @ wf.T + bf, 0.0)
    return h @ wfc2.T + bfc2


if __name__ == "__main__":
    key = jax.random.PRNGKey(0)
    kx, kp = jax.random.split(key)
    x = jax.random.normal(kx, (BATCH, 1, SEQ_LEN), jnp.float32)
    params = init_params(kp)

    prepared = prepare_params(params)        # one-time weight repack (hoisted)
    fwd = jax.jit(cnn1d_forward)

    out = jax.block_until_ready(fwd(x, prepared))
    assert out.shape == (BATCH, NUM_CLASSES), out.shape

    # Tight check vs a reference with the same bf16 rounding of the fc1 inputs,
    # plus a sanity check vs the exact f32 module (bf16 fc1 weight => ~1e-3 diff).
    ref_q = jax.block_until_ready(reference_forward(x, params, quantize_fc1=True))
    ref_f = jax.block_until_ready(reference_forward(x, params))
    err_q = float(jnp.max(jnp.abs(out - ref_q)))
    err_f = float(jnp.max(jnp.abs(out - ref_f)))
    assert err_q < 2e-3, f"mismatch vs bf16-quantized reference: {err_q}"
    assert err_f < 2e-2, f"mismatch vs f32 reference: {err_f}"
    print("KERNEL_OK")
</pallas_src>

<mosaic_0001>
module attributes {stable_mosaic.version = 11 : i64} {
  func.func @cnn1d_kernel(%arg0: memref<2x4x27xf32, #tpu.memory_space<vmem>>, %arg1: memref<16x3xf32, #tpu.memory_space<vmem>>, %arg2: memref<16x1xf32, #tpu.memory_space<vmem>>, %arg3: memref<32x48xf32, #tpu.memory_space<vmem>>, %arg4: memref<32x1xf32, #tpu.memory_space<vmem>>, %arg5: memref<240x808xbf16, #tpu.memory_space<any>>, %arg6: memref<4x248xf32, #tpu.memory_space<vmem>>, %arg7: memref<4x2xf32, #tpu.memory_space<vmem>>, %arg8: memref<240x808xbf16, #tpu.memory_space<vmem>>, %arg9: memref<!tpu.dma_semaphore, #tpu.memory_space<semaphore_mem>>) attributes {dimension_semantics = [], scalar_prefetch = 0 : i64, scratch_operands = 2 : i64, tpu.core_type = #tpu.core_type<tc>} {
    tpu.enqueue_dma source(%arg5 : memref<240x808xbf16, #tpu.memory_space<any>>) target(%arg8 : memref<240x808xbf16, #tpu.memory_space<vmem>>) target_semaphore(%arg9 : memref<!tpu.dma_semaphore, #tpu.memory_space<semaphore_mem>>)
    %c0 = arith.constant 0 : index
    %c0_0 = arith.constant 0 : index
    %0 = vector.load %arg1[%c0, %c0_0] : memref<16x3xf32, #tpu.memory_space<vmem>>, vector<16x3xf32>
    %c0_1 = arith.constant 0 : index
    %c0_2 = arith.constant 0 : index
    %1 = vector.load %arg2[%c0_1, %c0_2] : memref<16x1xf32, #tpu.memory_space<vmem>>, vector<16x1xf32>
    %c0_3 = arith.constant 0 : index
    %c0_4 = arith.constant 0 : index
    %2 = vector.load %arg3[%c0_3, %c0_4] : memref<32x48xf32, #tpu.memory_space<vmem>>, vector<32x48xf32>
    %c0_5 = arith.constant 0 : index
    %c0_6 = arith.constant 0 : index
    %3 = vector.load %arg4[%c0_5, %c0_6] : memref<32x1xf32, #tpu.memory_space<vmem>>, vector<32x1xf32>
    %c0_7 = arith.constant 0 : index
    %c0_8 = arith.constant 0 : index
    %c0_9 = arith.constant 0 : index
    %4 = vector.load %arg0[%c0_7, %c0_8, %c0_9] : memref<2x4x27xf32, #tpu.memory_space<vmem>>, vector<1x4x27xf32>
    %5 = vector.shape_cast %4 : vector<1x4x27xf32> to vector<4x27xf32>
    %6 = vector.extract_strided_slice %5 {offsets = [0, 0], sizes = [1, 26], strides = [1, 1]} : vector<4x27xf32> to vector<1x26xf32>
    %7 = vector.extract_strided_slice %5 {offsets = [1, 0], sizes = [1, 26], strides = [1, 1]} : vector<4x27xf32> to vector<1x26xf32>
    %8 = vector.extract_strided_slice %5 {offsets = [2, 0], sizes = [1, 26], strides = [1, 1]} : vector<4x27xf32> to vector<1x26xf32>
    %9 = vector.extract_strided_slice %5 {offsets = [3, 0], sizes = [1, 26], strides = [1, 1]} : vector<4x27xf32> to vector<1x26xf32>
    %10 = vector.extract_strided_slice %5 {offsets = [0, 1], sizes = [1, 26], strides = [1, 1]} : vector<4x27xf32> to vector<1x26xf32>
    %11 = vector.extract_strided_slice %5 {offsets = [1, 1], sizes = [1, 26], strides = [1, 1]} : vector<4x27xf32> to vector<1x26xf32>
    %12 = vector.extract_strided_slice %0 {offsets = [0, 0], sizes = [16, 1], strides = [1, 1]} : vector<16x3xf32> to vector<16x1xf32>
    %13 = vector.broadcast %12 : vector<16x1xf32> to vector<16x26xf32>
    %14 = vector.broadcast %6 : vector<1x26xf32> to vector<16x26xf32>
    %15 = arith.mulf %13, %14 : vector<16x26xf32>
    %16 = vector.extract_strided_slice %0 {offsets = [0, 1], sizes = [16, 1], strides = [1, 1]} : vector<16x3xf32> to vector<16x1xf32>
    %17 = vector.broadcast %16 : vector<16x1xf32> to vector<16x26xf32>
    %18 = vector.broadcast %7 : vector<1x26xf32> to vector<16x26xf32>
    %19 = arith.mulf %17, %18 : vector<16x26xf32>
    %20 = arith.addf %15, %19 : vector<16x26xf32>
    %21 = vector.extract_strided_slice %0 {offsets = [0, 2], sizes = [16, 1], strides = [1, 1]} : vector<16x3xf32> to vector<16x1xf32>
    %22 = vector.broadcast %21 : vector<16x1xf32> to vector<16x26xf32>
    %23 = vector.broadcast %8 : vector<1x26xf32> to vector<16x26xf32>
    %24 = arith.mulf %22, %23 : vector<16x26xf32>
    %25 = arith.addf %20, %24 : vector<16x26xf32>
    %26 = vector.extract_strided_slice %0 {offsets = [0, 0], sizes = [16, 1], strides = [1, 1]} : vector<16x3xf32> to vector<16x1xf32>
    %27 = vector.broadcast %26 : vector<16x1xf32> to vector<16x26xf32>
    %28 = vector.broadcast %7 : vector<1x26xf32> to vector<16x26xf32>
    %29 = arith.mulf %27, %28 : vector<16x26xf32>
    %30 = vector.extract_strided_slice %0 {offsets = [0, 1], sizes = [16, 1], strides = [1, 1]} : vector<16x3xf32> to vector<16x1xf32>
    %31 = vector.broadcast %30 : vector<16x1xf32> to vector<16x26xf32>
    %32 = vector.broadcast %8 : vector<1x26xf32> to vector<16x26xf32>
    %33 = arith.mulf %31, %32 : vector<16x26xf32>
    %34 = arith.addf %29, %33 : vector<16x26xf32>
    %35 = vector.extract_strided_slice %0 {offsets = [0, 2], sizes = [16, 1], strides = [1, 1]} : vector<16x3xf32> to vector<16x1xf32>
    %36 = vector.broadcast %35 : vector<16x1xf32> to vector<16x26xf32>
    %37 = vector.broadcast %9 : vector<1x26xf32> to vector<16x26xf32>
    %38 = arith.mulf %36, %37 : vector<16x26xf32>
    %39 = arith.addf %34, %38 : vector<16x26xf32>
    %40 = arith.maximumf %25, %39 : vector<16x26xf32>
    %41 = vector.broadcast %1 : vector<16x1xf32> to vector<16x26xf32>
    %42 = arith.addf %40, %41 : vector<16x26xf32>
    %cst = arith.constant 0.000000e+00 : f32
    %43 = vector.broadcast %cst : f32 to vector<16x26xf32>
    %44 = arith.maximumf %42, %43 : vector<16x26xf32>
    %45 = vector.extract_strided_slice %0 {offsets = [0, 0], sizes = [16, 1], strides = [1, 1]} : vector<16x3xf32> to vector<16x1xf32>
    %46 = vector.broadcast %45 : vector<16x1xf32> to vector<16x26xf32>
    %47 = vector.broadcast %8 : vector<1x26xf32> to vector<16x26xf32>
    %48 = arith.mulf %46, %47 : vector<16x26xf32>
    %49 = vector.extract_strided_slice %0 {offsets = [0, 1], sizes = [16, 1], strides = [1, 1]} : vector<16x3xf32> to vector<16x1xf32>
    %50 = vector.broadcast %49 : vector<16x1xf32> to vector<16x26xf32>
    %51 = vector.broadcast %9 : vector<1x26xf32> to vector<16x26xf32>
    %52 = arith.mulf %50, %51 : vector<16x26xf32>
    %53 = arith.addf %48, %52 : vector<16x26xf32>
    %54 = vector.extract_strided_slice %0 {offsets = [0, 2], sizes = [16, 1], strides = [1, 1]} : vector<16x3xf32> to vector<16x1xf32>
    %55 = vector.broadcast %54 : vector<16x1xf32> to vector<16x26xf32>
    %56 = vector.broadcast %10 : vector<1x26xf32> to vector<16x26xf32>
    %57 = arith.mulf %55, %56 : vector<16x26xf32>
    %58 = arith.addf %53, %57 : vector<16x26xf32>
    %59 = vector.extract_strided_slice %0 {offsets = [0, 0], sizes = [16, 1], strides = [1, 1]} : vector<16x3xf32> to vector<16x1xf32>
    %60 = vector.broadcast %59 : vector<16x1xf32> to vector<16x26xf32>
    %61 = vector.broadcast %9 : vector<1x26xf32> to vector<16x26xf32>
    %62 = arith.mulf %60, %61 : vector<16x26xf32>
    %63 = vector.extract_strided_slice %0 {offsets = [0, 1], sizes = [16, 1], strides = [1, 1]} : vector<16x3xf32> to vector<16x1xf32>
    %64 = vector.broadcast %63 : vector<16x1xf32> to vector<16x26xf32>
    %65 = vector.broadcast %10 : vector<1x26xf32> to vector<16x26xf32>
    %66 = arith.mulf %64, %65 : vector<16x26xf32>
    %67 = arith.addf %62, %66 : vector<16x26xf32>
    %68 = vector.extract_strided_slice %0 {offsets = [0, 2], sizes = [16, 1], strides = [1, 1]} : vector<16x3xf32> to vector<16x1xf32>
    %69 = vector.broadcast %68 : vector<16x1xf32> to vector<16x26xf32>
    %70 = vector.broadcast %11 : vector<1x26xf32> to vector<16x26xf32>
    %71 = arith.mulf %69, %70 : vector<16x26xf32>
    %72 = arith.addf %67, %71 : vector<16x26xf32>
    %73 = arith.maximumf %58, %72 : vector<16x26xf32>
    %74 = vector.broadcast %1 : vector<16x1xf32> to vector<16x26xf32>
    %75 = arith.addf %73, %74 : vector<16x26xf32>
    %cst_10 = arith.constant 0.000000e+00 : f32
    %76 = vector.broadcast %cst_10 : f32 to vector<16x26xf32>
    %77 = arith.maximumf %75, %76 : vector<16x26xf32>
    %78 = vector.extract_strided_slice %44 {offsets = [0, 0], sizes = [16, 25], strides = [1, 1]} : vector<16x26xf32> to vector<16x25xf32>
    %79 = vector.extract_strided_slice %44 {offsets = [0, 1], sizes = [16, 25], strides = [1, 1]} : vector<16x26xf32> to vector<16x25xf32>
    %80 = vector.extract_strided_slice %77 {offsets = [0, 0], sizes = [16, 25], strides = [1, 1]} : vector<16x26xf32> to vector<16x25xf32>
    %81 = vector.extract_strided_slice %77 {offsets = [0, 1], sizes = [16, 25], strides = [1, 1]} : vector<16x26xf32> to vector<16x25xf32>
    %82 = tpu.concatenate %78, %80, %79 in 0 : vector<16x25xf32>, vector<16x25xf32>, vector<16x25xf32> -> vector<48x25xf32>
    %83 = tpu.concatenate %80, %79, %81 in 0 : vector<16x25xf32>, vector<16x25xf32>, vector<16x25xf32> -> vector<48x25xf32>
    %c1 = arith.constant 1 : index
    %c0_11 = arith.constant 0 : index
    %c0_12 = arith.constant 0 : index
    %84 = vector.load %arg0[%c1, %c0_11, %c0_12] : memref<2x4x27xf32, #tpu.memory_space<vmem>>, vector<1x4x27xf32>
    %85 = vector.shape_cast %84 : vector<1x4x27xf32> to vector<4x27xf32>
    %86 = vector.extract_strided_slice %85 {offsets = [0, 0], sizes = [1, 26], strides = [1, 1]} : vector<4x27xf32> to vector<1x26xf32>
    %87 = vector.extract_strided_slice %85 {offsets = [1, 0], sizes = [1, 26], strides = [1, 1]} : vector<4x27xf32> to vector<1x26xf32>
    %88 = vector.extract_strided_slice %85 {offsets = [2, 0], sizes = [1, 26], strides = [1, 1]} : vector<4x27xf32> to vector<1x26xf32>
    %89 = vector.extract_strided_slice %85 {offsets = [3, 0], sizes = [1, 26], strides = [1, 1]} : vector<4x27xf32> to vector<1x26xf32>
    %90 = vector.extract_strided_slice %85 {offsets = [0, 1], sizes = [1, 26], strides = [1, 1]} : vector<4x27xf32> to vector<1x26xf32>
    %91 = vector.extract_strided_slice %85 {offsets = [1, 1], sizes = [1, 26], strides = [1, 1]} : vector<4x27xf32> to vector<1x26xf32>
    %92 = vector.extract_strided_slice %0 {offsets = [0, 0], sizes = [16, 1], strides = [1, 1]} : vector<16x3xf32> to vector<16x1xf32>
    %93 = vector.broadcast %92 : vector<16x1xf32> to vector<16x26xf32>
    %94 = vector.broadcast %86 : vector<1x26xf32> to vector<16x26xf32>
    %95 = arith.mulf %93, %94 : vector<16x26xf32>
    %96 = vector.extract_strided_slice %0 {offsets = [0, 1], sizes = [16, 1], strides = [1, 1]} : vector<16x3xf32> to vector<16x1xf32>
    %97 = vector.broadcast %96 : vector<16x1xf32> to vector<16x26xf32>
    %98 = vector.broadcast %87 : vector<1x26xf32> to vector<16x26xf32>
    %99 = arith.mulf %97, %98 : vector<16x26xf32>
    %100 = arith.addf %95, %99 : vector<16x26xf32>
    %101 = vector.extract_strided_slice %0 {offsets = [0, 2], sizes = [16, 1], strides = [1, 1]} : vector<16x3xf32> to vector<16x1xf32>
    %102 = vector.broadcast %101 : vector<16x1xf32> to vector<16x26xf32>
    %103 = vector.broadcast %88 : vector<1x26xf32> to vector<16x26xf32>
    %104 = arith.mulf %102, %103 : vector<16x26xf32>
    %105 = arith.addf %100, %104 : vector<16x26xf32>
    %106 = vector.extract_strided_slice %0 {offsets = [0, 0], sizes = [16, 1], strides = [1, 1]} : vector<16x3xf32> to vector<16x1xf32>
    %107 = vector.broadcast %106 : vector<16x1xf32> to vector<16x26xf32>
    %108 = vector.broadcast %87 : vector<1x26xf32> to vector<16x26xf32>
    %109 = arith.mulf %107, %108 : vector<16x26xf32>
    %110 = vector.extract_strided_slice %0 {offsets = [0, 1], sizes = [16, 1], strides = [1, 1]} : vector<16x3xf32> to vector<16x1xf32>
    %111 = vector.broadcast %110 : vector<16x1xf32> to vector<16x26xf32>
    %112 = vector.broadcast %88 : vector<1x26xf32> to vector<16x26xf32>
    %113 = arith.mulf %111, %112 : vector<16x26xf32>
    %114 = arith.addf %109, %113 : vector<16x26xf32>
    %115 = vector.extract_strided_slice %0 {offsets = [0, 2], sizes = [16, 1], strides = [1, 1]} : vector<16x3xf32> to vector<16x1xf32>
    %116 = vector.broadcast %115 : vector<16x1xf32> to vector<16x26xf32>
    %117 = vector.broadcast %89 : vector<1x26xf32> to vector<16x26xf32>
    %118 = arith.mulf %116, %117 : vector<16x26xf32>
    %119 = arith.addf %114, %118 : vector<16x26xf32>
    %120 = arith.maximumf %105, %119 : vector<16x26xf32>
    %121 = vector.broadcast %1 : vector<16x1xf32> to vector<16x26xf32>
    %122 = arith.addf %120, %121 : vector<16x26xf32>
    %cst_13 = arith.constant 0.000000e+00 : f32
    %123 = vector.broadcast %cst_13 : f32 to vector<16x26xf32>
    %124 = arith.maximumf %122, %123 : vector<16x26xf32>
    %125 = vector.extract_strided_slice %0 {offsets = [0, 0], sizes = [16, 1], strides = [1, 1]} : vector<16x3xf32> to vector<16x1xf32>
    %126 = vector.broadcast %125 : vector<16x1xf32> to vector<16x26xf32>
    %127 = vector.broadcast %88 : vector<1x26xf32> to vector<16x26xf32>
    %128 = arith.mulf %126, %127 : vector<16x26xf32>
    %129 = vector.extract_strided_slice %0 {offsets = [0, 1], sizes = [16, 1], strides = [1, 1]} : vector<16x3xf32> to vector<16x1xf32>
    %130 = vector.broadcast %129 : vector<16x1xf32> to vector<16x26xf32>
    %131 = vector.broadcast %89 : vector<1x26xf32> to vector<16x26xf32>
    %132 = arith.mulf %130, %131 : vector<16x26xf32>
    %133 = arith.addf %128, %132 : vector<16x26xf32>
    %134 = vector.extract_strided_slice %0 {offsets = [0, 2], sizes = [16, 1], strides = [1, 1]} : vector<16x3xf32> to vector<16x1xf32>
    %135 = vector.broadcast %134 : vector<16x1xf32> to vector<16x26xf32>
    %136 = vector.broadcast %90 : vector<1x26xf32> to vector<16x26xf32>
    %137 = arith.mulf %135, %136 : vector<16x26xf32>
    %138 = arith.addf %133, %137 : vector<16x26xf32>
    %139 = vector.extract_strided_slice %0 {offsets = [0, 0], sizes = [16, 1], strides = [1, 1]} : vector<16x3xf32> to vector<16x1xf32>
    %140 = vector.broadcast %139 : vector<16x1xf32> to vector<16x26xf32>
    %141 = vector.broadcast %89 : vector<1x26xf32> to vector<16x26xf32>
    %142 = arith.mulf %140, %141 : vector<16x26xf32>
    %143 = vector.extract_strided_slice %0 {offsets = [0, 1], sizes = [16, 1], strides = [1, 1]} : vector<16x3xf32> to vector<16x1xf32>
    %144 = vector.broadcast %143 : vector<16x1xf32> to vector<16x26xf32>
    %145 = vector.broadcast %90 : vector<1x26xf32> to vector<16x26xf32>
    %146 = arith.mulf %144, %145 : vector<16x26xf32>
    %147 = arith.addf %142, %146 : vector<16x26xf32>
    %148 = vector.extract_strided_slice %0 {offsets = [0, 2], sizes = [16, 1], strides = [1, 1]} : vector<16x3xf32> to vector<16x1xf32>
    %149 = vector.broadcast %148 : vector<16x1xf32> to vector<16x26xf32>
    %150 = vector.broadcast %91 : vector<1x26xf32> to vector<16x26xf32>
    %151 = arith.mulf %149, %150 : vector<16x26xf32>
    %152 = arith.addf %147, %151 : vector<16x26xf32>
    %153 = arith.maximumf %138, %152 : vector<16x26xf32>
    %154 = vector.broadcast %1 : vector<16x1xf32> to vector<16x26xf32>
    %155 = arith.addf %153, %154 : vector<16x26xf32>
    %cst_14 = arith.constant 0.000000e+00 : f32
    %156 = vector.broadcast %cst_14 : f32 to vector<16x26xf32>
    %157 = arith.maximumf %155, %156 : vector<16x26xf32>
    %158 = vector.extract_strided_slice %124 {offsets = [0, 0], sizes = [16, 25], strides = [1, 1]} : vector<16x26xf32> to vector<16x25xf32>
    %159 = vector.extract_strided_slice %124 {offsets = [0, 1], sizes = [16, 25], strides = [1, 1]} : vector<16x26xf32> to vector<16x25xf32>
    %160 = vector.extract_strided_slice %157 {offsets = [0, 0], sizes = [16, 25], strides = [1, 1]} : vector<16x26xf32> to vector<16x25xf32>
    %161 = vector.extract_strided_slice %157 {offsets = [0, 1], sizes = [16, 25], strides = [1, 1]} : vector<16x26xf32> to vector<16x25xf32>
    %162 = tpu.concatenate %158, %160, %159 in 0 : vector<16x25xf32>, vector<16x25xf32>, vector<16x25xf32> -> vector<48x25xf32>
    %163 = tpu.concatenate %160, %159, %161 in 0 : vector<16x25xf32>, vector<16x25xf32>, vector<16x25xf32> -> vector<48x25xf32>
    %164 = tpu.concatenate %82, %162, %83, %163 in 1 : vector<48x25xf32>, vector<48x25xf32>, vector<48x25xf32>, vector<48x25xf32> -> vector<48x100xf32>
    %cst_15 = arith.constant dense<0.000000e+00> : vector<32x100xf32>
    %165 = tpu.matmul %2, %164, %cst_15 {dimension_numbers = #tpu.dot_dimension_numbers<[1], [0], [0], [1], [0, 0, 1, 1], [], []>} : vector<32x48xf32>, vector<48x100xf32>, vector<32x100xf32> -> vector<32x100xf32>
    %166 = vector.extract_strided_slice %165 {offsets = [0, 0], sizes = [32, 50], strides = [1, 1]} : vector<32x100xf32> to vector<32x50xf32>
    %167 = vector.extract_strided_slice %165 {offsets = [0, 50], sizes = [32, 50], strides = [1, 1]} : vector<32x100xf32> to vector<32x50xf32>
    %168 = arith.maximumf %166, %167 : vector<32x50xf32>
    %169 = vector.broadcast %3 : vector<32x1xf32> to vector<32x50xf32>
    %170 = arith.addf %168, %169 : vector<32x50xf32>
    %cst_16 = arith.constant 0.000000e+00 : f32
    %171 = vector.broadcast %cst_16 : f32 to vector<32x50xf32>
    %172 = arith.maximumf %170, %171 : vector<32x50xf32>
    %173 = arith.truncf %172 : vector<32x50xf32> to vector<32x50xbf16>
    %174 = vector.extract_strided_slice %173 {offsets = [0, 0], sizes = [32, 1], strides = [1, 1]} : vector<32x50xbf16> to vector<32x1xbf16>
    %175 = vector.extract_strided_slice %173 {offsets = [0, 1], sizes = [32, 1], strides = [1, 1]} : vector<32x50xbf16> to vector<32x1xbf16>
    %176 = vector.extract_strided_slice %173 {offsets = [0, 2], sizes = [32, 1], strides = [1, 1]} : vector<32x50xbf16> to vector<32x1xbf16>
    %177 = vector.extract_strided_slice %173 {offsets = [0, 3], sizes = [32, 1], strides = [1, 1]} : vector<32x50xbf16> to vector<32x1xbf16>
    %178 = vector.extract_strided_slice %173 {offsets = [0, 4], sizes = [32, 1], strides = [1, 1]} : vector<32x50xbf16> to vector<32x1xbf16>
    %179 = vector.extract_strided_slice %173 {offsets = [0, 5], sizes = [32, 1], strides = [1, 1]} : vector<32x50xbf16> to vector<32x1xbf16>
    %180 = vector.extract_strided_slice %173 {offsets = [0, 6], sizes = [32, 1], strides = [1, 1]} : vector<32x50xbf16> to vector<32x1xbf16>
    %181 = vector.extract_strided_slice %173 {offsets = [0, 7], sizes = [32, 1], strides = [1, 1]} : vector<32x50xbf16> to vector<32x1xbf16>
    %182 = vector.extract_strided_slice %173 {offsets = [0, 8], sizes = [32, 1], strides = [1, 1]} : vector<32x50xbf16> to vector<32x1xbf16>
    %183 = vector.extract_strided_slice %173 {offsets = [0, 9], sizes = [32, 1], strides = [1, 1]} : vector<32x50xbf16> to vector<32x1xbf16>
    %184 = vector.extract_strided_slice %173 {offsets = [0, 10], sizes = [32, 1], strides = [1, 1]} : vector<32x50xbf16> to vector<32x1xbf16>
    %185 = vector.extract_strided_slice %173 {offsets = [0, 11], sizes = [32, 1], strides = [1, 1]} : vector<32x50xbf16> to vector<32x1xbf16>
    %186 = vector.extract_strided_slice %173 {offsets = [0, 12], sizes = [32, 1], strides = [1, 1]} : vector<32x50xbf16> to vector<32x1xbf16>
    %187 = vector.extract_strided_slice %173 {offsets = [0, 13], sizes = [32, 1], strides = [1, 1]} : vector<32x50xbf16> to vector<32x1xbf16>
    %188 = vector.extract_strided_slice %173 {offsets = [0, 14], sizes = [32, 1], strides = [1, 1]} : vector<32x50xbf16> to vector<32x1xbf16>
    %189 = vector.extract_strided_slice %173 {offsets = [0, 15], sizes = [32, 1], strides = [1, 1]} : vector<32x50xbf16> to vector<32x1xbf16>
    %190 = vector.extract_strided_slice %173 {offsets = [0, 16], sizes = [32, 1], strides = [1, 1]} : vector<32x50xbf16> to vector<32x1xbf16>
    %191 = vector.extract_strided_slice %173 {offsets = [0, 17], sizes = [32, 1], strides = [1, 1]} : vector<32x50xbf16> to vector<32x1xbf16>
    %192 = vector.extract_strided_slice %173 {offsets = [0, 18], sizes = [32, 1], strides = [1, 1]} : vector<32x50xbf16> to vector<32x1xbf16>
    %193 = vector.extract_strided_slice %173 {offsets = [0, 19], sizes = [32, 1], strides = [1, 1]} : vector<32x50xbf16> to vector<32x1xbf16>
    %194 = vector.extract_strided_slice %173 {offsets = [0, 20], sizes = [32, 1], strides = [1, 1]} : vector<32x50xbf16> to vector<32x1xbf16>
    %195 = vector.extract_strided_slice %173 {offsets = [0, 21], sizes = [32, 1], strides = [1, 1]} : vector<32x50xbf16> to vector<32x1xbf16>
    %196 = vector.extract_strided_slice %173 {offsets = [0, 22], sizes = [32, 1], strides = [1, 1]} : vector<32x50xbf16> to vector<32x1xbf16>
    %197 = vector.extract_strided_slice %173 {offsets = [0, 23], sizes = [32, 1], strides = [1, 1]} : vector<32x50xbf16> to vector<32x1xbf16>
    %198 = vector.extract_strided_slice %173 {offsets = [0, 24], sizes = [32, 1], strides = [1, 1]} : vector<32x50xbf16> to vector<32x1xbf16>
    %199 = tpu.concatenate %174, %175, %176, %177, %178, %179, %180, %181, %182, %183, %184, %185, %186, %187, %188, %189 in 0 : vector<32x1xbf16>, vector<32x1xbf16>, vector<32x1xbf16>, vector<32x1xbf16>, vector<32x1xbf16>, vector<32x1xbf16>, vector<32x1xbf16>, vector<32x1xbf16>, vector<32x1xbf16>, vector<32x1xbf16>, vector<32x1xbf16>, vector<32x1xbf16>, vector<32x1xbf16>, vector<32x1xbf16>, vector<32x1xbf16>, vector<32x1xbf16> -> vector<512x1xbf16>
    %200 = tpu.concatenate %190, %191, %192, %193, %194, %195, %196, %197, %198 in 0 : vector<32x1xbf16>, vector<32x1xbf16>, vector<32x1xbf16>, vector<32x1xbf16>, vector<32x1xbf16>, vector<32x1xbf16>, vector<32x1xbf16>, vector<32x1xbf16>, vector<32x1xbf16> -> vector<288x1xbf16>
    %201 = tpu.concatenate %199, %200 in 0 : vector<512x1xbf16>, vector<288x1xbf16> -> vector<800x1xbf16>
    %202 = vector.extract_strided_slice %173 {offsets = [0, 25], sizes = [32, 1], strides = [1, 1]} : vector<32x50xbf16> to vector<32x1xbf16>
    %203 = vector.extract_strided_slice %173 {offsets = [0, 26], sizes = [32, 1], strides = [1, 1]} : vector<32x50xbf16> to vector<32x1xbf16>
    %204 = vector.extract_strided_slice %173 {offsets = [0, 27], sizes = [32, 1], strides = [1, 1]} : vector<32x50xbf16> to vector<32x1xbf16>
    %205 = vector.extract_strided_slice %173 {offsets = [0, 28], sizes = [32, 1], strides = [1, 1]} : vector<32x50xbf16> to vector<32x1xbf16>
    %206 = vector.extract_strided_slice %173 {offsets = [0, 29], sizes = [32, 1], strides = [1, 1]} : vector<32x50xbf16> to vector<32x1xbf16>
    %207 = vector.extract_strided_slice %173 {offsets = [0, 30], sizes = [32, 1], strides = [1, 1]} : vector<32x50xbf16> to vector<32x1xbf16>
    %208 = vector.extract_strided_slice %173 {offsets = [0, 31], sizes = [32, 1], strides = [1, 1]} : vector<32x50xbf16> to vector<32x1xbf16>
    %209 = vector.extract_strided_slice %173 {offsets = [0, 32], sizes = [32, 1], strides = [1, 1]} : vector<32x50xbf16> to vector<32x1xbf16>
    %210 = vector.extract_strided_slice %173 {offsets = [0, 33], sizes = [32, 1], strides = [1, 1]} : vector<32x50xbf16> to vector<32x1xbf16>
    %211 = vector.extract_strided_slice %173 {offsets = [0, 34], sizes = [32, 1], strides = [1, 1]} : vector<32x50xbf16> to vector<32x1xbf16>
    %212 = vector.extract_strided_slice %173 {offsets = [0, 35], sizes = [32, 1], strides = [1, 1]} : vector<32x50xbf16> to vector<32x1xbf16>
    %213 = vector.extract_strided_slice %173 {offsets = [0, 36], sizes = [32, 1], strides = [1, 1]} : vector<32x50xbf16> to vector<32x1xbf16>
    %214 = vector.extract_strided_slice %173 {offsets = [0, 37], sizes = [32, 1], strides = [1, 1]} : vector<32x50xbf16> to vector<32x1xbf16>
    %215 = vector.extract_strided_slice %173 {offsets = [0, 38], sizes = [32, 1], strides = [1, 1]} : vector<32x50xbf16> to vector<32x1xbf16>
    %216 = vector.extract_strided_slice %173 {offsets = [0, 39], sizes = [32, 1], strides = [1, 1]} : vector<32x50xbf16> to vector<32x1xbf16>
    %217 = vector.extract_strided_slice %173 {offsets = [0, 40], sizes = [32, 1], strides = [1, 1]} : vector<32x50xbf16> to vector<32x1xbf16>
    %218 = vector.extract_strided_slice %173 {offsets = [0, 41], sizes = [32, 1], strides = [1, 1]} : vector<32x50xbf16> to vector<32x1xbf16>
    %219 = vector.extract_strided_slice %173 {offsets = [0, 42], sizes = [32, 1], strides = [1, 1]} : vector<32x50xbf16> to vector<32x1xbf16>
    %220 = vector.extract_strided_slice %173 {offsets = [0, 43], sizes = [32, 1], strides = [1, 1]} : vector<32x50xbf16> to vector<32x1xbf16>
    %221 = vector.extract_strided_slice %173 {offsets = [0, 44], sizes = [32, 1], strides = [1, 1]} : vector<32x50xbf16> to vector<32x1xbf16>
    %222 = vector.extract_strided_slice %173 {offsets = [0, 45], sizes = [32, 1], strides = [1, 1]} : vector<32x50xbf16> to vector<32x1xbf16>
    %223 = vector.extract_strided_slice %173 {offsets = [0, 46], sizes = [32, 1], strides = [1, 1]} : vector<32x50xbf16> to vector<32x1xbf16>
    %224 = vector.extract_strided_slice %173 {offsets = [0, 47], sizes = [32, 1], strides = [1, 1]} : vector<32x50xbf16> to vector<32x1xbf16>
    %225 = vector.extract_strided_slice %173 {offsets = [0, 48], sizes = [32, 1], strides = [1, 1]} : vector<32x50xbf16> to vector<32x1xbf16>
    %226 = vector.extract_strided_slice %173 {offsets = [0, 49], sizes = [32, 1], strides = [1, 1]} : vector<32x50xbf16> to vector<32x1xbf16>
    %227 = tpu.concatenate %202, %203, %204, %205, %206, %207, %208, %209, %210, %211, %212, %213, %214, %215, %216, %217 in 0 : vector<32x1xbf16>, vector<32x1xbf16>, vector<32x1xbf16>, vector<32x1xbf16>, vector<32x1xbf16>, vector<32x1xbf16>, vector<32x1xbf16>, vector<32x1xbf16>, vector<32x1xbf16>, vector<32x1xbf16>, vector<32x1xbf16>, vector<32x1xbf16>, vector<32x1xbf16>, vector<32x1xbf16>, vector<32x1xbf16>, vector<32x1xbf16> -> vector<512x1xbf16>
    %228 = tpu.concatenate %218, %219, %220, %221, %222, %223, %224, %225, %226 in 0 : vector<32x1xbf16>, vector<32x1xbf16>, vector<32x1xbf16>, vector<32x1xbf16>, vector<32x1xbf16>, vector<32x1xbf16>, vector<32x1xbf16>, vector<32x1xbf16>, vector<32x1xbf16> -> vector<288x1xbf16>
    %229 = tpu.concatenate %227, %228 in 0 : vector<512x1xbf16>, vector<288x1xbf16> -> vector<800x1xbf16>
    %230 = tpu.concatenate %201, %229 in 1 : vector<800x1xbf16>, vector<800x1xbf16> -> vector<800x2xbf16>
    %cst_17 = arith.constant 1.000000e+00 : bf16
    %231 = vector.broadcast %cst_17 : bf16 to vector<8x2xbf16>
    %232 = tpu.concatenate %230, %231 in 0 : vector<800x2xbf16>, vector<8x2xbf16> -> vector<808x2xbf16>
    tpu.wait_dma2 semaphore(%arg9 : memref<!tpu.dma_semaphore, #tpu.memory_space<semaphore_mem>>) src(%arg5 : memref<240x808xbf16, #tpu.memory_space<any>>) dst(%arg8 : memref<240x808xbf16, #tpu.memory_space<vmem>>)
    %c0_18 = arith.constant 0 : index
    %c0_19 = arith.constant 0 : index
    %233 = vector.load %arg8[%c0_18, %c0_19] : memref<240x808xbf16, #tpu.memory_space<vmem>>, vector<240x808xbf16>
    %cst_20 = arith.constant dense<0.000000e+00> : vector<240x2xf32>
    %234 = tpu.matmul %233, %232, %cst_20 {dimension_numbers = #tpu.dot_dimension_numbers<[1], [0], [0], [1], [0, 0, 1, 1], [], []>} : vector<240x808xbf16>, vector<808x2xbf16>, vector<240x2xf32> -> vector<240x2xf32>
    %cst_21 = arith.constant 0.000000e+00 : f32
    %235 = vector.broadcast %cst_21 : f32 to vector<240x2xf32>
    %236 = arith.maximumf %234, %235 : vector<240x2xf32>
    %cst_22 = arith.constant 1.000000e+00 : f32
    %237 = vector.broadcast %cst_22 : f32 to vector<8x2xf32>
    %238 = tpu.concatenate %236, %237 in 0 : vector<240x2xf32>, vector<8x2xf32> -> vector<248x2xf32>
    %c0_23 = arith.constant 0 : index
    %c0_24 = arith.constant 0 : index
    %239 = vector.load %arg6[%c0_23, %c0_24] : memref<4x248xf32, #tpu.memory_space<vmem>>, vector<4x248xf32>
    %cst_25 = arith.constant dense<0.000000e+00> : vector<4x2xf32>
    %240 = tpu.matmul %239, %238, %cst_25 {dimension_numbers = #tpu.dot_dimension_numbers<[1], [0], [0], [1], [0, 0, 1, 1], [], []>} : vector<4x248xf32>, vector<248x2xf32>, vector<4x2xf32> -> vector<4x2xf32>
    %c0_26 = arith.constant 0 : index
    %c0_27 = arith.constant 0 : index
    %241 = vector.load %arg7[%c0_26, %c0_27] : memref<4x2xf32, #tpu.memory_space<vmem>>, vector<4x2xf32>
    tpu.vector_store %arg7[%c0_26, %c0_27], %240 {strides = array<i32>} : memref<4x2xf32, #tpu.memory_space<vmem>>, vector<4x2xf32>,
    return
  }
}

</mosaic_0001>

<bundles_post_ra>
// kernel: cnn1d_forward.1
= control target key start
LH: loop header
LB: loop body
LE: loop exit
PB: predicated region body
PF: predicated region fallthrough
CT: control target
= control target key end

     0   :  { %s4527_s0 = inlined_call_operand.vmem [shape: f32[2,4,27], index: 0, kind: input, shape index: {}]   ;;  %s4528_s1 = inlined_call_operand.vmem [shape: f32[16,3], index: 1, kind: input, shape index: {}]   ;;  %s4529_s2 = inlined_call_operand.vmem [shape: f32[16,1], index: 2, kind: input, shape index: {}]   ;;  %s4530_s3 = inlined_call_operand.vmem [shape: f32[32,48], index: 3, kind: input, shape index: {}]   ;;  %s4531_s4 = inlined_call_operand.vmem [shape: f32[32,1], index: 4, kind: input, shape index: {}]   ;;  %s4532_s5 = inlined_call_operand.vmem [shape: bf16[240,808], index: 5, kind: input, shape index: {}]   ;;  %s4533_s6 = inlined_call_operand.vmem [shape: f32[4,248], index: 6, kind: input, shape index: {}]   ;;  %s4534_s7 = inlined_call_operand.vmem [shape: f32[4,2], index: 7, kind: output, shape index: {}]  }
   0x1   :  { %v36_v0 = vld [vmem:[%s4532_s5] sm:$0xff]  ;;  %v38_v1 = vld [vmem:[%s4532_s5 + $0x8] sm:$0xff]  ;;  %v40_v2 = vld [vmem:[%s4532_s5 + $0x10] sm:$0xff] }
   0x2   :  { %37 = vst [vmem:[#allocation2] sm:$0xff] %v36_v0  ;;  %v42_v3 = vld [vmem:[%s4532_s5 + $0x18] sm:$0xff]  ;;  %v44_v4 = vld [vmem:[%s4532_s5 + $0x20] sm:$0xff]  ;;  %v46_v5 = vld [vmem:[%s4532_s5 + $0x28] sm:$0xff] }
   0x3   :  { %39 = vst [vmem:[#allocation2 + $0x8] sm:$0xff] %v38_v1  ;;  %v48_v6 = vld [vmem:[%s4532_s5 + $0x30] sm:$0xff]  ;;  %v50_v7 = vld [vmem:[%s4532_s5 + $0x38] sm:$0xff]  ;;  %v52_v8 = vld [vmem:[%s4532_s5 + $0x40] sm:$0xff] }
   0x4   :  { %41 = vst [vmem:[#allocation2 + $0x10] sm:$0xff] %v40_v2  ;;  %v54_v9 = vld [vmem:[%s4532_s5 + $0x48] sm:$0xff]  ;;  %v56_v10 = vld [vmem:[%s4532_s5 + $0x50] sm:$0xff]  ;;  %v58_v11 = vld [vmem:[%s4532_s5 + $0x58] sm:$0xff] }
   0x5   :  { %43 = vst [vmem:[#allocation2 + $0x18] sm:$0xff] %v42_v3  ;;  %v60_v12 = vld [vmem:[%s4532_s5 + $0x60] sm:$0xff]  ;;  %v62_v13 = vld [vmem:[%s4532_s5 + $0x68] sm:$0xff]  ;;  %v64_v14 = vld [vmem:[%s4532_s5 + $0x70] sm:$0xff] }
   0x6   :  { %45 = vst [vmem:[#allocation2 + $0x20] sm:$0xff] %v44_v4  ;;  %v66_v15 = vld [vmem:[%s4532_s5 + $0x78] sm:$0xff]  ;;  %v68_v16 = vld [vmem:[%s4532_s5 + $0x80] sm:$0xff]  ;;  %v70_v17 = vld [vmem:[%s4532_s5 + $0x88] sm:$0xff] }
   0x7   :  { %47 = vst [vmem:[#allocation2 + $0x28] sm:$0xff] %v46_v5  ;;  %v72_v18 = vld [vmem:[%s4532_s5 + $0x90] sm:$0xff]  ;;  %v74_v19 = vld [vmem:[%s4532_s5 + $0x98] sm:$0xff]  ;;  %v76_v20 = vld [vmem:[%s4532_s5 + $0xa0] sm:$0xff] }
   0x8   :  { %49 = vst [vmem:[#allocation2 + $0x30] sm:$0xff] %v48_v6  ;;  %v78_v21 = vld [vmem:[%s4532_s5 + $0xa8] sm:$0xff]  ;;  %v80_v22 = vld [vmem:[%s4532_s5 + $0xb0] sm:$0xff]  ;;  %v82_v23 = vld [vmem:[%s4532_s5 + $0xb8] sm:$0xff] }
   0x9   :  { %51 = vst [vmem:[#allocation2 + $0x38] sm:$0xff] %v50_v7  ;;  %v84_v24 = vld [vmem:[%s4532_s5 + $0xc0] sm:$0xff]  ;;  %v86_v25 = vld [vmem:[%s4532_s5 + $0xc8] sm:$0xff]  ;;  %v88_v26 = vld [vmem:[%s4532_s5 + $0xd0] sm:$0xff] }
   0xa   :  { %53 = vst [vmem:[#allocation2 + $0x40] sm:$0xff] %v52_v8  ;;  %v90_v27 = vld [vmem:[%s4532_s5 + $0xd8] sm:$0xff]  ;;  %v92_v28 = vld [vmem:[%s4532_s5 + $0xe0] sm:$0xff]  ;;  %v94_v29 = vld [vmem:[%s4532_s5 + $0xe8] sm:$0xff] }
   0xb   :  { %55 = vst [vmem:[#allocation2 + $0x48] sm:$0xff] %v54_v9  ;;  %v96_v30 = vld [vmem:[%s4532_s5 + $0xf0] sm:$0xff]  ;;  %v98_v31 = vld [vmem:[%s4532_s5 + $0xf8] sm:$0xff]  ;;  %v100_v32 = vld [vmem:[%s4532_s5 + $0x100] sm:$0xff] }
   0xc   :  { %57 = vst [vmem:[#allocation2 + $0x50] sm:$0xff] %v56_v10  ;;  %v102_v33 = vld [vmem:[%s4532_s5 + $0x108] sm:$0xff]  ;;  %v104_v34 = vld [vmem:[%s4532_s5 + $0x110] sm:$0xff]  ;;  %v106_v35 = vld [vmem:[%s4532_s5 + $0x118] sm:$0xff] }
   0xd   :  { %59 = vst [vmem:[#allocation2 + $0x58] sm:$0xff] %v58_v11  ;;  %v108_v36 = vld [vmem:[%s4532_s5 + $0x120] sm:$0xff]  ;;  %v110_v37 = vld [vmem:[%s4532_s5 + $0x128] sm:$0xff]  ;;  %v112_v38 = vld [vmem:[%s4532_s5 + $0x130] sm:$0xff] }
   0xe   :  { %61 = vst [vmem:[#allocation2 + $0x60] sm:$0xff] %v60_v12  ;;  %v114_v39 = vld [vmem:[%s4532_s5 + $0x138] sm:$0xff]  ;;  %v116_v40 = vld [vmem:[%s4532_s5 + $0x140] sm:$0xff]  ;;  %v118_v41 = vld [vmem:[%s4532_s5 + $0x148] sm:$0xff] }
   0xf   :  { %63 = vst [vmem:[#allocation2 + $0x68] sm:$0xff] %v62_v13  ;;  %v120_v42 = vld [vmem:[%s4532_s5 + $0x150] sm:$0xff]  ;;  %v122_v43 = vld [vmem:[%s4532_s5 + $0x158] sm:$0xff]  ;;  %v124_v44 = vld [vmem:[%s4532_s5 + $0x160] sm:$0xff] }
  0x10   :  { %65 = vst [vmem:[#allocation2 + $0x70] sm:$0xff] %v64_v14  ;;  %v126_v45 = vld [vmem:[%s4532_s5 + $0x168] sm:$0xff]  ;;  %v128_v46 = vld [vmem:[%s4532_s5 + $0x170] sm:$0xff]  ;;  %v130_v47 = vld [vmem:[%s4532_s5 + $0x178] sm:$0xff] }
  0x11   :  { %67 = vst [vmem:[#allocation2 + $0x78] sm:$0xff] %v66_v15  ;;  %v132_v48 = vld [vmem:[%s4532_s5 + $0x180] sm:$0xff]  ;;  %v134_v49 = vld [vmem:[%s4532_s5 + $0x188] sm:$0xff]  ;;  %v136_v50 = vld [vmem:[%s4532_s5 + $0x190] sm:$0xff] }
  0x12   :  { %69 = vst [vmem:[#allocation2 + $0x80] sm:$0xff] %v68_v16  ;;  %v138_v51 = vld [vmem:[%s4532_s5 + $0x198] sm:$0xff]  ;;  %v140_v52 = vld [vmem:[%s4532_s5 + $0x1a0] sm:$0xff]  ;;  %v142_v53 = vld [vmem:[%s4532_s5 + $0x1a8] sm:$0xff] }
  0x13   :  { %71 = vst [vmem:[#allocation2 + $0x88] sm:$0xff] %v70_v17  ;;  %v144_v54 = vld [vmem:[%s4532_s5 + $0x1b0] sm:$0xff]  ;;  %v146_v55 = vld [vmem:[%s4532_s5 + $0x1b8] sm:$0xff]  ;;  %v148_v56 = vld [vmem:[%s4532_s5 + $0x1c0] sm:$0xff] }
  0x14   :  { %73 = vst [vmem:[#allocation2 + $0x90] sm:$0xff] %v72_v18  ;;  %v150_v57 = vld [vmem:[%s4532_s5 + $0x1c8] sm:$0xff]  ;;  %v152_v58 = vld [vmem:[%s4532_s5 + $0x1d0] sm:$0xff]  ;;  %v154_v59 = vld [vmem:[%s4532_s5 + $0x1d8] sm:$0xff] }
  0x15   :  { %75 = vst [vmem:[#allocation2 + $0x98] sm:$0xff] %v74_v19  ;;  %v156_v60 = vld [vmem:[%s4532_s5 + $0x1e0] sm:$0xff]  ;;  %v158_v61 = vld [vmem:[%s4532_s5 + $0x1e8] sm:$0xff]  ;;  %v160_v62 = vld [vmem:[%s4532_s5 + $0x1f0] sm:$0xff] }
  0x16   :  { %77 = vst [vmem:[#allocation2 + $0xa0] sm:$0xff] %v76_v20  ;;  %v162_v63 = vld [vmem:[%s4532_s5 + $0x1f8] sm:$0xff]  ;;  %v164_v0 = vld [vmem:[%s4532_s5 + $0x200] sm:$0xff]  ;;  %v166_v1 = vld [vmem:[%s4532_s5 + $0x208] sm:$0xff] }
  0x17   :  { %79 = vst [vmem:[#allocation2 + $0xa8] sm:$0xff] %v78_v21  ;;  %v168_v2 = vld [vmem:[%s4532_s5 + $0x210] sm:$0xff]  ;;  %v170_v3 = vld [vmem:[%s4532_s5 + $0x218] sm:$0xff]  ;;  %v172_v4 = vld [vmem:[%s4532_s5 + $0x220] sm:$0xff] }
  0x18   :  { %81 = vst [vmem:[#allocation2 + $0xb0] sm:$0xff] %v80_v22  ;;  %v174_v5 = vld [vmem:[%s4532_s5 + $0x228] sm:$0xff]  ;;  %v176_v6 = vld [vmem:[%s4532_s5 + $0x230] sm:$0xff]  ;;  %v178_v7 = vld [vmem:[%s4532_s5 + $0x238] sm:$0xff] }
  0x19   :  { %83 = vst [vmem:[#allocation2 + $0xb8] sm:$0xff] %v82_v23  ;;  %v180_v8 = vld [vmem:[%s4532_s5 + $0x240] sm:$0xff]  ;;  %v182_v9 = vld [vmem:[%s4532_s5 + $0x248] sm:$0xff]  ;;  %v184_v10 = vld [vmem:[%s4532_s5 + $0x250] sm:$0xff] }
  0x1a   :  { %85 = vst [vmem:[#allocation2 + $0xc0] sm:$0xff] %v84_v24  ;;  %v186_v11 = vld [vmem:[%s4532_s5 + $0x258] sm:$0xff]  ;;  %v188_v12 = vld [vmem:[%s4532_s5 + $0x260] sm:$0xff]  ;;  %v190_v13 = vld [vmem:[%s4532_s5 + $0x268] sm:$0xff] }
  0x1b   :  { %87 = vst [vmem:[#allocation2 + $0xc8] sm:$0xff] %v86_v25  ;;  %v192_v14 = vld [vmem:[%s4532_s5 + $0x270] sm:$0xff]  ;;  %v194_v15 = vld [vmem:[%s4532_s5 + $0x278] sm:$0xff]  ;;  %v196_v16 = vld [vmem:[%s4532_s5 + $0x280] sm:$0xff] }
  0x1c   :  { %89 = vst [vmem:[#allocation2 + $0xd0] sm:$0xff] %v88_v26  ;;  %v198_v17 = vld [vmem:[%s4532_s5 + $0x288] sm:$0xff]  ;;  %v200_v18 = vld [vmem:[%s4532_s5 + $0x290] sm:$0xff]  ;;  %v202_v19 = vld [vmem:[%s4532_s5 + $0x298] sm:$0xff] }
  0x1d   :  { %91 = vst [vmem:[#allocation2 + $0xd8] sm:$0xff] %v90_v27  ;;  %v204_v20 = vld [vmem:[%s4532_s5 + $0x2a0] sm:$0xff]  ;;  %v206_v21 = vld [vmem:[%s4532_s5 + $0x2a8] sm:$0xff]  ;;  %v208_v22 = vld [vmem:[%s4532_s5 + $0x2b0] sm:$0xff] }
  0x1e   :  { %93 = vst [vmem:[#allocation2 + $0xe0] sm:$0xff] %v92_v28  ;;  %v210_v23 = vld [vmem:[%s4532_s5 + $0x2b8] sm:$0xff]  ;;  %v212_v24 = vld [vmem:[%s4532_s5 + $0x2c0] sm:$0xff]  ;;  %v214_v25 = vld [vmem:[%s4532_s5 + $0x2c8] sm:$0xff] }
  0x1f   :  { %95 = vst [vmem:[#allocation2 + $0xe8] sm:$0xff] %v94_v29  ;;  %v216_v26 = vld [vmem:[%s4532_s5 + $0x2d0] sm:$0xff]  ;;  %v218_v27 = vld [vmem:[%s4532_s5 + $0x2d8] sm:$0xff]  ;;  %v220_v28 = vld [vmem:[%s4532_s5 + $0x2e0] sm:$0xff] }
  0x20   :  { %97 = vst [vmem:[#allocation2 + $0xf0] sm:$0xff] %v96_v30  ;;  %v222_v29 = vld [vmem:[%s4532_s5 + $0x2e8] sm:$0xff]  ;;  %v224_v30 = vld [vmem:[%s4532_s5 + $0x2f0] sm:$0xff] }
  0x21   :  { %99 = vst [vmem:[#allocation2 + $0xf8] sm:$0xff] %v98_v31  ;;  %v226_v31 = vld [vmem:[%s4532_s5 + $0x2f8] sm:$0xff] }
  0x22   :  { %101 = vst [vmem:[#allocation2 + $0x100] sm:$0xff] %v100_v32  ;;  %v228_v32 = vld [vmem:[%s4532_s5 + $0x300] sm:$0xff] }
  0x23   :  { %103 = vst [vmem:[#allocation2 + $0x108] sm:$0xff] %v102_v33  ;;  %v230_v33 = vld [vmem:[%s4532_s5 + $0x308] sm:$0xff] }
  0x24   :  { %105 = vst [vmem:[#allocation2 + $0x110] sm:$0xff] %v104_v34  ;;  %v232_v34 = vld [vmem:[%s4532_s5 + $0x310] sm:$0xff] }
  0x25   :  { %107 = vst [vmem:[#allocation2 + $0x118] sm:$0xff] %v106_v35  ;;  %v234_v35 = vld [vmem:[%s4532_s5 + $0x318] sm:$0xff] }
  0x26   :  { %109 = vst [vmem:[#allocation2 + $0x120] sm:$0xff] %v108_v36  ;;  %v236_v36 = vld [vmem:[%s4532_s5 + $0x320] sm:$0xff] }
  0x27   :  { %111 = vst [vmem:[#allocation2 + $0x128] sm:$0xff] %v110_v37  ;;  %v238_v37 = vld [vmem:[%s4532_s5 + $0x328] sm:$0xff] }
  0x28   :  { %113 = vst [vmem:[#allocation2 + $0x130] sm:$0xff] %v112_v38  ;;  %v240_v38 = vld [vmem:[%s4532_s5 + $0x330] sm:$0xff] }
  0x29   :  { %115 = vst [vmem:[#allocation2 + $0x138] sm:$0xff] %v114_v39  ;;  %v242_v39 = vld [vmem:[%s4532_s5 + $0x338] sm:$0xff] }
  0x2a   :  { %117 = vst [vmem:[#allocation2 + $0x140] sm:$0xff] %v116_v40  ;;  %v244_v40 = vld [vmem:[%s4532_s5 + $0x340] sm:$0xff] }
  0x2b   :  { %119 = vst [vmem:[#allocation2 + $0x148] sm:$0xff] %v118_v41  ;;  %v253_v41 = vld [vmem:[%s4528_s1 + $0x8] sm:$0xff] }
  0x2c   :  { %121 = vst [vmem:[#allocation2 + $0x150] sm:$0xff] %v120_v42  ;;  %v3115_v42 = vmov 2  }
  0x2d   :  { %123 = vst [vmem:[#allocation2 + $0x158] sm:$0xff] %v122_v43  ;;  %3044 = vset.pattern.permute.xlu1 %v3115_v42  ;;  %v3116_v43 = vmov 1  }
  0x2e   :  { %125 = vst [vmem:[#allocation2 + $0x160] sm:$0xff] %v124_v44  ;;  %3043 = vset.pattern.permute.xlu0 %v3116_v43 }
  0x2f   :  { %127 = vst [vmem:[#allocation2 + $0x168] sm:$0xff] %v126_v45 }
  0x30   :  { %129 = vst [vmem:[#allocation2 + $0x170] sm:$0xff] %v128_v46 }
  0x31   :  { %131 = vst [vmem:[#allocation2 + $0x178] sm:$0xff] %v130_v47 }
  0x32   :  { %133 = vst [vmem:[#allocation2 + $0x180] sm:$0xff] %v132_v48 }
  0x33   :  { %135 = vst [vmem:[#allocation2 + $0x188] sm:$0xff] %v134_v49 }
  0x34   :  { %137 = vst [vmem:[#allocation2 + $0x190] sm:$0xff] %v136_v50 }
  0x35   :  { %139 = vst [vmem:[#allocation2 + $0x198] sm:$0xff] %v138_v51 }
  0x36   :  { %141 = vst [vmem:[#allocation2 + $0x1a0] sm:$0xff] %v140_v52 }
  0x37   :  { %143 = vst [vmem:[#allocation2 + $0x1a8] sm:$0xff] %v142_v53 }
  0x38   :  { %145 = vst [vmem:[#allocation2 + $0x1b0] sm:$0xff] %v144_v54 }
  0x39   :  { %147 = vst [vmem:[#allocation2 + $0x1b8] sm:$0xff] %v146_v55 }
  0x3a   :  { %149 = vst [vmem:[#allocation2 + $0x1c0] sm:$0xff] %v148_v56 }
  0x3b   :  { %151 = vst [vmem:[#allocation2 + $0x1c8] sm:$0xff] %v150_v57 }
  0x3c   :  { %153 = vst [vmem:[#allocation2 + $0x1d0] sm:$0xff] %v152_v58 }
  0x3d   :  { %155 = vst [vmem:[#allocation2 + $0x1d8] sm:$0xff] %v154_v59 }
  0x3e   :  { %157 = vst [vmem:[#allocation2 + $0x1e0] sm:$0xff] %v156_v60 }
  0x3f   :  { %159 = vst [vmem:[#allocation2 + $0x1e8] sm:$0xff] %v158_v61 }
  0x40   :  { %161 = vst [vmem:[#allocation2 + $0x1f0] sm:$0xff] %v160_v62 }
  0x41   :  { %163 = vst [vmem:[#allocation2 + $0x1f8] sm:$0xff] %v162_v63 }
  0x42   :  { %165 = vst [vmem:[#allocation2 + $0x200] sm:$0xff] %v164_v0 }
  0x43   :  { %167 = vst [vmem:[#allocation2 + $0x208] sm:$0xff] %v166_v1 }
  0x44   :  { %169 = vst [vmem:[#allocation2 + $0x210] sm:$0xff] %v168_v2 }
  0x45   :  { %171 = vst [vmem:[#allocation2 + $0x218] sm:$0xff] %v170_v3 }
  0x46   :  { %173 = vst [vmem:[#allocation2 + $0x220] sm:$0xff] %v172_v4 }
  0x47   :  { %175 = vst [vmem:[#allocation2 + $0x228] sm:$0xff] %v174_v5 }
  0x48   :  { %177 = vst [vmem:[#allocation2 + $0x230] sm:$0xff] %v176_v6 }
  0x49   :  { %179 = vst [vmem:[#allocation2 + $0x238] sm:$0xff] %v178_v7 }
  0x4a   :  { %181 = vst [vmem:[#allocation2 + $0x240] sm:$0xff] %v180_v8 }
  0x4b   :  { %183 = vst [vmem:[#allocation2 + $0x248] sm:$0xff] %v182_v9 }
  0x4c   :  { %185 = vst [vmem:[#allocation2 + $0x250] sm:$0xff] %v184_v10 }
  0x4d   :  { %187 = vst [vmem:[#allocation2 + $0x258] sm:$0xff] %v186_v11 }
  0x4e   :  { %189 = vst [vmem:[#allocation2 + $0x260] sm:$0xff] %v188_v12 }
  0x4f   :  { %191 = vst [vmem:[#allocation2 + $0x268] sm:$0xff] %v190_v13 }
  0x50   :  { %193 = vst [vmem:[#allocation2 + $0x270] sm:$0xff] %v192_v14 }
  0x51   :  { %195 = vst [vmem:[#allocation2 + $0x278] sm:$0xff] %v194_v15 }
  0x52   :  { %197 = vst [vmem:[#allocation2 + $0x280] sm:$0xff] %v196_v16 }
  0x53   :  { %199 = vst [vmem:[#allocation2 + $0x288] sm:$0xff] %v198_v17 }
  0x54   :  { %201 = vst [vmem:[#allocation2 + $0x290] sm:$0xff] %v200_v18 }
  0x55   :  { %203 = vst [vmem:[#allocation2 + $0x298] sm:$0xff] %v202_v19 }
  0x56   :  { %205 = vst [vmem:[#allocation2 + $0x2a0] sm:$0xff] %v204_v20 }
  0x57   :  { %207 = vst [vmem:[#allocation2 + $0x2a8] sm:$0xff] %v206_v21 }
  0x58   :  { %209 = vst [vmem:[#allocation2 + $0x2b0] sm:$0xff] %v208_v22 }
  0x59   :  { %211 = vst [vmem:[#allocation2 + $0x2b8] sm:$0xff] %v210_v23 }
  0x5a   :  { %213 = vst [vmem:[#allocation2 + $0x2c0] sm:$0xff] %v212_v24 }
  0x5b   :  { %215 = vst [vmem:[#allocation2 + $0x2c8] sm:$0xff] %v214_v25 }
  0x5c   :  { %217 = vst [vmem:[#allocation2 + $0x2d0] sm:$0xff] %v216_v26 }
  0x5d   :  { %219 = vst [vmem:[#allocation2 + $0x2d8] sm:$0xff] %v218_v27 }
  0x5e   :  { %221 = vst [vmem:[#allocation2 + $0x2e0] sm:$0xff] %v220_v28 }
  0x5f   :  { %223 = vst [vmem:[#allocation2 + $0x2e8] sm:$0xff] %v222_v29 }
  0x60   :  { %225 = vst [vmem:[#allocation2 + $0x2f0] sm:$0xff] %v224_v30 }
  0x61   :  { %227 = vst [vmem:[#allocation2 + $0x2f8] sm:$0xff] %v226_v31 }
  0x62   :  { %229 = vst [vmem:[#allocation2 + $0x300] sm:$0xff] %v228_v32 }
  0x63   :  { %231 = vst [vmem:[#allocation2 + $0x308] sm:$0xff] %v230_v33 }
  0x64   :  { %233 = vst [vmem:[#allocation2 + $0x310] sm:$0xff] %v232_v34 }
  0x65   :  { %235 = vst [vmem:[#allocation2 + $0x318] sm:$0xff] %v234_v35 }
  0x66   :  { %237 = vst [vmem:[#allocation2 + $0x320] sm:$0xff] %v236_v36 }
  0x67   :  { %239 = vst [vmem:[#allocation2 + $0x328] sm:$0xff] %v238_v37 }
  0x68   :  { %241 = vst [vmem:[#allocation2 + $0x330] sm:$0xff] %v240_v38 }
  0x69   :  { %243 = vst [vmem:[#allocation2 + $0x338] sm:$0xff] %v242_v39 }
  0x6a   :  { %245 = vst [vmem:[#allocation2 + $0x340] sm:$0xff] %v244_v40 }
  0x6b   :  { %251 = vsyncadd [#allocation3], 13440  ;;  %296 = vperm.xlu1 %3044, %v253_v41   ;;  %283 = vperm.xlu0 %3043, %v253_v41   ;;  %v252_v44 = vld [vmem:[%s4528_s1] sm:$0xff]  ;;  %v3117_v45 = vmov 0   ;;  %v255_v46 = vld [vmem:[%s4529_s2 + $0x8] sm:$0xff]  ;;  %s3120_s14 = smov 50  }
  0x6c   :  { %3045 = vset.pattern.permute.xlu2 %v3117_v45  ;;  %v264_v48 = vld [vmem:[%s4527_s0] sm:$0xf]  ;;  %v2447_v49 = vld [vmem:[%s4527_s0 + $0x4] sm:$0xf]  ;;  %s3118_s0 = smov 127   ;;  %s3121_s15 = smov 75  }
  0x6d   :  { %267 = vperm.xlu2 %3045, %v252_v44   ;;  %v3515_v50 = vperm.slane %v264_v48, 0  ;;  %v3517_v51 = vperm.slane %v2447_v49, 0  ;;  %v3519_v52 = vperm.slane %v264_v48, 1  ;;  %v3521_v53 = vperm.slane %v2447_v49, 1  ;;  %s3122_s5 = smov 78   ;;  %s3124_s8 = smov 124  }
  0x6e   :  { %v3525_v55 = vperm.slane %v264_v48, 2  ;;  %v3527_v56 = vperm.slane %v2447_v49, 2  ;;  %v3529_v57 = vperm.slane %v264_v48, 3  ;;  %v3531_v58 = vperm.slane %v2447_v49, 3  ;;  %s3125_s9 = smov 122   ;;  %s3126_s1 = smov 126  }
  0x6f   :  { %vm543_vm0 = vcmask 203776   ;;  %vm557_vm1 = vcmask 613376   ;;  %vm550_vm2 = vcmask 408576   ;;  %vm564_vm3 = vcmask 392192   ;;  %s3127_s10 = smov 121   ;;  %s3128_s11 = smov 119  }
  0x70   :  { %s3129_s12 = smov 123   ;;  %s3130_s13 = smov 118   ;;  %vm864_vm4 = vcmask 7168  }
  0x71   :  { %s3134_s16 = smov 113   ;;  %s3135_s17 = smov 117  }
  0x72   :  { %s3136_s18 = smov 112   ;;  %s3137_s19 = smov 114  }
  0x73   :  { %292 = vperm.xlu1 %3044, %v252_v44   ;;  %279 = vperm.xlu0 %3043, %v252_v44   ;;  %s3138_s20 = smov 104  }
  0x75   :  { %272 = vperm.xlu2 %3045, %v253_v41  }
  0x7b   :  { %3046 = vset.pattern.permute.xlu1 %v3117_v45  ;;  %3112 = vset.pattern.permute.xlu0 %v3117_v45 }
  0x7c   :  { %324 = vperm.xlu1 %3046, %v255_v46  }
  0xc7   :  { %v3507_v47 = vpop.permute.xlu2 %267 }
  0xc8   :  { %v276_v33 = vmul.f32 %v3515_v50, %v3507_v47  ;;  %v304_v34 = vmul.f32 %v3519_v52, %v3507_v47  ;;  %v398_v35 = vmul.f32 %v3517_v51, %v3507_v47  ;;  %v410_v38 = vmul.f32 %v3521_v53, %v3507_v47 }
  0xcf   :  { %v3523_v54 = vpop.permute.xlu2 %272 }
  0xd0   :  { %v277_v61 = vmul.f32 %v3515_v50, %v3523_v54  ;;  %v305_v62 = vmul.f32 %v3519_v52, %v3523_v54  ;;  %v399_v63 = vmul.f32 %v3517_v51, %v3523_v54  ;;  %v411_v0 = vmul.f32 %v3521_v53, %v3523_v54 }
  0xd1   :  { %v332_v4 = vmul.f32 %v3525_v55, %v3523_v54  ;;  %v428_v8 = vmul.f32 %v3527_v56, %v3523_v54 }
  0xdd   :  { %v297_v59 = vpop.permute.xlu1 %296  ;;  %v284_v60 = vpop.permute.xlu0 %283 }
  0xde   :  { %v338_v1 = vmul.f32 %v297_v59, %v3515_v50  ;;  %v448_v2 = vmul.f32 %v3517_v51, %v284_v60  ;;  %v352_v3 = vmul.f32 %v284_v60, %v3515_v50  ;;  %v288_v5 = vmul.f32 %v3519_v52, %v284_v60 }
  0xdf   :  { %v301_v6 = vmul.f32 %v3525_v55, %v297_v59  ;;  %v307_v7 = vmul.f32 %v3525_v55, %v284_v60  ;;  %v312_v9 = vmul.f32 %v3529_v57, %v297_v59  ;;  %v402_v10 = vmul.f32 %v3521_v53, %v284_v60 }
  0xe0   :  { %343 = vrot.lane.b32.xlu2 %v338_v1, %s3118_s0  ;;  %453 = vrot.lane.b32.xlu1 %v448_v2, %s3118_s0  ;;  %v407_v11 = vmul.f32 %v3527_v56, %v297_v59  ;;  %v290_v12 = vadd.f32 %v288_v5, %v277_v61  ;;  %v413_v14 = vmul.f32 %v3527_v56, %v284_v60 }
  0xe1   :  { %357 = vrot.lane.b32.xlu0 %v352_v3, %s3118_s0  ;;  %v309_v13 = vadd.f32 %v307_v7, %v305_v62  ;;  %v418_v15 = vmul.f32 %v3531_v58, %v297_v59  ;;  %v404_v16 = vadd.f32 %v402_v10, %v399_v63  ;;  %v334_v17 = vmul.f32 %v3529_v57, %v284_v60 }
  0xe2   :  { %v430_v18 = vmul.f32 %v3531_v58, %v284_v60  ;;  %v434_v19 = vmul.f32 %v3517_v51, %v297_v59  ;;  %v3562_v20 = vadd.f32 %v301_v6, %v290_v12  ;;  %v415_v22 = vadd.f32 %v413_v14, %v411_v0 }
  0xe3   :  { %v3564_v21 = vadd.f32 %v312_v9, %v309_v13  ;;  %v364_v23 = vmul.f32 %v297_v59, %v3519_v52  ;;  %v409_v24 = vadd.f32 %v407_v11, %v404_v16  ;;  %v336_v25 = vadd.f32 %v334_v17, %v332_v4 }
  0xe4   :  { %v3567_v26 = vadd.f32 %v430_v18, %v428_v8  ;;  %v420_v30 = vadd.f32 %v418_v15, %v415_v22  ;;  %v460_v46 = vmul.f32 %v3521_v53, %v297_v59  ;;  %v350_v12 = vmul.f32 %v3529_v57, %v3523_v54 }
  0xe5   :  { %v3569_v27 = vpop.permute.xlu0 %279  ;;  %v293_v28 = vpop.permute.xlu1 %292  ;;  %v316_v29 = vmax.f32 %v3562_v20, %v3564_v21 }
  0xe6   :  { %v351_v31 = vmul.f32 %v3569_v27, %v3515_v50  ;;  %v422_v32 = vmax.f32 %v409_v24, %v420_v30  ;;  %v300_v36 = vmul.f32 %v3525_v55, %v293_v28  ;;  %v311_v37 = vmul.f32 %v3529_v57, %v293_v28 }
  0xe7   :  { %v406_v39 = vmul.f32 %v3527_v56, %v293_v28  ;;  %v417_v40 = vmul.f32 %v3531_v58, %v293_v28  ;;  %v287_v41 = vmul.f32 %v3519_v52, %v3569_v27  ;;  %v306_v42 = vmul.f32 %v3525_v55, %v3569_v27 }
  0xe8   :  { %439 = vrot.lane.b32.xlu2 %v434_v19, %s3118_s0  ;;  %369 = vrot.lane.b32.xlu1 %v364_v23, %s3118_s0  ;;  %v401_v43 = vmul.f32 %v3521_v53, %v3569_v27  ;;  %v412_v44 = vmul.f32 %v3527_v56, %v3569_v27  ;;  %v337_v49 = vmul.f32 %v293_v28, %v3515_v50  ;;  %v254_v50 = vld [vmem:[%s4529_s2] sm:$0xff]  ;;  %s3119_s2 = smov 25  }
  0xe9   :  { %355 = vrot.lane.b32.xlu0 %v351_v31, %s3118_s0  ;;  %v289_v48 = vadd.f32 %v287_v41, %v276_v33  ;;  %v308_v60 = vadd.f32 %v306_v42, %v304_v34  ;;  %v447_v3 = vmul.f32 %v3517_v51, %v3569_v27  ;;  %v433_v59 = vmul.f32 %v3517_v51, %v293_v28 }
  0xea   :  { %v403_v61 = vadd.f32 %v401_v43, %v398_v35  ;;  %v414_v62 = vadd.f32 %v412_v44, %v410_v38  ;;  %v363_v6 = vmul.f32 %v293_v28, %v3519_v52  ;;  %v459_v7 = vmul.f32 %v3521_v53, %v293_v28 }
  0xeb   :  { %v302_v63 = vadd.f32 %v300_v36, %v289_v48  ;;  %v313_v0 = vadd.f32 %v311_v37, %v308_v60  ;;  %v446_v53 = vmul.f32 %v3531_v58, %v3523_v54  ;;  %v331_v36 = vmul.f32 %v3525_v55, %v3507_v47 }
  0xec   :  { %v408_v1 = vadd.f32 %v406_v39, %v403_v61  ;;  %v419_v2 = vadd.f32 %v417_v40, %v414_v62  ;;  %v349_v37 = vmul.f32 %v3529_v57, %v3507_v47  ;;  %v427_v55 = vmul.f32 %v3527_v56, %v3507_v47 }
  0xed   :  { %v315_v4 = vmax.f32 %v302_v63, %v313_v0  ;;  %v445_v62 = vmul.f32 %v3531_v58, %v3507_v47 }
  0xee   :  { %v421_v5 = vmax.f32 %v408_v1, %v419_v2  ;;  %v325_v8 = vpop.permute.xlu1 %324 }
  0xef   :  { %v424_v16 = vadd.f32 %v422_v32, %v325_v8  ;;  %v3626_v54 = vadd.f32 %v325_v8, %v316_v29 }
  0xf0   :  { %465 = vrot.lane.b32.xlu1 %v460_v46, %s3118_s0  ;;  %341 = vrot.lane.b32.xlu2 %v337_v49, %s3118_s0  ;;  %v429_v46 = vmul.f32 %v3531_v58, %v3569_v27 }
  0xf1   :  { %451 = vrot.lane.b32.xlu0 %v447_v3, %s3118_s0  ;;  %v426_v24 = vmax.f32 %v424_v16, 0.0  ;;  %v330_v29 = vmax.f32 %v3626_v54, 0.0 }
  0xf2   :  { %v431_v56 = vadd.f32 %v429_v46, %v427_v55 }
  0xf8   :  { %319 = vperm.xlu1 %3046, %v254_v50   ;;  %437 = vrot.lane.b32.xlu2 %v433_v59, %s3118_s0 }
  0xf9   :  { %367 = vrot.lane.b32.xlu0 %v363_v6, %s3118_s0 }
 0x101   :  { %463 = vrot.lane.b32.xlu0 %v459_v7, %s3118_s0 }
 0x13a   :  { %v344_v10 = vpop.permute.xlu2 %343 }
 0x13b   :  { %v348_v14 = vadd.f32 %v344_v10, %v336_v25 }
 0x142   :  { %v440_v17 = vpop.permute.xlu2 %439 }
 0x143   :  { %v444_v30 = vadd.f32 %v440_v17, %v3567_v26  ;;  %v333_v26 = vmul.f32 %v3529_v57, %v3569_v27 }
 0x145   :  { %v335_v44 = vadd.f32 %v333_v26, %v331_v36 }
 0x14a   :  { %v342_v32 = vpop.permute.xlu2 %341 }
 0x14b   :  { %v347_v61 = vadd.f32 %v342_v32, %v335_v44 }
 0x152   :  { %v454_v9 = vpop.permute.xlu1 %453  ;;  %v438_v63 = vpop.permute.xlu2 %437 }
 0x153   :  { %v358_v11 = vpop.permute.xlu0 %357  ;;  %v458_v22 = vadd.f32 %v454_v9, %v446_v53  ;;  %v443_v2 = vadd.f32 %v438_v63, %v431_v56 }
 0x154   :  { %v362_v13 = vadd.f32 %v358_v11, %v350_v12 }
 0x15a   :  { %v370_v51 = vpop.permute.xlu1 %369 }
 0x15b   :  { %v374_v52 = vadd.f32 %v370_v51, %v362_v13  ;;  %v356_v15 = vpop.permute.xlu0 %355 }
 0x15c   :  { %v361_v42 = vadd.f32 %v356_v15, %v349_v37 }
 0x15d   :  { %v376_v18 = vmax.f32 %v348_v14, %v374_v52 }
 0x15f   :  { %v378_v19 = vadd.f32 %v376_v18, %v325_v8 }
 0x161   :  { %v3618_v23 = vmax.f32 %v378_v19, 0.0 }
 0x162   :  { %v466_v28 = vpop.permute.xlu1 %465 }
 0x163   :  { %v470_v31 = vadd.f32 %v466_v28, %v458_v22  ;;  %v452_v33 = vpop.permute.xlu0 %451  ;;  %v3047_v25 = vpack.i.bf16 %v3618_v23, %v426_v24  ;;  %v261_v28 = vld [vmem:[%s4531_s4 + $0x8] sm:$0xff] }
 0x164   :  { %v457_v0 = vadd.f32 %v452_v33, %v445_v62 }
 0x165   :  { %v472_v34 = vmax.f32 %v444_v30, %v470_v31  ;;  %3048 = vrot.lane.b32.xlu2 %v3047_v25, %s3118_s0  ;;  %v260_v30 = vld [vmem:[%s4531_s4] sm:$0xff]  ;;  %v263_v31 = vld [vmem:[%s4531_s4 + $0x18] sm:$0xff] }
 0x167   :  { %v474_v35 = vadd.f32 %v472_v34, %v325_v8 }
 0x169   :  { %v476_v43 = vmax.f32 %v474_v35, 0.0 }
 0x16a   :  { %v320_v38 = vpop.permute.xlu1 %319 }
 0x16b   :  { %v3634_v39 = vadd.f32 %v320_v38, %v315_v4  ;;  %v423_v40 = vadd.f32 %v421_v5, %v320_v38  ;;  %v368_v41 = vpop.permute.xlu0 %367 }
 0x16c   :  { %v373_v57 = vadd.f32 %v368_v41, %v361_v42 }
 0x16d   :  { %v425_v20 = vmax.f32 %v423_v40, 0.0  ;;  %v329_v21 = vmax.f32 %v3634_v39, 0.0  ;;  %v257_v39 = vld [vmem:[%s4530_s3 + $0x8] sm:$0xff] }
 0x16e   :  { %v375_v27 = vmax.f32 %v347_v61, %v373_v57 }
 0x16f   :  { %v3052_v48 = vpack.i.bf16 %v476_v43, %v425_v20  ;;  %v3062_v49 = vpack.i.bf16 %v329_v21, %v330_v29  ;;  %v3067_v60 = vpack.i.bf16 %v426_v24, %v425_v20 }
 0x170   :  { %v377_v4 = vadd.f32 %v375_v27, %v320_v38 }
 0x171   :  { %3053 = vrot.lane.b32.xlu0 %v3052_v48, %s3118_s0  ;;  %3063 = vrot.lane.b32.xlu2 %v3062_v49, %s3118_s0 }
 0x172   :  { %v3650_v59 = vmax.f32 %v377_v4, 0.0 }
 0x173   :  { %v464_v1 = vpop.permute.xlu0 %463 }
 0x174   :  { %v469_v3 = vadd.f32 %v464_v1, %v457_v0  ;;  %v3102_v24 = vpack.i.bf16 %v3650_v59, %v3618_v23 }
 0x176   :  { %v471_v5 = vmax.f32 %v443_v2, %v469_v3 }
 0x178   :  { %v473_v50 = vadd.f32 %v471_v5, %v320_v38 }
 0x179   :  { %3068 = vrot.lane.b32.xlu0 %v3067_v60, %s3119_s2 }
 0x17a   :  { %v475_v6 = vmax.f32 %v473_v50, 0.0 }
 0x17c   :  { %v3057_v47 = vpack.i.bf16 %v475_v6, %v3650_v59  ;;  %v3072_v58 = vpack.i.bf16 %v476_v43, %v475_v6  ;;  %v3107_v7 = vpack.i.bf16 %v475_v6, %v476_v43 }
 0x17e   :  { %3058 = vrot.lane.b32.xlu1 %v3057_v47, %s3118_s0 }
 0x186   :  { %3073 = vrot.lane.b32.xlu1 %v3072_v58, %s3119_s2 }
 0x1bf   :  { %v3049_v8 = vpop.permute.xlu2 %3048 }
 0x1c0   :  { %v3050_v10 = vunpack.i.l.bf16 %v3049_v8  ;;  %v3051_v15 = vunpack.i.h.bf16 %v3049_v8 }
 0x1cb   :  { %v3064_v13 = vpop.permute.xlu2 %3063 }
 0x1cc   :  { %v3066_v51 = vunpack.i.h.bf16 %v3064_v13  ;;  %v3065_v14 = vunpack.i.l.bf16 %v3064_v13 }
 0x1e3   :  { %v3054_v9 = vpop.permute.xlu0 %3053 }
 0x1e4   :  { %v3055_v11 = vunpack.i.l.bf16 %v3054_v9  ;;  %v3056_v16 = vunpack.i.h.bf16 %v3054_v9 }
 0x1e6   :  { %v3077_v12 = vpack.i.bf16 %v3050_v10, %v3055_v11  ;;  %v3092_v22 = vpack.i.bf16 %v3055_v11, %v3050_v10 }
 0x1e8   :  { %3078 = vrot.lane.b32.xlu2 %v3077_v12, %s3119_s2  ;;  %v256_v12 = vld [vmem:[%s4530_s3] sm:$0xff]  ;;  %s3131_s2 = smov 116  }
 0x1eb   :  { %v3069_v25 = vpop.permute.xlu0 %3068 }
 0x1ec   :  { %v3071_v60 = vunpack.i.h.bf16 %v3069_v25  ;;  %v3070_v62 = vunpack.i.l.bf16 %v3069_v25 }
 0x1ee   :  { %v545_v58 = vsel %vm543_vm0, %v330_v29, %v3071_v60 }
 0x1f0   :  { %v3059_v52 = vpop.permute.xlu1 %3058  ;;  %3083 = vrot.lane.b32.xlu2 %v3064_v13, %s3120_s14 }
 0x1f1   :  { %v3061_v17 = vunpack.i.h.bf16 %v3059_v52  ;;  %v3060_v18 = vunpack.i.l.bf16 %v3059_v52 }
 0x1f3   :  { %v3087_v53 = vpack.i.bf16 %v3060_v18, %v3051_v15  ;;  %v3097_v19 = vpack.i.bf16 %v3061_v17, %v3056_v16 }
 0x1f5   :  { %3088 = vrot.lane.b32.xlu0 %v3087_v53, %s3120_s14  ;;  %3098 = vrot.lane.b32.xlu1 %v3097_v19, %s3121_s15 }
 0x1f8   :  { %3108 = vrot.lane.b32.xlu2 %v3107_v7, %s3121_s15  ;;  %v3074_v34 = vpop.permute.xlu1 %3073  ;;  %v262_v7 = vld [vmem:[%s4531_s4 + $0x10] sm:$0xff] }
 0x1f9   :  { %v3076_v57 = vunpack.i.h.bf16 %v3074_v34  ;;  %v3075_v61 = vunpack.i.l.bf16 %v3074_v34 }
 0x1fb   :  { %v547_v3 = vsel %vm543_vm0, %v3618_v23, %v3076_v57  ;;  %v546_v47 = vsel %vm543_vm0, %v3650_v59, %v3075_v61  ;;  %v544_v59 = vsel %vm543_vm0, %v329_v21, %v3070_v62  ;;  %v258_v21 = vld [vmem:[%s4530_s3 + $0x10] sm:$0xff] }
 0x1fd   :  { %3103 = vrot.lane.b32.xlu1 %v3102_v24, %s3120_s14  ;;  %3093 = vrot.lane.b32.xlu0 %v3092_v22, %s3121_s15  ;;  %s3132_s14 = smov 120   ;;  %s3133_s15 = smov 115  }
 0x200   :  { %633 = vperm.xlu2 %3045, %v261_v28  }
 0x205   :  { %628 = vperm.xlu1 %3046, %v260_v30   ;;  %638 = vperm.xlu0 %3112, %v262_v7  }
 0x20d   :  { %643 = vperm.xlu1 %3046, %v263_v31  }
 0x242   :  { %v3079_v33 = vpop.permute.xlu2 %3078 }
 0x243   :  { %v3081_v32 = vunpack.i.h.bf16 %v3079_v33  ;;  %v3080_v35 = vunpack.i.l.bf16 %v3079_v33 }
 0x245   :  { %v549_v43 = vsel %vm543_vm0, %v3065_v14, %v3081_v32  ;;  %v548_v20 = vsel %vm543_vm0, %v3066_v51, %v3080_v35  ;;  %v259_v51 = vld [vmem:[%s4530_s3 + $0x18] sm:$0xff]  ;;  %s3123_s3 = smov 125  }
 0x24a   :  { %v3084_v36 = vpop.permute.xlu2 %3083 }
 0x24b   :  { %v3085_v48 = vunpack.i.l.bf16 %v3084_v36  ;;  %v3086_v63 = vunpack.i.h.bf16 %v3084_v36 }
 0x24d   :  { %v554_v50 = vsel %vm550_vm2, %v547_v3, %v3085_v48  ;;  %v553_v23 = vsel %vm550_vm2, %v546_v47, %v3086_v63 }
 0x252   :  { %v3109_v4 = vpop.permute.xlu2 %3108 }
 0x253   :  { %v3110_v9 = vunpack.i.l.bf16 %v3109_v4  ;;  %v3111_v29 = vunpack.i.h.bf16 %v3109_v4 }
 0x25a   :  { %v634_v33 = vpop.permute.xlu2 %633 }
 0x267   :  { %v3089_v26 = vpop.permute.xlu0 %3088  ;;  %v3099_v37 = vpop.permute.xlu1 %3098 }
 0x268   :  { %v3091_v38 = vunpack.i.h.bf16 %v3089_v26  ;;  %v3090_v40 = vunpack.i.l.bf16 %v3089_v26  ;;  %v3100_v41 = vunpack.i.l.bf16 %v3099_v37  ;;  %v3101_v42 = vunpack.i.h.bf16 %v3099_v37 }
 0x26a   :  { %v556_v44 = vsel %vm550_vm2, %v549_v43, %v3090_v40  ;;  %v555_v55 = vsel %vm550_vm2, %v548_v20, %v3091_v38 }
 0x26b   :  { %v563_v46 = vsel %vm557_vm1, %v556_v44, %v3100_v41  ;;  %v562_v49 = vsel %vm557_vm1, %v555_v55, %v3101_v42 }
 0x26c   :  { %587 = vmatpush.msra.mxu0 %v563_v46 }
 0x26e   :  { %588 = vmatpush.msra.mxu0 %v562_v49 }
 0x26f   :  { %v3104_v56 = vpop.permute.xlu1 %3103  ;;  %v3094_v0 = vpop.permute.xlu0 %3093 }
 0x270   :  { %v3105_v27 = vunpack.i.l.bf16 %v3104_v56  ;;  %v3096_v1 = vunpack.i.h.bf16 %v3094_v0  ;;  %v3095_v2 = vunpack.i.l.bf16 %v3094_v0  ;;  %v3106_v5 = vunpack.i.h.bf16 %v3104_v56 }
 0x272   :  { %v561_v6 = vsel %vm557_vm1, %v554_v50, %v3095_v2  ;;  %v552_v8 = vsel %vm550_vm2, %v545_v58, %v3105_v27  ;;  %v560_v10 = vsel %vm557_vm1, %v553_v23, %v3096_v1  ;;  %v551_v54 = vsel %vm550_vm2, %v544_v59, %v3106_v5 }
 0x273   :  { %589 = vmatpush.msra.mxu0 %v561_v6  ;;  %v559_v11 = vsel %vm557_vm1, %v552_v8, %v3110_v9  ;;  %v558_v13 = vsel %vm557_vm1, %v551_v54, %v3111_v29 }
 0x275   :  { %590 = vmatpush.msra.mxu0 %v560_v10 }
 0x277   :  { %591 = vmatpush.msra.mxu0 %v559_v11  ;;  %v629_v17 = vpop.permute.xlu1 %628  ;;  %v639_v18 = vpop.permute.xlu0 %638 }
 0x279   :  { %592 = vmatpush.msra.mxu0 %v558_v13 }
 0x27a   :  { %2448 = vmatmul.msk.f32.vlgmr.msra.gmra.mxu0 %vm564_vm3, %v256_v12 }
 0x27f   :  { %v644_v53 = vpop.permute.xlu1 %643 }
 0x282   :  { %2449 = vmatmul.msk.f32.gmra.mxu0 %vm564_vm3, %v257_v39 }
 0x28a   :  { %2450 = vmatmul.msk.f32.gmra.mxu0 %vm564_vm3, %v258_v21 }
 0x292   :  { %2451 = vmatmul.msk.f32.gmra.mxu0 %vm564_vm3, %v259_v51 }
 0x2f7   :  { %v594_v14 = vpop.f32.mrf.mxu0 }
 0x2f8   :  { %610 = vrot.lane.b32.xlu0 %v594_v14, %s3122_s5 }
 0x2ff   :  { %v597_v52 = vpop.f32.mrf.mxu0 }
 0x300   :  { %612 = vrot.lane.b32.xlu1 %v597_v52, %s3122_s5 }
 0x307   :  { %v600_v15 = vpop.f32.mrf.mxu0 }
 0x308   :  { %614 = vrot.lane.b32.xlu2 %v600_v15, %s3122_s5 }
 0x30f   :  { %v603_v16 = vpop.f32.mrf.mxu0 }
 0x310   :  { %616 = vrot.lane.b32.xlu0 %v603_v16, %s3122_s5 }
 0x362   :  { %v615_v40 = vpop.permute.xlu2 %614 }
 0x363   :  { %v624_v42 = vmax.f32 %v600_v15, %v615_v40 }
 0x365   :  { %v648_v20 = vadd.f32 %v639_v18, %v624_v42 }
 0x367   :  { %v652_v55 = vmax.f32 %v648_v20, 0.0 }
 0x369   :  { %v656_v57 = vpack.c.bf16 %v652_v55, %v652_v55 }
 0x36a   :  { %v611_v19 = vpop.permute.xlu0 %610 }
 0x36b   :  { %v622_v22 = vmax.f32 %v594_v14, %v611_v19  ;;  %v664_v49 = vunpack.c.l.b16 %v656_v57 }
 0x36d   :  { %v646_v24 = vadd.f32 %v629_v17, %v622_v22 }
 0x36f   :  { %v650_v30 = vmax.f32 %v646_v24, 0.0 }
 0x371   :  { %v654_v34 = vpack.c.bf16 %v650_v30, %v650_v30 }
 0x372   :  { %v613_v28 = vpop.permute.xlu1 %612 }
 0x373   :  { %v623_v31 = vmax.f32 %v597_v52, %v613_v28  ;;  %v662_v36 = vunpack.c.l.b16 %v654_v34 }
 0x375   :  { %v647_v25 = vadd.f32 %v634_v33, %v623_v31 }
 0x377   :  { %v651_v32 = vmax.f32 %v647_v25, 0.0 }
 0x379   :  { %v655_v35 = vpack.c.bf16 %v651_v32, %v651_v32 }
 0x37b   :  { %v663_v26 = vunpack.c.l.b16 %v655_v35 }
 0x37d   :  { %v3704_v37 = vpack.c.b16 %v663_v26, %v662_v36 }
 0x37f   :  { %676 = vrot.lane.b32.xlu1 %v3704_v37, %s3123_s3  ;;  %668 = vrot.lane.b32.xlu2 %v3704_v37, %s3118_s0 }
 0x380   :  { %680 = vrot.lane.b32.xlu0 %v3704_v37, %s3124_s8 }
 0x382   :  { %v617_v38 = vpop.permute.xlu0 %616 }
 0x383   :  { %v625_v41 = vmax.f32 %v603_v16, %v617_v38 }
 0x385   :  { %v649_v43 = vadd.f32 %v644_v53, %v625_v41 }
 0x387   :  { %688 = vrot.lane.b32.xlu1 %v3704_v37, %s3125_s9  ;;  %672 = vrot.lane.b32.xlu2 %v3704_v37, %s3126_s1  ;;  %v653_v44 = vmax.f32 %v649_v43, 0.0 }
 0x388   :  { %692 = vrot.lane.b32.xlu0 %v3704_v37, %s3127_s10 }
 0x389   :  { %v657_v46 = vpack.c.bf16 %v653_v44, %v653_v44 }
 0x38b   :  { %v665_v48 = vunpack.c.l.b16 %v657_v46 }
 0x38d   :  { %v3734_v60 = vpack.c.b16 %v665_v48, %v664_v49 }
 0x38f   :  { %700 = vrot.lane.b32.xlu1 %v3704_v37, %s3128_s11  ;;  %684 = vrot.lane.b32.xlu2 %v3704_v37, %s3129_s12 }
 0x390   :  { %704 = vrot.lane.b32.xlu0 %v3704_v37, %s3130_s13 }
 0x397   :  { %712 = vrot.lane.b32.xlu1 %v3704_v37, %s3131_s2  ;;  %696 = vrot.lane.b32.xlu2 %v3704_v37, %s3132_s14 }
 0x398   :  { %716 = vrot.lane.b32.xlu0 %v3704_v37, %s3133_s15 }
 0x39f   :  { %724 = vrot.lane.b32.xlu1 %v3704_v37, %s3134_s16  ;;  %708 = vrot.lane.b32.xlu2 %v3704_v37, %s3135_s17 }
 0x3a0   :  { %728 = vrot.lane.b32.xlu0 %v3704_v37, %s3136_s18 }
 0x3a7   :  { %720 = vrot.lane.b32.xlu2 %v3704_v37, %s3137_s19  ;;  %670 = vrot.lane.b32.xlu1 %v3734_v60, %s3118_s0 }
 0x3a8   :  { %764 = vrot.lane.b32.xlu0 %v3704_v37, %s3138_s20 }
 0x3af   :  { %678 = vrot.lane.b32.xlu2 %v3734_v60, %s3123_s3  ;;  %682 = vrot.lane.b32.xlu1 %v3734_v60, %s3124_s8 }
 0x3b0   :  { %674 = vrot.lane.b32.xlu0 %v3734_v60, %s3126_s1 }
 0x3b7   :  { %690 = vrot.lane.b32.xlu2 %v3734_v60, %s3125_s9  ;;  %694 = vrot.lane.b32.xlu1 %v3734_v60, %s3127_s10 }
 0x3b8   :  { %686 = vrot.lane.b32.xlu0 %v3734_v60, %s3129_s12 }
 0x3bf   :  { %702 = vrot.lane.b32.xlu2 %v3734_v60, %s3128_s11  ;;  %706 = vrot.lane.b32.xlu1 %v3734_v60, %s3130_s13 }
 0x3c0   :  { %698 = vrot.lane.b32.xlu0 %v3734_v60, %s3132_s14 }
 0x3c7   :  { %714 = vrot.lane.b32.xlu2 %v3734_v60, %s3131_s2  ;;  %718 = vrot.lane.b32.xlu1 %v3734_v60, %s3133_s15 }
 0x3c8   :  { %710 = vrot.lane.b32.xlu0 %v3734_v60, %s3135_s17 }
 0x3cf   :  { %726 = vrot.lane.b32.xlu2 %v3734_v60, %s3134_s16  ;;  %730 = vrot.lane.b32.xlu1 %v3734_v60, %s3136_s18 }
 0x3d0   :  { %722 = vrot.lane.b32.xlu0 %v3734_v60, %s3137_s19 }
 0x3d7   :  { %766 = vrot.lane.b32.xlu1 %v3734_v60, %s3138_s20 }
 0x3d9   :  { %v3770_v61 = vpop.permute.xlu2 %668 }
 0x3da   :  { %732 = vrot.lane.b32.xlu2 %v3770_v61, %s3136_s18 }
 0x3e1   :  { %v3774_v62 = vpop.permute.xlu2 %672 }
 0x3e2   :  { %736 = vrot.lane.b32.xlu1 %v3774_v62, %s3136_s18 }
 0x3e9   :  { %v3778_v63 = vpop.permute.xlu2 %684 }
 0x3ea   :  { %748 = vrot.lane.b32.xlu1 %v3778_v63, %s3136_s18 }
 0x3f1   :  { %v3782_v56 = vpop.permute.xlu1 %676  ;;  %v3784_v0 = vpop.permute.xlu2 %696 }
 0x3f2   :  { %v3786_v27 = vpop.permute.xlu0 %680  ;;  %740 = vrot.lane.b32.xlu0 %v3782_v56, %s3136_s18  ;;  %760 = vrot.lane.b32.xlu1 %v3784_v0, %s3136_s18 }
 0x3f3   :  { %744 = vrot.lane.b32.xlu2 %v3786_v27, %s3136_s18 }
 0x3f9   :  { %v3794_v1 = vpop.permute.xlu1 %688  ;;  %v3804_v3 = vpop.permute.xlu2 %708 }
 0x3fa   :  { %v3796_v2 = vpop.permute.xlu0 %692  ;;  %752 = vrot.lane.b32.xlu0 %v3794_v1, %s3136_s18  ;;  %772 = vrot.lane.b32.xlu1 %v3774_v62, %s3138_s20 }
 0x3fb   :  { %756 = vrot.lane.b32.xlu2 %v3796_v2, %s3136_s18 }
 0x401   :  { %v3806_v4 = vpop.permute.xlu1 %700  ;;  %v3824_v47 = vpop.permute.xlu2 %720 }
 0x402   :  { %v3808_v5 = vpop.permute.xlu0 %704  ;;  %776 = vrot.lane.b32.xlu0 %v3782_v56, %s3138_s20  ;;  %784 = vrot.lane.b32.xlu1 %v3778_v63, %s3138_s20 }
 0x403   :  { %768 = vrot.lane.b32.xlu2 %v3770_v61, %s3138_s20 }
 0x409   :  { %v3816_v50 = vpop.permute.xlu1 %712  ;;  %v3838_v23 = vpop.permute.xlu2 %678 }
 0x40a   :  { %v3818_v6 = vpop.permute.xlu0 %716  ;;  %788 = vrot.lane.b32.xlu0 %v3794_v1, %s3138_s20  ;;  %796 = vrot.lane.b32.xlu1 %v3784_v0, %s3138_s20 }
 0x40b   :  { %780 = vrot.lane.b32.xlu2 %v3786_v27, %s3138_s20 }
 0x411   :  { %v3828_v58 = vpop.permute.xlu1 %724  ;;  %v3852_v59 = vpop.permute.xlu2 %690 }
 0x412   :  { %v3830_v7 = vpop.permute.xlu0 %728  ;;  %800 = vrot.lane.b32.xlu0 %v3806_v4, %s3138_s20  ;;  %808 = vrot.lane.b32.xlu1 %v3804_v3, %s3138_s20 }
 0x413   :  { %792 = vrot.lane.b32.xlu2 %v3796_v2, %s3138_s20 }
 0x419   :  { %v3840_v8 = vpop.permute.xlu1 %670  ;;  %v3862_v29 = vpop.permute.xlu2 %702 }
 0x41a   :  { %v765_v9 = vpop.permute.xlu0 %764  ;;  %812 = vrot.lane.b32.xlu0 %v3816_v50, %s3138_s20  ;;  %820 = vrot.lane.b32.xlu1 %v3824_v47, %s3138_s20 }
 0x41b   :  { %v3848_v10 = vsel %vm864_vm4, %v3704_v37, %v765_v9  ;;  %804 = vrot.lane.b32.xlu2 %v3808_v5, %s3138_s20 }
 0x421   :  { %v3854_v54 = vpop.permute.xlu1 %682  ;;  %v3880_v39 = vpop.permute.xlu2 %714 }
 0x422   :  { %824 = vrot.lane.b32.xlu0 %v3828_v58, %s3138_s20  ;;  %742 = vrot.lane.b32.xlu1 %v3838_v23, %s3136_s18  ;;  %v3872_v12 = vpop.permute.xlu0 %674 }
 0x423   :  { %816 = vrot.lane.b32.xlu2 %v3818_v6, %s3138_s20 }
 0x429   :  { %v3864_v11 = vpop.permute.xlu1 %694  ;;  %v3894_v14 = vpop.permute.xlu2 %726 }
 0x42a   :  { %754 = vrot.lane.b32.xlu1 %v3852_v59, %s3136_s18  ;;  %734 = vrot.lane.b32.xlu0 %v3840_v8, %s3136_s18  ;;  %v3884_v21 = vpop.permute.xlu0 %686 }
 0x42b   :  { %828 = vrot.lane.b32.xlu2 %v3830_v7, %s3138_s20 }
 0x431   :  { %v3874_v13 = vpop.permute.xlu1 %706 }
 0x432   :  { %778 = vrot.lane.b32.xlu1 %v3838_v23, %s3138_s20  ;;  %746 = vrot.lane.b32.xlu0 %v3854_v54, %s3136_s18  ;;  %v3898_v15 = vpop.permute.xlu0 %698 }
 0x433   :  { %738 = vrot.lane.b32.xlu2 %v3872_v12, %s3136_s18 }
 0x434   :  { %v3906_v16 = vpop.permute.xlu2 %732 }
 0x439   :  { %v3886_v51 = vpop.permute.xlu1 %718 }
 0x43a   :  { %790 = vrot.lane.b32.xlu1 %v3852_v59, %s3138_s20  ;;  %758 = vrot.lane.b32.xlu0 %v3864_v11, %s3136_s18  ;;  %v3920_v19 = vpop.permute.xlu0 %710 }
 0x43b   :  { %750 = vrot.lane.b32.xlu2 %v3884_v21, %s3136_s18 }
 0x441   :  { %v3896_v52 = vpop.permute.xlu1 %730 }
 0x442   :  { %802 = vrot.lane.b32.xlu1 %v3862_v29, %s3138_s20  ;;  %770 = vrot.lane.b32.xlu0 %v3840_v8, %s3138_s20  ;;  %v3938_v28 = vpop.permute.xlu0 %722 }
 0x443   :  { %762 = vrot.lane.b32.xlu2 %v3898_v15, %s3136_s18 }
 0x449   :  { %v767_v17 = vpop.permute.xlu1 %766 }
 0x44a   :  { %v3910_v18 = vsel %vm864_vm4, %v3734_v60, %v767_v17  ;;  %814 = vrot.lane.b32.xlu1 %v3880_v39, %s3138_s20  ;;  %782 = vrot.lane.b32.xlu0 %v3854_v54, %s3138_s20 }
 0x44b   :  { %774 = vrot.lane.b32.xlu2 %v3872_v12, %s3138_s20 }
 0x44d   :  { %v3918_v53 = vpop.permute.xlu2 %744 }
 0x452   :  { %826 = vrot.lane.b32.xlu1 %v3894_v14, %s3138_s20  ;;  %794 = vrot.lane.b32.xlu0 %v3864_v11, %s3138_s20 }
 0x453   :  { %786 = vrot.lane.b32.xlu2 %v3884_v21, %s3138_s20 }
 0x454   :  { %v3928_v22 = vpop.permute.xlu1 %736 }
 0x455   :  { %v3930_v24 = vpop.permute.xlu2 %756 }
 0x45a   :  { %832 = vrot.lane.b32.xlu1 %v3906_v16, %s3138_s20  ;;  %806 = vrot.lane.b32.xlu0 %v3874_v13, %s3138_s20 }
 0x45b   :  { %798 = vrot.lane.b32.xlu2 %v3898_v15, %s3138_s20 }
 0x45c   :  { %v3940_v30 = vpop.permute.xlu1 %748 }
 0x45d   :  { %v769_v31 = vpop.permute.xlu2 %768 }
 0x45e   :  { %v3944_v33 = vsel %vm864_vm4, %v3770_v61, %v769_v31 }
 0x462   :  { %818 = vrot.lane.b32.xlu0 %v3886_v51, %s3138_s20  ;;  %844 = vrot.lane.b32.xlu1 %v3918_v53, %s3138_s20 }
 0x463   :  { %810 = vrot.lane.b32.xlu2 %v3920_v19, %s3138_s20 }
 0x464   :  { %v3952_v25 = vpop.permute.xlu1 %760  ;;  %v3954_v34 = vpop.permute.xlu0 %740 }
 0x465   :  { %v781_v32 = vpop.permute.xlu2 %780 }
 0x466   :  { %v3958_v35 = vsel %vm864_vm4, %v3786_v27, %v781_v32 }
 0x46a   :  { %830 = vrot.lane.b32.xlu0 %v3896_v52, %s3138_s20  ;;  %856 = vrot.lane.b32.xlu1 %v3930_v24, %s3138_s20 }
 0x46b   :  { %822 = vrot.lane.b32.xlu2 %v3938_v28, %s3138_s20 }
 0x46c   :  { %v773_v36 = vpop.permute.xlu1 %772  ;;  %v3966_v26 = vpop.permute.xlu0 %752 }
 0x46d   :  { %v3970_v37 = vsel %vm864_vm4, %v3774_v62, %v773_v36  ;;  %v793_v38 = vpop.permute.xlu2 %792 }
 0x46e   :  { %v3974_v40 = vsel %vm864_vm4, %v3796_v2, %v793_v38 }
 0x472   :  { %836 = vrot.lane.b32.xlu0 %v3928_v22, %s3138_s20 }
 0x473   :  { %840 = vrot.lane.b32.xlu2 %v3954_v34, %s3138_s20 }
 0x474   :  { %v785_v41 = vpop.permute.xlu1 %784  ;;  %v777_v42 = vpop.permute.xlu0 %776 }
 0x475   :  { %v3982_v43 = vsel %vm864_vm4, %v3778_v63, %v785_v41  ;;  %v805_v20 = vpop.permute.xlu2 %804  ;;  %v3986_v44 = vsel %vm864_vm4, %v3782_v56, %v777_v42 }
 0x476   :  { %v3990_v55 = vsel %vm864_vm4, %v3808_v5, %v805_v20 }
 0x47a   :  { %848 = vrot.lane.b32.xlu0 %v3940_v30, %s3138_s20 }
 0x47b   :  { %852 = vrot.lane.b32.xlu2 %v3966_v26, %s3138_s20 }
 0x47c   :  { %v797_v46 = vpop.permute.xlu1 %796  ;;  %v789_v57 = vpop.permute.xlu0 %788 }
 0x47d   :  { %v3998_v48 = vsel %vm864_vm4, %v3784_v0, %v797_v46  ;;  %v817_v49 = vpop.permute.xlu2 %816  ;;  %v4002_v60 = vsel %vm864_vm4, %v3794_v1, %v789_v57 }
 0x47e   :  { %v4006_v61 = vsel %vm864_vm4, %v3818_v6, %v817_v49 }
 0x484   :  { %v809_v62 = vpop.permute.xlu1 %808  ;;  %v801_v63 = vpop.permute.xlu0 %800 }
 0x485   :  { %v4010_v56 = vsel %vm864_vm4, %v3804_v3, %v809_v62  ;;  %v829_v27 = vpop.permute.xlu2 %828  ;;  %v4014_v0 = vsel %vm864_vm4, %v3806_v4, %v801_v63 }
 0x486   :  { %v4018_v2 = vsel %vm864_vm4, %v3830_v7, %v829_v27 }
 0x48c   :  { %v821_v1 = vpop.permute.xlu1 %820  ;;  %v813_v5 = vpop.permute.xlu0 %812 }
 0x48d   :  { %v4022_v6 = vsel %vm864_vm4, %v3824_v47, %v821_v1  ;;  %v4024_v9 = vpop.permute.xlu2 %738  ;;  %v4028_v3 = vsel %vm864_vm4, %v3816_v50, %v813_v5 }
 0x48e   :  { %838 = vrot.lane.b32.xlu1 %v4024_v9, %s3138_s20 }
 0x494   :  { %v4032_v4 = vpop.permute.xlu1 %742  ;;  %v825_v17 = vpop.permute.xlu0 %824 }
 0x495   :  { %v4034_v7 = vpop.permute.xlu2 %750  ;;  %v4038_v31 = vsel %vm864_vm4, %v3828_v58, %v825_v17  ;;  %842 = vrot.lane.b32.xlu0 %v4032_v4, %s3138_s20 }
 0x496   :  { %850 = vrot.lane.b32.xlu1 %v4034_v7, %s3138_s20 }
 0x49c   :  { %v4044_v50 = vpop.permute.xlu1 %754  ;;  %v735_v47 = vpop.permute.xlu0 %734 }
 0x49d   :  { %v4046_v32 = vpop.permute.xlu2 %762  ;;  %854 = vrot.lane.b32.xlu0 %v4044_v50, %s3138_s20  ;;  %834 = vrot.lane.b32.xlu2 %v735_v47, %s3138_s20 }
 0x49e   :  { %862 = vrot.lane.b32.xlu1 %v4046_v32, %s3138_s20 }
 0x4a4   :  { %v779_v58 = vpop.permute.xlu1 %778  ;;  %v747_v36 = vpop.permute.xlu0 %746 }
 0x4a5   :  { %v4055_v38 = vsel %vm864_vm4, %v3838_v23, %v779_v58  ;;  %v775_v41 = vpop.permute.xlu2 %774  ;;  %860 = vrot.lane.b32.xlu0 %v3952_v25, %s3138_s20  ;;  %846 = vrot.lane.b32.xlu2 %v747_v36, %s3138_s20 }
 0x4a6   :  { %v4062_v42 = vsel %vm864_vm4, %v3872_v12, %v775_v41  ;;  %1764 = vmatpush.bf16.msrb.mxu0 %v4055_v38  ;;  %2994 = vmatpush.bf16.msra.mxu1 %v4055_v38 }
 0x4ac   :  { %v791_v20 = vpop.permute.xlu1 %790  ;;  %v759_v46 = vpop.permute.xlu0 %758 }
 0x4ad   :  { %v4066_v57 = vsel %vm864_vm4, %v3852_v59, %v791_v20  ;;  %v787_v49 = vpop.permute.xlu2 %786  ;;  %858 = vrot.lane.b32.xlu2 %v759_v46, %s3138_s20 }
 0x4ae   :  { %v4071_v23 = vsel %vm864_vm4, %v3884_v21, %v787_v49 }
 0x4b4   :  { %v803_v62 = vpop.permute.xlu1 %802  ;;  %v771_v63 = vpop.permute.xlu0 %770 }
 0x4b5   :  { %v4075_v27 = vsel %vm864_vm4, %v3862_v29, %v803_v62  ;;  %v799_v12 = vpop.permute.xlu2 %798  ;;  %v4079_v1 = vsel %vm864_vm4, %v3840_v8, %v771_v63 }
 0x4b6   :  { %v4083_v59 = vsel %vm864_vm4, %v3898_v15, %v799_v12 }
 0x4bc   :  { %v815_v5 = vpop.permute.xlu1 %814  ;;  %v783_v17 = vpop.permute.xlu0 %782 }
 0x4bd   :  { %v4087_v21 = vsel %vm864_vm4, %v3880_v39, %v815_v5  ;;  %v811_v58 = vpop.permute.xlu2 %810  ;;  %v4091_v29 = vsel %vm864_vm4, %v3854_v54, %v783_v17 }
 0x4be   :  { %v4095_v41 = vsel %vm864_vm4, %v3920_v19, %v811_v58 }
 0x4c4   :  { %v827_v8 = vpop.permute.xlu1 %826  ;;  %v795_v20 = vpop.permute.xlu0 %794 }
 0x4c5   :  { %v4099_v15 = vsel %vm864_vm4, %v3894_v14, %v827_v8  ;;  %v823_v49 = vpop.permute.xlu2 %822  ;;  %v4103_v39 = vsel %vm864_vm4, %v3864_v11, %v795_v20 }
 0x4c6   :  { %v4107_v62 = vsel %vm864_vm4, %v3938_v28, %v823_v49 }
 0x4cc   :  { %v833_v54 = vpop.permute.xlu1 %832  ;;  %v807_v63 = vpop.permute.xlu0 %806 }
 0x4cd   :  { %v4111_v19 = vsel %vm864_vm4, %v3906_v16, %v833_v54  ;;  %v841_v12 = vpop.permute.xlu2 %840  ;;  %v4115_v14 = vsel %vm864_vm4, %v3874_v13, %v807_v63 }
 0x4ce   :  { %v4119_v5 = vsel %vm864_vm4, %v3954_v34, %v841_v12 }
 0x4d4   :  { %v845_v11 = vpop.permute.xlu1 %844  ;;  %v819_v17 = vpop.permute.xlu0 %818 }
 0x4d5   :  { %v4123_v28 = vsel %vm864_vm4, %v3918_v53, %v845_v11  ;;  %v853_v58 = vpop.permute.xlu2 %852  ;;  %v4127_v16 = vsel %vm864_vm4, %v3886_v51, %v819_v17 }
 0x4d6   :  { %v4131_v8 = vsel %vm864_vm4, %v3966_v26, %v853_v58 }
 0x4dc   :  { %v857_v13 = vpop.permute.xlu1 %856  ;;  %v831_v20 = vpop.permute.xlu0 %830 }
 0x4dd   :  { %v4135_v34 = vsel %vm864_vm4, %v3930_v24, %v857_v13  ;;  %v4139_v49 = vsel %vm864_vm4, %v3896_v52, %v831_v20 }
 0x4e4   :  { %v837_v53 = vpop.permute.xlu0 %836 }
 0x4e5   :  { %v4143_v54 = vsel %vm864_vm4, %v3928_v22, %v837_v53 }
 0x4ec   :  { %v849_v51 = vpop.permute.xlu0 %848 }
 0x4ed   :  { %v4147_v26 = vsel %vm864_vm4, %v3940_v30, %v849_v51 }
 0x4f7   :  { %v835_v63 = vpop.permute.xlu2 %834 }
 0x4f8   :  { %v4150_v12 = vsel %vm864_vm4, %v735_v47, %v835_v63 }
 0x4ff   :  { %v847_v24 = vpop.permute.xlu2 %846 }
 0x500   :  { %v839_v11 = vpop.permute.xlu1 %838  ;;  %v4153_v17 = vsel %vm864_vm4, %v747_v36, %v847_v24 }
 0x501   :  { %v4157_v52 = vsel %vm864_vm4, %v4024_v9, %v839_v11 }
 0x507   :  { %v859_v22 = vpop.permute.xlu2 %858  ;;  %v843_v58 = vpop.permute.xlu0 %842 }
 0x508   :  { %v851_v13 = vpop.permute.xlu1 %850  ;;  %v1055_v20 = vsel %vm864_vm4, %v759_v46, %v859_v22  ;;  %v1023_v30 = vsel %vm864_vm4, %v4032_v4, %v843_v58 }
 0x509   :  { %v4164_v47 = vsel %vm864_vm4, %v4034_v7, %v851_v13 }
 0x50f   :  { %v855_v53 = vpop.permute.xlu0 %854 }
 0x510   :  { %v863_v51 = vpop.permute.xlu1 %862  ;;  %v1047_v36 = vsel %vm864_vm4, %v4044_v50, %v855_v53 }
 0x511   :  { %v4170_v9 = vsel %vm864_vm4, %v4046_v32, %v863_v51 }
 0x517   :  { %v861_v63 = vpop.permute.xlu0 %860 }
 0x518   :  { %v4174_v46 = vsel %vm864_vm4, %v3952_v25, %v861_v63 }
 0x519   :  { %3113 = dma.done.wait [#allocation3], 13440 }
 0x51a   :  { %3114 = vsyncadd [#allocation3], 4294953856  ;;  %3002 = vmatpush.bf16.msra.mxu2 %v4103_v39  ;;  %3010 = vmatpush.bf16.msra.mxu3 %v4095_v41  ;;  %v2454_v25 = vld [vmem:[#allocation2] sm:$0xf]  ;;  %v2913_v4 = vld [vmem:[#allocation2 + $0xc0] sm:$0xf0] }
 0x51b   :  { %1765 = vmatpush.bf16.msrb.mxu0 %v3986_v44  ;;  %2995 = vmatpush.bf16.msra.mxu1 %v3986_v44  ;;  %v2538_v44 = vld [vmem:[#allocation2 + $0xa8] sm:$0xf]  ;;  %v2910_v7 = vld [vmem:[#allocation2 + $0xac] sm:$0xf]  ;;  %v2546_v32 = vld [vmem:[#allocation2 + $0xb0] sm:$0xf] }
 0x51c   :  { %v2540_v50 = vld [vmem:[#allocation2 + $0xc4] sm:$0xf0]  ;;  %v2566_v11 = vld [vmem:[#allocation2 + $0xe0] sm:$0xf]  ;;  %v2920_v22 = vld [vmem:[#allocation2 + $0xf8] sm:$0xf0] }
 0x51d   :  { %v2568_v58 = vld [vmem:[#allocation2 + $0xfc] sm:$0xf0]  ;;  %v2574_v13 = vld [vmem:[#allocation2 + $0xe8] sm:$0xf]  ;;  %v2928_v53 = vld [vmem:[#allocation2 + $0x138] sm:$0xf0] }
 0x51e   :  { %3003 = vmatpush.bf16.msra.mxu2 %v3974_v40  ;;  %3011 = vmatpush.bf16.msra.mxu3 %v4010_v56  ;;  %v2624_v51 = vld [vmem:[#allocation2 + $0x16c] sm:$0xf0]  ;;  %vm1760_vm5 = vcmask 1043456   ;;  %vm1714_vm6 = vcmask 326656   ;;  %vm2388_vm7 = vcmask 982016   ;;  %vm2431_vm8 = vcmask 11264  }
 0x51f   :  { %1766 = vmatpush.bf16.msrb.mxu0 %v4062_v42  ;;  %2996 = vmatpush.bf16.msra.mxu1 %v4062_v42  ;;  %v2539_v42 = vor.u32 %v2913_v4, %v2538_v44  ;;  %v2896_v44 = vld [vmem:[#allocation2 + $0x3c] sm:$0xf]  ;;  %v2484_v4 = vld [vmem:[#allocation2 + $0x54] sm:$0xf0] }
 0x522   :  { %3004 = vmatpush.bf16.msra.mxu2 %v4066_v57  ;;  %3012 = vmatpush.bf16.msra.mxu3 %v4115_v14 }
 0x523   :  { %1767 = vmatpush.bf16.msrb.mxu0 %v3970_v37  ;;  %2997 = vmatpush.bf16.msra.mxu1 %v3970_v37  ;;  %v2892_v37 = vld [vmem:[#allocation2 + $0x18] sm:$0xf0] }
 0x524   :  { %v2455_v38 = vor.u32 %v2892_v37, %v2454_v25 }
 0x526   :  { %3005 = vmatpush.bf16.msra.mxu2 %v4002_v60  ;;  %3013 = vmatpush.bf16.msra.mxu3 %v3990_v55 }
 0x527   :  { %1768 = vmatpush.bf16.msrb.mxu0 %v4079_v1  ;;  %2998 = vmatpush.bf16.msra.mxu1 %v4079_v1  ;;  %v2543_v1 = vor.u32 %v2910_v7, %v2540_v50  ;;  %v2938_v7 = vld [vmem:[#allocation2 + $0x18c] sm:$0xf]  ;;  %v2658_v50 = vld [vmem:[#allocation2 + $0x190] sm:$0xf] }
 0x52a   :  { %3006 = vmatpush.bf16.msra.mxu2 %v4071_v23  ;;  %3014 = vmatpush.bf16.msra.mxu3 %v4075_v27 }
 0x52b   :  { %1769 = vmatpush.bf16.msrb.mxu0 %v3944_v33  ;;  %2999 = vmatpush.bf16.msra.mxu1 %v3944_v33  ;;  %v2914_v33 = vld [vmem:[#allocation2 + $0xc8] sm:$0xf0] }
 0x52c   :  { %v2547_v24 = vor.u32 %v2914_v33, %v2546_v32  ;;  %v2942_v32 = vld [vmem:[#allocation2 + $0x1a8] sm:$0xf0]  ;;  %v2487_v33 = vor.u32 %v2896_v44, %v2484_v4 }
 0x52e   :  { %3007 = vmatpush.bf16.msra.mxu2 %v3982_v43  ;;  %3015 = vmatpush.bf16.msra.mxu3 %v4014_v0 }
 0x52f   :  { %1770 = vmatpush.bf16.msrb.mxu0 %v3910_v18  ;;  %3000 = vmatpush.bf16.msra.mxu1 %v3910_v18  ;;  %v2899_v18 = vld [vmem:[#allocation2 + $0x50] sm:$0xf0] }
 0x532   :  { %3008 = vmatpush.bf16.msra.mxu2 %v4091_v29  ;;  %3016 = vmatpush.bf16.msra.mxu3 %v4083_v59 }
 0x533   :  { %1771 = vmatpush.bf16.msrb.mxu0 %v3848_v10  ;;  %3001 = vmatpush.bf16.msra.mxu1 %v3848_v10  ;;  %v2482_v10 = vld [vmem:[#allocation2 + $0x38] sm:$0xf] }
 0x536   :  { %3009 = vmatpush.bf16.msra.mxu2 %v3958_v35  ;;  %3017 = vmatpush.bf16.msra.mxu3 %v3998_v48 }
 0x537   :  { %1848 = vmatpush.bf16.msra.mxu0 %v4103_v39  ;;  %1787 = vmatmul.bf16.vlgmr.msra.gmra.mxu1 %v2539_v42  ;;  %v2917_v39 = vld [vmem:[#allocation2 + $0xe4] sm:$0xf]  ;;  %v2659_v42 = vor.u32 %v2942_v32, %v2658_v50  ;;  %v2976_v50 = vld [vmem:[#allocation2 + $0x2b8] sm:$0xf0] }
 0x538   :  { %1772 = vmatmul.bf16.vlgmr.msrb.gmra.mxu0 %v2455_v38  ;;  %2100 = vmatpush.bf16.msrb.mxu1 %v1023_v30  ;;  %v2973_v32 = vld [vmem:[#allocation2 + $0x2a4] sm:$0xf] }
 0x539   :  { %1871 = vmatmul.bf16.vlgmr.msra.gmra.mxu2 %v2543_v1  ;;  %1955 = vmatmul.bf16.vlgmr.msra.gmra.mxu3 %v2547_v24  ;;  %v2512_v1 = vld [vmem:[#allocation2 + $0x8c] sm:$0xf0]  ;;  %v2945_v24 = vld [vmem:[#allocation2 + $0x1c4] sm:$0xf] }
 0x53a   :  { %2184 = vmatpush.bf16.msrb.mxu2 %v1055_v20  ;;  %v2921_v20 = vld [vmem:[#allocation2 + $0x100] sm:$0xf0] }
 0x53b   :  { %1849 = vmatpush.bf16.msra.mxu0 %v3974_v40  ;;  %v2483_v40 = vor.u32 %v2899_v18, %v2482_v10  ;;  %v2575_v30 = vor.u32 %v2921_v20, %v2574_v13  ;;  %v2686_v10 = vld [vmem:[#allocation2 + $0x1c8] sm:$0xf]  ;;  %v2949_v18 = vld [vmem:[#allocation2 + $0x1e0] sm:$0xf0]  ;;  %v2714_v13 = vld [vmem:[#allocation2 + $0x200] sm:$0xf] }
 0x53c   :  { %2101 = vmatpush.bf16.msrb.mxu1 %v4119_v5  ;;  %v2571_v5 = vor.u32 %v2917_v39, %v2568_v58  ;;  %v2952_v39 = vld [vmem:[#allocation2 + $0x1fc] sm:$0xf]  ;;  %v2893_v58 = vld [vmem:[#allocation2 + $0x20] sm:$0xf0] }
 0x53d   :  { %v2956_v20 = vld [vmem:[#allocation2 + $0x218] sm:$0xf0] }
 0x53e   :  { %2185 = vmatpush.bf16.msrb.mxu2 %v4135_v34  ;;  %v2567_v34 = vor.u32 %v2920_v22, %v2566_v11 }
 0x53f   :  { %1850 = vmatpush.bf16.msra.mxu0 %v4066_v57  ;;  %v2906_v57 = vld [vmem:[#allocation2 + $0x88] sm:$0xf0] }
 0x540   :  { %2102 = vmatpush.bf16.msrb.mxu1 %v4157_v52  ;;  %v2596_v52 = vld [vmem:[#allocation2 + $0x134] sm:$0xf0] }
 0x542   :  { %2186 = vmatpush.bf16.msrb.mxu2 %v1047_v36  ;;  %v2630_v36 = vld [vmem:[#allocation2 + $0x158] sm:$0xf] }
 0x543   :  { %1851 = vmatpush.bf16.msra.mxu0 %v4002_v60  ;;  %v2510_v60 = vld [vmem:[#allocation2 + $0x70] sm:$0xf] }
 0x544   :  { %2103 = vmatpush.bf16.msrb.mxu1 %v4143_v54  ;;  %v2924_v54 = vld [vmem:[#allocation2 + $0x11c] sm:$0xf] }
 0x546   :  { %2187 = vmatpush.bf16.msrb.mxu2 %v4131_v8  ;;  %v2927_v8 = vld [vmem:[#allocation2 + $0x130] sm:$0xf0] }
 0x547   :  { %1852 = vmatpush.bf16.msra.mxu0 %v4071_v23  ;;  %1792 = vmatmul.bf16.gmra.mxu1 %v2567_v34  ;;  %v2594_v23 = vld [vmem:[#allocation2 + $0x118] sm:$0xf] }
 0x548   :  { %1777 = vmatmul.bf16.gmra.mxu0 %v2483_v40  ;;  %2104 = vmatpush.bf16.msrb.mxu1 %v4150_v12  ;;  %v2889_v12 = vld [vmem:[#allocation2 + $0x4] sm:$0xf] }
 0x549   :  { %1876 = vmatmul.bf16.gmra.mxu2 %v2571_v5  ;;  %1960 = vmatmul.bf16.gmra.mxu3 %v2575_v30  ;;  %v2734_v30 = vld [vmem:[#allocation2 + $0x230] sm:$0xf] }
 0x54a   :  { %2188 = vmatpush.bf16.msrb.mxu2 %v4164_v47  ;;  %v2602_v47 = vld [vmem:[#allocation2 + $0x120] sm:$0xf] }
 0x54b   :  { %1853 = vmatpush.bf16.msra.mxu0 %v3982_v43  ;;  %v2511_v43 = vor.u32 %v2906_v57, %v2510_v60  ;;  %v2959_v60 = vld [vmem:[#allocation2 + $0x234] sm:$0xf]  ;;  %v2900_v57 = vld [vmem:[#allocation2 + $0x58] sm:$0xf0] }
 0x54c   :  { %2105 = vmatpush.bf16.msrb.mxu1 %v4111_v19  ;;  %v2595_v19 = vor.u32 %v2927_v8, %v2594_v23  ;;  %v2736_v23 = vld [vmem:[#allocation2 + $0x24c] sm:$0xf0]  ;;  %v2742_v8 = vld [vmem:[#allocation2 + $0x238] sm:$0xf] }
 0x54e   :  { %2189 = vmatpush.bf16.msrb.mxu2 %v4147_v26  ;;  %v2603_v26 = vor.u32 %v2928_v53, %v2602_v47  ;;  %v2739_v53 = vor.u32 %v2959_v60, %v2736_v23 }
 0x54f   :  { %1854 = vmatpush.bf16.msra.mxu0 %v4091_v29  ;;  %v2599_v29 = vor.u32 %v2924_v54, %v2596_v52  ;;  %v2963_v54 = vld [vmem:[#allocation2 + $0x250] sm:$0xf0] }
 0x550   :  { %2106 = vmatpush.bf16.msrb.mxu1 %v4139_v49  ;;  %v2622_v49 = vld [vmem:[#allocation2 + $0x150] sm:$0xf] }
 0x552   :  { %2190 = vmatpush.bf16.msrb.mxu2 %v4153_v17  ;;  %v2931_v17 = vld [vmem:[#allocation2 + $0x154] sm:$0xf] }
 0x553   :  { %1855 = vmatpush.bf16.msra.mxu0 %v3958_v35  ;;  %v2934_v35 = vld [vmem:[#allocation2 + $0x168] sm:$0xf0]  ;;  %v2627_v25 = vor.u32 %v2931_v17, %v2624_v51 }
 0x554   :  { %2107 = vmatpush.bf16.msrb.mxu1 %v4018_v2  ;;  %v2623_v63 = vor.u32 %v2934_v35, %v2622_v49  ;;  %v2518_v49 = vld [vmem:[#allocation2 + $0x78] sm:$0xf]  ;;  %v2907_v35 = vld [vmem:[#allocation2 + $0x90] sm:$0xf0]  ;;  %v2970_v17 = vld [vmem:[#allocation2 + $0x288] sm:$0xf0] }
 0x556   :  { %2191 = vmatpush.bf16.msrb.mxu2 %v4123_v28  ;;  %v2456_v28 = vld [vmem:[#allocation2 + $0x1c] sm:$0xf0] }
 0x557   :  { %1932 = vmatpush.bf16.msrb.mxu0 %v4095_v41  ;;  %1797 = vmatmul.bf16.gmra.mxu1 %v2595_v19  ;;  %v2935_v41 = vld [vmem:[#allocation2 + $0x170] sm:$0xf0]  ;;  %v2459_v2 = vor.u32 %v2889_v12, %v2456_v28  ;;  %v2762_v19 = vld [vmem:[#allocation2 + $0x268] sm:$0xf]  ;;  %v2770_v28 = vld [vmem:[#allocation2 + $0x270] sm:$0xf] }
 0x558   :  { %1782 = vmatmul.bf16.gmra.mxu0 %v2511_v43  ;;  %v2631_v37 = vor.u32 %v2935_v41, %v2630_v36  ;;  %v2743_v43 = vor.u32 %v2963_v54, %v2742_v8  ;;  %v2764_v12 = vld [vmem:[#allocation2 + $0x284] sm:$0xf0]  ;;  %v2519_v36 = vor.u32 %v2907_v35, %v2518_v49  ;;  %v2846_v35 = vld [vmem:[#allocation2 + $0x310] sm:$0xf] }
 0x559   :  { %1881 = vmatmul.bf16.gmra.mxu2 %v2599_v29  ;;  %1965 = vmatmul.bf16.gmra.mxu3 %v2603_v26  ;;  %v2969_v29 = vld [vmem:[#allocation2 + $0x280] sm:$0xf0]  ;;  %v2966_v26 = vld [vmem:[#allocation2 + $0x26c] sm:$0xf] }
 0x55a   :  { %v2763_v51 = vor.u32 %v2969_v29, %v2762_v19 }
 0x55b   :  { %1933 = vmatpush.bf16.msrb.mxu0 %v4010_v56  ;;  %v2650_v56 = vld [vmem:[#allocation2 + $0x188] sm:$0xf] }
 0x55f   :  { %1934 = vmatpush.bf16.msrb.mxu0 %v4115_v14  ;;  %v2941_v14 = vld [vmem:[#allocation2 + $0x1a0] sm:$0xf0] }
 0x563   :  { %1935 = vmatpush.bf16.msrb.mxu0 %v3990_v55  ;;  %v2652_v55 = vld [vmem:[#allocation2 + $0x1a4] sm:$0xf0] }
 0x564   :  { %v2655_v38 = vor.u32 %v2938_v7, %v2652_v55  ;;  %v2790_v55 = vld [vmem:[#allocation2 + $0x2a0] sm:$0xf] }
 0x567   :  { %1936 = vmatpush.bf16.msrb.mxu0 %v4075_v27  ;;  %1802 = vmatmul.bf16.gmra.mxu1 %v2623_v63  ;;  %v2651_v27 = vor.u32 %v2941_v14, %v2650_v56 }
 0x568   :  { %1856 = vmatmul.bf16.vlgmr.msra.gmra.mxu0 %v2459_v2  ;;  %v2767_v2 = vor.u32 %v2966_v26, %v2764_v12  ;;  %v2990_v12 = vld [vmem:[#allocation2 + $0x328] sm:$0xf0] }
 0x569   :  { %1886 = vmatmul.bf16.gmra.mxu2 %v2627_v25  ;;  %1970 = vmatmul.bf16.gmra.mxu3 %v2631_v37  ;;  %v2771_v25 = vor.u32 %v2970_v17, %v2770_v28  ;;  %v2987_v28 = vld [vmem:[#allocation2 + $0x314] sm:$0xf]  ;;  %v2904_v17 = vld [vmem:[#allocation2 + $0x7c] sm:$0xf] }
 0x56b   :  { %1937 = vmatpush.bf16.msrb.mxu0 %v4014_v0  ;;  %v1762_v0 = vsel %vm1760_vm5, 1065369472, %v3117_v45 }
 0x56c   :  { %2273 = vmatpush.bf16.msrb.mxu3 %v1762_v0  ;;  %v2977_v0 = vld [vmem:[#allocation2 + $0x2c0] sm:$0xf0] }
 0x56f   :  { %1938 = vmatpush.bf16.msrb.mxu0 %v4083_v59  ;;  %v2948_v59 = vld [vmem:[#allocation2 + $0x1d8] sm:$0xf0] }
 0x570   :  { %2274 = vmatpush.bf16.msrb.mxu3 %v4170_v9  ;;  %v2955_v9 = vld [vmem:[#allocation2 + $0x210] sm:$0xf0] }
 0x573   :  { %1939 = vmatpush.bf16.msrb.mxu0 %v3998_v48  ;;  %v2678_v48 = vld [vmem:[#allocation2 + $0x1c0] sm:$0xf] }
 0x574   :  { %2275 = vmatpush.bf16.msrb.mxu3 %v4174_v46  ;;  %v2679_v45 = vor.u32 %v2948_v59, %v2678_v48  ;;  %v2708_v46 = vld [vmem:[#allocation2 + $0x214] sm:$0xf0] }
 0x575   :  { %v2711_v5 = vor.u32 %v2952_v39, %v2708_v46  ;;  %v2983_v46 = vld [vmem:[#allocation2 + $0x2f0] sm:$0xf0] }
 0x577   :  { %2016 = vmatpush.bf16.msra.mxu0 %v4099_v15  ;;  %1807 = vmatmul.bf16.gmra.mxu1 %v2651_v27  ;;  %v2903_v15 = vld [vmem:[#allocation2 + $0x74] sm:$0xf]  ;;  %v2890_v27 = vld [vmem:[#allocation2 + $0xc] sm:$0xf] }
 0x578   :  { %1861 = vmatmul.bf16.gmra.mxu0 %v2487_v33  ;;  %v2515_v11 = vor.u32 %v2903_v15, %v2512_v1  ;;  %v2464_v33 = vld [vmem:[#allocation2 + $0x24] sm:$0xf0]  ;;  %v2791_v15 = vor.u32 %v2976_v50, %v2790_v55 }
 0x579   :  { %1891 = vmatmul.bf16.gmra.mxu2 %v2655_v38  ;;  %1975 = vmatmul.bf16.gmra.mxu3 %v2659_v42  ;;  %v2792_v38 = vld [vmem:[#allocation2 + $0x2bc] sm:$0xf0]  ;;  %v2798_v42 = vld [vmem:[#allocation2 + $0x2a8] sm:$0xf]  ;;  %v2467_v1 = vor.u32 %v2890_v27, %v2464_v33 }
 0x57b   :  { %2017 = vmatpush.bf16.msra.mxu0 %v4038_v31  ;;  %v2680_v31 = vld [vmem:[#allocation2 + $0x1dc] sm:$0xf0] }
 0x57c   :  { %v2683_v22 = vor.u32 %v2945_v24, %v2680_v31 }
 0x57f   :  { %2018 = vmatpush.bf16.msra.mxu0 %v4107_v62  ;;  %v2687_v62 = vor.u32 %v2949_v18, %v2686_v10  ;;  %v2795_v18 = vor.u32 %v2973_v32, %v2792_v38 }
 0x583   :  { %2019 = vmatpush.bf16.msra.mxu0 %v4022_v6  ;;  %v2706_v6 = vld [vmem:[#allocation2 + $0x1f8] sm:$0xf] }
 0x584   :  { %v2707_v40 = vor.u32 %v2955_v9, %v2706_v6 }
 0x587   :  { %2020 = vmatpush.bf16.msra.mxu0 %v4127_v16  ;;  %1812 = vmatmul.bf16.gmra.mxu1 %v2679_v45  ;;  %v2462_v16 = vld [vmem:[#allocation2 + $0x8] sm:$0xf]  ;;  %v2799_v45 = vor.u32 %v2977_v0, %v2798_v42 }
 0x588   :  { %1866 = vmatmul.bf16.gmra.mxu0 %v2515_v11  ;;  %v2463_v34 = vor.u32 %v2893_v58, %v2462_v16  ;;  %v2818_v58 = vld [vmem:[#allocation2 + $0x2d8] sm:$0xf] }
 0x589   :  { %1896 = vmatmul.bf16.gmra.mxu2 %v2683_v22  ;;  %1980 = vmatmul.bf16.gmra.mxu3 %v2687_v62  ;;  %v2819_v60 = vor.u32 %v2983_v46, %v2818_v58 }
 0x58b   :  { %2021 = vmatpush.bf16.msra.mxu0 %v4006_v61  ;;  %v2715_v61 = vor.u32 %v2956_v20, %v2714_v13  ;;  %v2980_v13 = vld [vmem:[#allocation2 + $0x2dc] sm:$0xf]  ;;  %v2897_v20 = vld [vmem:[#allocation2 + $0x44] sm:$0xf] }
 0x58f   :  { %2022 = vmatpush.bf16.msra.mxu0 %v4087_v21  ;;  %v2962_v21 = vld [vmem:[#allocation2 + $0x248] sm:$0xf0] }
 0x590   :  { %v2735_v52 = vor.u32 %v2962_v21, %v2734_v30 }
 0x593   :  { %2023 = vmatpush.bf16.msra.mxu0 %v4028_v3  ;;  %v2490_v3 = vld [vmem:[#allocation2 + $0x40] sm:$0xf] }
 0x594   :  { %v2491_v47 = vor.u32 %v2900_v57, %v2490_v3 }
 0x597   :  { %1817 = vmatmul.bf16.gmra.mxu1 %v2707_v40  ;;  %v2492_v40 = vld [vmem:[#allocation2 + $0x5c] sm:$0xf0] }
 0x598   :  { %1940 = vmatmul.bf16.vlgmr.msrb.gmra.mxu0 %v2463_v34  ;;  %v2820_v34 = vld [vmem:[#allocation2 + $0x2f4] sm:$0xf0]  ;;  %v2495_v3 = vor.u32 %v2897_v20, %v2492_v40 }
 0x599   :  { %1901 = vmatmul.bf16.gmra.mxu2 %v2711_v5  ;;  %1985 = vmatmul.bf16.gmra.mxu3 %v2715_v61  ;;  %v2826_v5 = vld [vmem:[#allocation2 + $0x2e0] sm:$0xf]  ;;  %v2984_v61 = vld [vmem:[#allocation2 + $0x2f8] sm:$0xf0]  ;;  %v2823_v54 = vor.u32 %v2980_v13, %v2820_v34 }
 0x5a7   :  { %1822 = vmatmul.bf16.gmra.mxu1 %v2735_v52  ;;  %v2827_v52 = vor.u32 %v2984_v61, %v2826_v5 }
 0x5a8   :  { %1945 = vmatmul.bf16.gmra.mxu0 %v2491_v47 }
 0x5a9   :  { %1906 = vmatmul.bf16.gmra.mxu2 %v2739_v53  ;;  %1990 = vmatmul.bf16.gmra.mxu3 %v2743_v43 }
 0x5b4   :  { %v1788_v63 = vpop.f32.mrf.mxu1 }
 0x5b5   :  { %v4248_v41 = vpop.f32.mrf.mxu0 }
 0x5b7   :  { %1827 = vmatmul.bf16.gmra.mxu1 %v2763_v51  ;;  %v2520_v51 = vld [vmem:[#allocation2 + $0x94] sm:$0xf0] }
 0x5b8   :  { %1950 = vmatmul.bf16.gmra.mxu0 %v2519_v36  ;;  %v2848_v36 = vld [vmem:[#allocation2 + $0x32c] sm:$0xf0] }
 0x5b9   :  { %1911 = vmatmul.bf16.gmra.mxu2 %v2767_v2  ;;  %1995 = vmatmul.bf16.gmra.mxu3 %v2771_v25  ;;  %v2991_v2 = vld [vmem:[#allocation2 + $0x330] sm:$0xf0]  ;;  %v2851_v32 = vor.u32 %v2987_v28, %v2848_v36  ;;  %v2506_v28 = vld [vmem:[#allocation2 + $0x50] sm:$0xf] }
 0x5bc   :  { %v1872_v37 = vpop.f32.mrf.mxu2  ;;  %v1956_v56 = vpop.f32.mrf.mxu3 }
 0x5bd   :  { %v1873_v14 = vadd.f32 %v1872_v37, %v1788_v63  ;;  %v4250_v44 = vpop.f32.mrf.mxu0  ;;  %v1790_v4 = vpop.f32.mrf.mxu1  ;;  %v2854_v63 = vld [vmem:[#allocation2 + $0x318] sm:$0xf] }
 0x5be   :  { %v2855_v27 = vor.u32 %v2991_v2, %v2854_v63 }
 0x5bf   :  { %v4252_v7 = vadd.f32 %v1956_v56, %v1873_v14  ;;  %v2847_v56 = vor.u32 %v2990_v12, %v2846_v35  ;;  %v2523_v14 = vor.u32 %v2904_v17, %v2520_v51  ;;  %v2898_v35 = vld [vmem:[#allocation2 + $0x4c] sm:$0xf]  ;;  %v2500_v12 = vld [vmem:[#allocation2 + $0x64] sm:$0xf0] }
 0x5c0   :  { %v2902_v17 = vld [vmem:[#allocation2 + $0x68] sm:$0xf0] }
 0x5c4   :  { %v1874_v48 = vpop.f32.mrf.mxu2  ;;  %v1958_v59 = vpop.f32.mrf.mxu3 }
 0x5c5   :  { %v1875_v24 = vadd.f32 %v1874_v48, %v1790_v4  ;;  %v4254_v31 = vpop.f32.mrf.mxu0  ;;  %v1793_v10 = vpop.f32.mrf.mxu1 }
 0x5c7   :  { %v4256_v11 = vadd.f32 %v1958_v59, %v1875_v24  ;;  %1832 = vmatmul.bf16.gmra.mxu1 %v2791_v15 }
 0x5c8   :  { %2024 = vmatmul.bf16.vlgmr.msra.gmra.mxu0 %v2467_v1 }
 0x5c9   :  { %1916 = vmatmul.bf16.gmra.mxu2 %v2795_v18  ;;  %2000 = vmatmul.bf16.gmra.mxu3 %v2799_v45  ;;  %v2548_v18 = vld [vmem:[#allocation2 + $0xcc] sm:$0xf0]  ;;  %v2894_v45 = vld [vmem:[#allocation2 + $0x28] sm:$0xf0] }
 0x5cc   :  { %v1877_v22 = vpop.f32.mrf.mxu2  ;;  %v1961_v62 = vpop.f32.mrf.mxu3 }
 0x5cd   :  { %v1878_v6 = vadd.f32 %v1877_v22, %v1793_v10  ;;  %v4258_v9 = vpop.f32.mrf.mxu0  ;;  %v1795_v39 = vpop.f32.mrf.mxu1  ;;  %v2911_v10 = vld [vmem:[#allocation2 + $0xb4] sm:$0xf] }
 0x5ce   :  { %v2891_v22 = vld [vmem:[#allocation2 + $0x14] sm:$0xf]  ;;  %v2551_v13 = vor.u32 %v2911_v10, %v2548_v18  ;;  %v2526_v10 = vld [vmem:[#allocation2 + $0x80] sm:$0xf]  ;;  %v2908_v18 = vld [vmem:[#allocation2 + $0x98] sm:$0xf0] }
 0x5cf   :  { %v4260_v16 = vadd.f32 %v1961_v62, %v1878_v6  ;;  %v2472_v62 = vld [vmem:[#allocation2 + $0x2c] sm:$0xf0]  ;;  %v2478_v6 = vld [vmem:[#allocation2 + $0x18] sm:$0xf] }
 0x5d0   :  { %v2475_v61 = vor.u32 %v2891_v22, %v2472_v62  ;;  %v2534_v22 = vld [vmem:[#allocation2 + $0x88] sm:$0xf]  ;;  %v2909_v62 = vld [vmem:[#allocation2 + $0xa0] sm:$0xf0] }
 0x5d4   :  { %v1879_v30 = vpop.f32.mrf.mxu2  ;;  %v1963_v21 = vpop.f32.mrf.mxu3 }
 0x5d5   :  { %v1880_v57 = vadd.f32 %v1879_v30, %v1795_v39  ;;  %v4262_v23 = vpop.f32.mrf.mxu0  ;;  %v1798_v8 = vpop.f32.mrf.mxu1  ;;  %v2895_v39 = vld [vmem:[#allocation2 + $0x30] sm:$0xf0] }
 0x5d7   :  { %v4264_v47 = vadd.f32 %v1963_v21, %v1880_v57  ;;  %1837 = vmatmul.bf16.gmra.mxu1 %v2819_v60 }
 0x5d8   :  { %2029 = vmatmul.bf16.gmra.mxu0 %v2495_v3 }
 0x5d9   :  { %1921 = vmatmul.bf16.gmra.mxu2 %v2823_v54  ;;  %2005 = vmatmul.bf16.gmra.mxu3 %v2827_v52 }
 0x5dc   :  { %v1882_v53 = vpop.f32.mrf.mxu2  ;;  %v1966_v43 = vpop.f32.mrf.mxu3 }
 0x5dd   :  { %v1883_v19 = vadd.f32 %v1882_v53, %v1798_v8  ;;  %v4266_v29 = vpop.f32.mrf.mxu0  ;;  %v1800_v26 = vpop.f32.mrf.mxu1 }
 0x5df   :  { %v4268_v49 = vadd.f32 %v1966_v43, %v1883_v19  ;;  %v2576_v43 = vld [vmem:[#allocation2 + $0x104] sm:$0xf0] }
 0x5e0   :  { %v2498_v19 = vld [vmem:[#allocation2 + $0x48] sm:$0xf] }
 0x5e4   :  { %v1884_v25 = vpop.f32.mrf.mxu2  ;;  %v1968_v37 = vpop.f32.mrf.mxu3 }
 0x5e5   :  { %v1885_v4 = vadd.f32 %v1884_v25, %v1800_v26  ;;  %v1803_v55 = vpop.f32.mrf.mxu1  ;;  %v1857_v50 = vpop.f32.mrf.mxu0  ;;  %v2901_v26 = vld [vmem:[#allocation2 + $0x60] sm:$0xf0] }
 0x5e6   :  { %v4271_v33 = vadd.f32 %v1857_v50, %v4248_v41  ;;  %v2470_v41 = vld [vmem:[#allocation2 + $0x10] sm:$0xf]  ;;  %v2499_v2 = vor.u32 %v2901_v26, %v2498_v19  ;;  %v2554_v19 = vld [vmem:[#allocation2 + $0xb8] sm:$0xf]  ;;  %v2915_v26 = vld [vmem:[#allocation2 + $0xd0] sm:$0xf0] }
 0x5e7   :  { %v4273_v38 = vadd.f32 %v1968_v37, %v1885_v4  ;;  %1842 = vmatmul.bf16.gmra.mxu1 %v2847_v56  ;;  %v2471_v20 = vor.u32 %v2894_v45, %v2470_v41  ;;  %v2905_v41 = vld [vmem:[#allocation2 + $0x84] sm:$0xf]  ;;  %v2528_v45 = vld [vmem:[#allocation2 + $0x9c] sm:$0xf0] }
 0x5e8   :  { %2034 = vmatmul.bf16.gmra.mxu0 %v2523_v14  ;;  %v2503_v14 = vor.u32 %v2898_v35, %v2500_v12  ;;  %v2912_v35 = vld [vmem:[#allocation2 + $0xbc] sm:$0xf]  ;;  %v2556_v12 = vld [vmem:[#allocation2 + $0xd4] sm:$0xf0] }
 0x5e9   :  { %1926 = vmatmul.bf16.gmra.mxu2 %v2851_v32  ;;  %2010 = vmatmul.bf16.gmra.mxu3 %v2855_v27 }
 0x5ec   :  { %v1887_v42 = vpop.f32.mrf.mxu2  ;;  %v1971_v0 = vpop.f32.mrf.mxu3 }
 0x5ed   :  { %v1888_v48 = vadd.f32 %v1887_v42, %v1803_v55  ;;  %v1805_v59 = vpop.f32.mrf.mxu1  ;;  %v1859_v15 = vpop.f32.mrf.mxu0 }
 0x5ee   :  { %v4276_v1 = vadd.f32 %v1859_v15, %v4250_v44  ;;  %v2479_v44 = vor.u32 %v2895_v39, %v2478_v6  ;;  %v2925_v15 = vld [vmem:[#allocation2 + $0x124] sm:$0xf] }
 0x5ef   :  { %v4278_v24 = vadd.f32 %v1971_v0, %v1888_v48 }
 0x5f4   :  { %v1889_v58 = vpop.f32.mrf.mxu2  ;;  %v1973_v46 = vpop.f32.mrf.mxu3 }
 0x5f5   :  { %v1890_v40 = vadd.f32 %v1889_v58, %v1805_v59  ;;  %v1808_v34 = vpop.f32.mrf.mxu1  ;;  %v1862_v5 = vpop.f32.mrf.mxu0 }
 0x5f6   :  { %v4281_v30 = vadd.f32 %v1862_v5, %v4254_v31  ;;  %v2918_v31 = vld [vmem:[#allocation2 + $0xec] sm:$0xf] }
 0x5f7   :  { %v4283_v21 = vadd.f32 %v1973_v46, %v1890_v40  ;;  %2108 = vmatmul.bf16.vlgmr.msrb.gmra.mxu1 %v2471_v20  ;;  %v2579_v63 = vor.u32 %v2918_v31, %v2576_v43  ;;  %v2527_v46 = vor.u32 %v2908_v18, %v2526_v10  ;;  %v2932_v43 = vld [vmem:[#allocation2 + $0x15c] sm:$0xf]  ;;  %v2939_v18 = vld [vmem:[#allocation2 + $0x194] sm:$0xf] }
 0x5f8   :  { %2039 = vmatmul.bf16.gmra.mxu0 %v2551_v13 }
 0x5f9   :  { %2192 = vmatmul.bf16.vlgmr.msrb.gmra.mxu2 %v2475_v61  ;;  %2872 = vmatmul.msk.bf16.vlgmr.msrb.gmra.mxu3 %vm1714_vm6, %v2479_v44 }
 0x5fc   :  { %v1892_v60 = vpop.f32.mrf.mxu2  ;;  %v1976_v3 = vpop.f32.mrf.mxu3 }
 0x5fd   :  { %v1893_v57 = vadd.f32 %v1892_v60, %v1808_v34  ;;  %v1810_v8 = vpop.f32.mrf.mxu1  ;;  %v1864_v54 = vpop.f32.mrf.mxu0  ;;  %v2531_v34 = vor.u32 %v2905_v41, %v2528_v45  ;;  %v2582_v41 = vld [vmem:[#allocation2 + $0xf0] sm:$0xf]  ;;  %v2922_v45 = vld [vmem:[#allocation2 + $0x108] sm:$0xf0] }
 0x5fe   :  { %v4287_v52 = vadd.f32 %v1864_v54, %v4258_v9  ;;  %v2507_v9 = vor.u32 %v2902_v17, %v2506_v28  ;;  %v2562_v28 = vld [vmem:[#allocation2 + $0xc0] sm:$0xf]  ;;  %v2916_v17 = vld [vmem:[#allocation2 + $0xd8] sm:$0xf0] }
 0x5ff   :  { %v4289_v53 = vadd.f32 %v1976_v3, %v1893_v57 }
 0x604   :  { %v1894_v51 = vpop.f32.mrf.mxu2  ;;  %v1978_v36 = vpop.f32.mrf.mxu3 }
 0x605   :  { %v1895_v25 = vadd.f32 %v1894_v51, %v1810_v8  ;;  %v1813_v37 = vpop.f32.mrf.mxu1  ;;  %v1867_v56 = vpop.f32.mrf.mxu0 }
 0x606   :  { %v4292_v4 = vadd.f32 %v1867_v56, %v4262_v23  ;;  %v2604_v23 = vld [vmem:[#allocation2 + $0x13c] sm:$0xf0] }
 0x607   :  { %v4294_v55 = vadd.f32 %v1978_v36, %v1895_v25  ;;  %2113 = vmatmul.bf16.gmra.mxu1 %v2499_v2  ;;  %v2607_v58 = vor.u32 %v2925_v15, %v2604_v23  ;;  %v2555_v2 = vor.u32 %v2915_v26, %v2554_v19 }
 0x608   :  { %2044 = vmatmul.bf16.gmra.mxu0 %v2579_v63 }
 0x609   :  { %2197 = vmatmul.bf16.gmra.mxu2 %v2503_v14  ;;  %2873 = vmatmul.msk.bf16.gmra.mxu3 %vm1714_vm6, %v2507_v9  ;;  %v2559_v14 = vor.u32 %v2912_v35, %v2556_v12  ;;  %v2946_v12 = vld [vmem:[#allocation2 + $0x1cc] sm:$0xf] }
 0x60c   :  { %v1897_v50 = vpop.f32.mrf.mxu2  ;;  %v1981_v32 = vpop.f32.mrf.mxu3 }
 0x60d   :  { %v1898_v27 = vadd.f32 %v1897_v50, %v1813_v37  ;;  %v1815_v42 = vpop.f32.mrf.mxu1  ;;  %v1869_v0 = vpop.f32.mrf.mxu0 }
 0x60e   :  { %v4298_v48 = vadd.f32 %v1869_v0, %v4266_v29  ;;  %v2535_v29 = vor.u32 %v2909_v62, %v2534_v22  ;;  %v2919_v22 = vld [vmem:[#allocation2 + $0xf4] sm:$0xf]  ;;  %v2584_v62 = vld [vmem:[#allocation2 + $0x10c] sm:$0xf0] }
 0x60f   :  { %v4300_v59 = vadd.f32 %v1981_v32, %v1898_v27 }
 0x614   :  { %v1899_v6 = vpop.f32.mrf.mxu2  ;;  %v1983_v39 = vpop.f32.mrf.mxu3 }
 0x615   :  { %v1900_v13 = vadd.f32 %v1899_v6, %v1815_v42  ;;  %v1818_v20 = vpop.f32.mrf.mxu1  ;;  %v1941_v40 = vpop.f32.mrf.mxu0  ;;  %v2590_v6 = vld [vmem:[#allocation2 + $0xf8] sm:$0xf] }
 0x616   :  { %v4303_v5 = vadd.f32 %v1941_v40, %v4271_v33  ;;  %v2632_v33 = vld [vmem:[#allocation2 + $0x174] sm:$0xf0] }
 0x617   :  { %v4305_v61 = vadd.f32 %v1983_v39, %v1900_v13  ;;  %2118 = vmatmul.bf16.gmra.mxu1 %v2527_v46  ;;  %v2635_v63 = vor.u32 %v2932_v43, %v2632_v33  ;;  %v2923_v39 = vld [vmem:[#allocation2 + $0x110] sm:$0xf0] }
 0x618   :  { %2049 = vmatmul.bf16.gmra.mxu0 %v2607_v58 }
 0x619   :  { %2202 = vmatmul.bf16.gmra.mxu2 %v2531_v34  ;;  %2874 = vmatmul.msk.bf16.gmra.mxu3 %vm1714_vm6, %v2535_v29 }
 0x61c   :  { %v1902_v44 = vpop.f32.mrf.mxu2  ;;  %v1986_v60 = vpop.f32.mrf.mxu3 }
 0x61d   :  { %v1903_v3 = vadd.f32 %v1902_v44, %v1818_v20  ;;  %v1820_v57 = vpop.f32.mrf.mxu1  ;;  %v1943_v8 = vpop.f32.mrf.mxu0  ;;  %v2583_v20 = vor.u32 %v2922_v45, %v2582_v41  ;;  %v2587_v44 = vor.u32 %v2919_v22, %v2584_v62 }
 0x61e   :  { %v4309_v54 = vadd.f32 %v1943_v8, %v4276_v1  ;;  %v2563_v1 = vor.u32 %v2916_v17, %v2562_v28  ;;  %v2610_v28 = vld [vmem:[#allocation2 + $0x128] sm:$0xf]  ;;  %v2929_v17 = vld [vmem:[#allocation2 + $0x140] sm:$0xf0] }
 0x61f   :  { %v4311_v31 = vadd.f32 %v1986_v60, %v1903_v3 }
 0x624   :  { %v1904_v51 = vpop.f32.mrf.mxu2  ;;  %v1988_v36 = vpop.f32.mrf.mxu3 }
 0x625   :  { %v1905_v25 = vadd.f32 %v1904_v51, %v1820_v57  ;;  %v1823_v37 = vpop.f32.mrf.mxu1  ;;  %v1946_v56 = vpop.f32.mrf.mxu0  ;;  %v2926_v51 = vld [vmem:[#allocation2 + $0x12c] sm:$0xf] }
 0x626   :  { %v4314_v9 = vadd.f32 %v1946_v56, %v4281_v30  ;;  %v2660_v30 = vld [vmem:[#allocation2 + $0x1ac] sm:$0xf0] }
 0x627   :  { %v4316_v50 = vadd.f32 %v1988_v36, %v1905_v25  ;;  %2123 = vmatmul.bf16.gmra.mxu1 %v2555_v2  ;;  %v2663_v13 = vor.u32 %v2939_v18, %v2660_v30  ;;  %v2612_v36 = vld [vmem:[#allocation2 + $0x144] sm:$0xf0]  ;;  %v2930_v2 = vld [vmem:[#allocation2 + $0x148] sm:$0xf0] }
 0x628   :  { %2054 = vmatmul.bf16.gmra.mxu0 %v2635_v63  ;;  %v2618_v63 = vld [vmem:[#allocation2 + $0x130] sm:$0xf] }
 0x629   :  { %2207 = vmatmul.bf16.gmra.mxu2 %v2559_v14  ;;  %2875 = vmatmul.msk.bf16.gmra.mxu3 %vm1714_vm6, %v2563_v1  ;;  %v2611_v14 = vor.u32 %v2929_v17, %v2610_v28 }
 0x62c   :  { %v1907_v32 = vpop.f32.mrf.mxu2  ;;  %v1991_v27 = vpop.f32.mrf.mxu3 }
 0x62d   :  { %v1908_v42 = vadd.f32 %v1907_v32, %v1823_v37  ;;  %v1825_v0 = vpop.f32.mrf.mxu1  ;;  %v1948_v15 = vpop.f32.mrf.mxu0 }
 0x62e   :  { %v4320_v23 = vadd.f32 %v1948_v15, %v4287_v52  ;;  %v2591_v52 = vor.u32 %v2923_v39, %v2590_v6  ;;  %v2953_v39 = vld [vmem:[#allocation2 + $0x204] sm:$0xf] }
 0x62f   :  { %v4322_v10 = vadd.f32 %v1991_v27, %v1908_v42  ;;  %v2615_v42 = vor.u32 %v2926_v51, %v2612_v36 }
 0x634   :  { %v1909_v58 = vpop.f32.mrf.mxu2  ;;  %v1993_v46 = vpop.f32.mrf.mxu3 }
 0x635   :  { %v1910_v40 = vadd.f32 %v1909_v58, %v1825_v0  ;;  %v1828_v34 = vpop.f32.mrf.mxu1  ;;  %v1951_v29 = vpop.f32.mrf.mxu0  ;;  %v2638_v58 = vld [vmem:[#allocation2 + $0x160] sm:$0xf] }
 0x636   :  { %v4325_v60 = vadd.f32 %v1951_v29, %v4292_v4  ;;  %v2688_v4 = vld [vmem:[#allocation2 + $0x1e4] sm:$0xf0] }
 0x637   :  { %v4327_v3 = vadd.f32 %v1993_v46, %v1910_v40  ;;  %2128 = vmatmul.bf16.gmra.mxu1 %v2583_v20  ;;  %v2691_v56 = vor.u32 %v2946_v12, %v2688_v4  ;;  %v2936_v46 = vld [vmem:[#allocation2 + $0x178] sm:$0xf0]  ;;  %v2640_v20 = vld [vmem:[#allocation2 + $0x17c] sm:$0xf0]  ;;  %v2646_v40 = vld [vmem:[#allocation2 + $0x168] sm:$0xf] }
 0x638   :  { %2059 = vmatmul.bf16.gmra.mxu0 %v2663_v13  ;;  %v2933_v13 = vld [vmem:[#allocation2 + $0x164] sm:$0xf] }
 0x639   :  { %2212 = vmatmul.bf16.gmra.mxu2 %v2587_v44  ;;  %2876 = vmatmul.msk.bf16.gmra.mxu3 %vm1714_vm6, %v2591_v52 }
 0x63c   :  { %v1912_v57 = vpop.f32.mrf.mxu2  ;;  %v1996_v8 = vpop.f32.mrf.mxu3 }
 0x63d   :  { %v1913_v43 = vadd.f32 %v1912_v57, %v1828_v34  ;;  %v1830_v33 = vpop.f32.mrf.mxu1  ;;  %v1953_v19 = vpop.f32.mrf.mxu0  ;;  %v2937_v34 = vld [vmem:[#allocation2 + $0x180] sm:$0xf0]  ;;  %v2639_v57 = vor.u32 %v2936_v46, %v2638_v58 }
 0x63e   :  { %v4331_v26 = vadd.f32 %v1953_v19, %v4298_v48  ;;  %v2619_v48 = vor.u32 %v2930_v2, %v2618_v63  ;;  %v2643_v19 = vor.u32 %v2933_v13, %v2640_v20 }
 0x63f   :  { %v4333_v35 = vadd.f32 %v1996_v8, %v1913_v43 }
 0x644   :  { %v1914_v25 = vpop.f32.mrf.mxu2  ;;  %v1998_v37 = vpop.f32.mrf.mxu3 }
 0x645   :  { %v1915_v1 = vadd.f32 %v1914_v25, %v1830_v33  ;;  %v1833_v32 = vpop.f32.mrf.mxu1  ;;  %v2025_v27 = vpop.f32.mrf.mxu0 }
 0x646   :  { %v4336_v0 = vadd.f32 %v2025_v27, %v4303_v5  ;;  %v2716_v5 = vld [vmem:[#allocation2 + $0x21c] sm:$0xf0] }
 0x647   :  { %v4338_v15 = vadd.f32 %v1998_v37, %v1915_v1  ;;  %2133 = vmatmul.bf16.gmra.mxu1 %v2611_v14  ;;  %v2719_v52 = vor.u32 %v2953_v39, %v2716_v5  ;;  %v2960_v37 = vld [vmem:[#allocation2 + $0x23c] sm:$0xf]  ;;  %v2943_v14 = vld [vmem:[#allocation2 + $0x1b0] sm:$0xf0]  ;;  %v2674_v27 = vld [vmem:[#allocation2 + $0x1a0] sm:$0xf] }
 0x648   :  { %2064 = vmatmul.bf16.gmra.mxu0 %v2691_v56  ;;  %v2666_v56 = vld [vmem:[#allocation2 + $0x198] sm:$0xf]  ;;  %v2940_v1 = vld [vmem:[#allocation2 + $0x19c] sm:$0xf] }
 0x649   :  { %4535 = vst [vmem:[#allocation6_spill] sm:$0xff] %v4338_v15  ;;  %2217 = vmatmul.bf16.gmra.mxu2 %v2615_v42  ;;  %2877 = vmatmul.msk.bf16.gmra.mxu3 %vm1714_vm6, %v2619_v48  ;;  %v2944_v42 = vld [vmem:[#allocation2 + $0x1b8] sm:$0xf0] }
 0x64c   :  { %v1917_v18 = vpop.f32.mrf.mxu2  ;;  %v2001_v30 = vpop.f32.mrf.mxu3 }
 0x64d   :  { %v1918_v41 = vadd.f32 %v1917_v18, %v1833_v32  ;;  %v1835_v45 = vpop.f32.mrf.mxu1  ;;  %v2027_v22 = vpop.f32.mrf.mxu0  ;;  %v2668_v32 = vld [vmem:[#allocation2 + $0x1b4] sm:$0xf0] }
 0x64e   :  { %v4342_v62 = vadd.f32 %v2027_v22, %v4309_v54  ;;  %v2647_v54 = vor.u32 %v2937_v34, %v2646_v40  ;;  %v2671_v5 = vor.u32 %v2940_v1, %v2668_v32 }
 0x64f   :  { %v4344_v6 = vadd.f32 %v2001_v30, %v1918_v41  ;;  %v2667_v41 = vor.u32 %v2943_v14, %v2666_v56 }
 0x651   :  { %4536 = vst [vmem:[#allocation7_spill] sm:$0xff] %v4344_v6 }
 0x654   :  { %v1919_v29 = vpop.f32.mrf.mxu2  ;;  %v2003_v44 = vpop.f32.mrf.mxu3 }
 0x655   :  { %v1920_v8 = vadd.f32 %v1919_v29, %v1835_v45  ;;  %v1838_v43 = vpop.f32.mrf.mxu1  ;;  %v2030_v33 = vpop.f32.mrf.mxu0 }
 0x656   :  { %v4347_v12 = vadd.f32 %v2030_v33, %v4314_v9  ;;  %v2744_v9 = vld [vmem:[#allocation2 + $0x254] sm:$0xf0]  ;;  %v2947_v33 = vld [vmem:[#allocation2 + $0x1d4] sm:$0xf] }
 0x657   :  { %v4349_v4 = vadd.f32 %v2003_v44, %v1920_v8  ;;  %2138 = vmatmul.bf16.gmra.mxu1 %v2639_v57  ;;  %v2747_v30 = vor.u32 %v2960_v37, %v2744_v9  ;;  %v2967_v57 = vld [vmem:[#allocation2 + $0x274] sm:$0xf]  ;;  %v2694_v8 = vld [vmem:[#allocation2 + $0x1d0] sm:$0xf] }
 0x658   :  { %2069 = vmatmul.bf16.gmra.mxu0 %v2719_v52 }
 0x659   :  { %4537 = vst [vmem:[#allocation8_spill] sm:$0xff] %v4349_v4  ;;  %2222 = vmatmul.bf16.gmra.mxu2 %v2643_v19  ;;  %2878 = vmatmul.msk.bf16.gmra.mxu3 %vm1714_vm6, %v2647_v54  ;;  %v2696_v19 = vld [vmem:[#allocation2 + $0x1ec] sm:$0xf0]  ;;  %v2702_v54 = vld [vmem:[#allocation2 + $0x1d8] sm:$0xf] }
 0x65c   :  { %v1922_v28 = vpop.f32.mrf.mxu2  ;;  %v2006_v17 = vpop.f32.mrf.mxu3 }
 0x65d   :  { %v1923_v51 = vadd.f32 %v1922_v28, %v1838_v43  ;;  %v1840_v36 = vpop.f32.mrf.mxu1  ;;  %v2032_v63 = vpop.f32.mrf.mxu0  ;;  %v2950_v43 = vld [vmem:[#allocation2 + $0x1e8] sm:$0xf0]  ;;  %v2951_v28 = vld [vmem:[#allocation2 + $0x1f0] sm:$0xf0] }
 0x65e   :  { %v4353_v2 = vadd.f32 %v2032_v63, %v4320_v23  ;;  %v2675_v23 = vor.u32 %v2944_v42, %v2674_v27  ;;  %v2695_v63 = vor.u32 %v2950_v43, %v2694_v8  ;;  %v2703_v14 = vor.u32 %v2951_v28, %v2702_v54 }
 0x65f   :  { %v4355_v25 = vadd.f32 %v2006_v17, %v1923_v51 }
 0x661   :  { %4538 = vst [vmem:[#allocation9_spill] sm:$0xff] %v4355_v25 }
 0x664   :  { %v1924_v48 = vpop.f32.mrf.mxu2  ;;  %v2008_v18 = vpop.f32.mrf.mxu3 }
 0x665   :  { %v1925_v45 = vadd.f32 %v1924_v48, %v1840_v36  ;;  %v1843_v22 = vpop.f32.mrf.mxu1  ;;  %v2035_v39 = vpop.f32.mrf.mxu0 }
 0x666   :  { %v4358_v58 = vadd.f32 %v2035_v39, %v4325_v60  ;;  %v2772_v60 = vld [vmem:[#allocation2 + $0x28c] sm:$0xf0]  ;;  %v2800_v39 = vld [vmem:[#allocation2 + $0x2c4] sm:$0xf0] }
 0x667   :  { %v4360_v46 = vadd.f32 %v2008_v18, %v1925_v45  ;;  %2143 = vmatmul.bf16.gmra.mxu1 %v2667_v41  ;;  %v2775_v36 = vor.u32 %v2967_v57, %v2772_v60 }
 0x668   :  { %2074 = vmatmul.bf16.gmra.mxu0 %v2747_v30 }
 0x669   :  { %4539 = vst [vmem:[#allocation10_spill] sm:$0xff] %v4360_v46  ;;  %2227 = vmatmul.bf16.gmra.mxu2 %v2671_v5  ;;  %2879 = vmatmul.msk.bf16.gmra.mxu3 %vm1714_vm6, %v2675_v23  ;;  %v2957_v5 = vld [vmem:[#allocation2 + $0x220] sm:$0xf0]  ;;  %v2954_v23 = vld [vmem:[#allocation2 + $0x20c] sm:$0xf] }
 0x66c   :  { %v1927_v13 = vpop.f32.mrf.mxu2  ;;  %v2011_v20 = vpop.f32.mrf.mxu3 }
 0x66d   :  { %v1928_v40 = vadd.f32 %v1927_v13, %v1843_v22  ;;  %v1845_v34 = vpop.f32.mrf.mxu1  ;;  %v2037_v29 = vpop.f32.mrf.mxu0  ;;  %v2974_v22 = vld [vmem:[#allocation2 + $0x2ac] sm:$0xf]  ;;  %v2724_v13 = vld [vmem:[#allocation2 + $0x224] sm:$0xf0] }
 0x66e   :  { %v4364_v44 = vadd.f32 %v2037_v29, %v4331_v26  ;;  %v2699_v26 = vor.u32 %v2947_v33, %v2696_v19  ;;  %v2803_v57 = vor.u32 %v2974_v22, %v2800_v39  ;;  %v2727_v19 = vor.u32 %v2954_v23, %v2724_v13 }
 0x66f   :  { %v4366_v52 = vadd.f32 %v2011_v20, %v1928_v40  ;;  %v2730_v20 = vld [vmem:[#allocation2 + $0x210] sm:$0xf]  ;;  %v2958_v40 = vld [vmem:[#allocation2 + $0x228] sm:$0xf0] }
 0x670   :  { %v2731_v54 = vor.u32 %v2958_v40, %v2730_v20 }
 0x674   :  { %v1929_v17 = vpop.f32.mrf.mxu2  ;;  %v2013_v51 = vpop.f32.mrf.mxu3 }
 0x675   :  { %v1930_v37 = vadd.f32 %v1929_v17, %v1845_v34  ;;  %v4368_v9 = vpop.f32.mrf.mxu0  ;;  %v2109_v56 = vpop.f32.mrf.mxu1 }
 0x676   :  { %v2110_v1 = vadd.f32 %v2109_v56, %v4336_v0  ;;  %v2722_v0 = vld [vmem:[#allocation2 + $0x208] sm:$0xf] }
 0x677   :  { %v4371_v32 = vadd.f32 %v2013_v51, %v1930_v37  ;;  %2148 = vmatmul.bf16.gmra.mxu1 %v2695_v63  ;;  %v2723_v60 = vor.u32 %v2957_v5, %v2722_v0 }
 0x678   :  { %2079 = vmatmul.bf16.gmra.mxu0 %v2775_v36 }
 0x679   :  { %4540 = vst [vmem:[#allocation11_spill] sm:$0xff] %v4371_v32  ;;  %2232 = vmatmul.bf16.gmra.mxu2 %v2699_v26  ;;  %2880 = vmatmul.msk.bf16.gmra.mxu3 %vm1714_vm6, %v2703_v14 }
 0x67c   :  { %v2193_v27 = vpop.f32.mrf.mxu2  ;;  %v2277_v42 = vpop.f32.mrf.mxu3 }
 0x67d   :  { %v2194_v48 = vadd.f32 %v2193_v27, %v2110_v1  ;;  %v4374_v18 = vpop.f32.mrf.mxu0  ;;  %v2111_v30 = vpop.f32.mrf.mxu1  ;;  %v2828_v1 = vld [vmem:[#allocation2 + $0x2fc] sm:$0xf0]  ;;  %v2964_v27 = vld [vmem:[#allocation2 + $0x258] sm:$0xf0] }
 0x67e   :  { %v2112_v41 = vadd.f32 %v2111_v30, %v4342_v62  ;;  %v2758_v30 = vld [vmem:[#allocation2 + $0x248] sm:$0xf] }
 0x67f   :  { %v4377_v45 = vadd.f32 %v2277_v42, %v2194_v48  ;;  %v2961_v42 = vld [vmem:[#allocation2 + $0x244] sm:$0xf]  ;;  %v2752_v48 = vld [vmem:[#allocation2 + $0x25c] sm:$0xf0] }
 0x680   :  { %v2755_v40 = vor.u32 %v2961_v42, %v2752_v48 }
 0x684   :  { %v2195_v34 = vpop.f32.mrf.mxu2  ;;  %v2279_v29 = vpop.f32.mrf.mxu3 }
 0x685   :  { %v2196_v8 = vadd.f32 %v2195_v34, %v2112_v41  ;;  %v2045_v43 = vpop.f32.mrf.mxu0  ;;  %v2114_v33 = vpop.f32.mrf.mxu1  ;;  %v2965_v41 = vld [vmem:[#allocation2 + $0x260] sm:$0xf0] }
 0x686   :  { %v4380_v62 = vadd.f32 %v2045_v43, %v4260_v16  ;;  %v2115_v28 = vadd.f32 %v2114_v33, %v4347_v12  ;;  %v2981_v16 = vld [vmem:[#allocation2 + $0x2e4] sm:$0xf]  ;;  %v2750_v12 = vld [vmem:[#allocation2 + $0x240] sm:$0xf] }
 0x687   :  { %v4383_v17 = vadd.f32 %v2279_v29, %v2196_v8  ;;  %2153 = vmatmul.bf16.gmra.mxu1 %v2723_v60  ;;  %v2831_v0 = vor.u32 %v2981_v16, %v2828_v1  ;;  %v2751_v5 = vor.u32 %v2964_v27, %v2750_v12  ;;  %v2972_v16 = vld [vmem:[#allocation2 + $0x298] sm:$0xf0]  ;;  %v2041_v1 = vadd.f32 %v4368_v9, %v4252_v7 }
 0x688   :  { %2084 = vmatmul.bf16.gmra.mxu0 %v2803_v57  ;;  %v2043_v7 = vadd.f32 %v4374_v18, %v4256_v11 }
 0x689   :  { %2237 = vmatmul.bf16.gmra.mxu2 %v2727_v19  ;;  %2881 = vmatmul.msk.bf16.gmra.mxu3 %vm1714_vm6, %v2731_v54 }
 0x68c   :  { %v2198_v51 = vpop.f32.mrf.mxu2  ;;  %v2282_v36 = vpop.f32.mrf.mxu3 }
 0x68d   :  { %v2199_v63 = vadd.f32 %v2198_v51, %v2115_v28  ;;  %v4386_v37 = vpop.f32.mrf.mxu0  ;;  %v2116_v56 = vpop.f32.mrf.mxu1  ;;  %v2988_v28 = vld [vmem:[#allocation2 + $0x31c] sm:$0xf]  ;;  %v2856_v51 = vld [vmem:[#allocation2 + $0x334] sm:$0xf0] }
 0x68e   :  { %v2117_v26 = vadd.f32 %v2116_v56, %v4353_v2  ;;  %v2759_v2 = vor.u32 %v2965_v41, %v2758_v30  ;;  %v2780_v56 = vld [vmem:[#allocation2 + $0x294] sm:$0xf0]  ;;  %v2859_v42 = vor.u32 %v2988_v28, %v2856_v51  ;;  %v2979_v51 = vld [vmem:[#allocation2 + $0x2d0] sm:$0xf0] }
 0x68f   :  { %v4389_v14 = vadd.f32 %v2282_v36, %v2199_v63  ;;  %v2971_v36 = vld [vmem:[#allocation2 + $0x290] sm:$0xf0]  ;;  %v2968_v63 = vld [vmem:[#allocation2 + $0x27c] sm:$0xf]  ;;  %v2814_v28 = vld [vmem:[#allocation2 + $0x2b8] sm:$0xf] }
 0x694   :  { %v2200_v22 = vpop.f32.mrf.mxu2  ;;  %v2284_v39 = vpop.f32.mrf.mxu3 }
 0x695   :  { %v2201_v23 = vadd.f32 %v2200_v22, %v2117_v26  ;;  %v4391_v13 = vpop.f32.mrf.mxu0  ;;  %v2119_v20 = vpop.f32.mrf.mxu1  ;;  %v2786_v26 = vld [vmem:[#allocation2 + $0x280] sm:$0xf]  ;;  %v2783_v22 = vor.u32 %v2968_v63, %v2780_v56 }
 0x696   :  { %v2120_v34 = vadd.f32 %v2119_v20, %v4358_v58  ;;  %v2778_v58 = vld [vmem:[#allocation2 + $0x278] sm:$0xf] }
 0x697   :  { %v4394_v29 = vadd.f32 %v2284_v39, %v2201_v23  ;;  %2158 = vmatmul.bf16.gmra.mxu1 %v2751_v5  ;;  %v2779_v48 = vor.u32 %v2971_v36, %v2778_v58  ;;  %v2787_v39 = vor.u32 %v2972_v16, %v2786_v26  ;;  %v2815_v16 = vor.u32 %v2979_v51, %v2814_v28 }
 0x698   :  { %2089 = vmatmul.bf16.gmra.mxu0 %v2831_v0 }
 0x699   :  { %2242 = vmatmul.bf16.gmra.mxu2 %v2755_v40  ;;  %2882 = vmatmul.msk.bf16.gmra.mxu3 %vm1714_vm6, %v2759_v2 }
 0x69c   :  { %v2203_v57 = vpop.f32.mrf.mxu2  ;;  %v2287_v60 = vpop.f32.mrf.mxu3 }
 0x69d   :  { %v2204_v8 = vadd.f32 %v2203_v57, %v2120_v34  ;;  %v4397_v43 = vpop.f32.mrf.mxu0  ;;  %v2121_v33 = vpop.f32.mrf.mxu1 }
 0x69e   :  { %v2122_v19 = vadd.f32 %v2121_v33, %v4364_v44  ;;  %v2975_v33 = vld [vmem:[#allocation2 + $0x2b4] sm:$0xf] }
 0x69f   :  { %v4400_v54 = vadd.f32 %v2287_v60, %v2204_v8  ;;  %v2806_v60 = vld [vmem:[#allocation2 + $0x2b0] sm:$0xf]  ;;  %v2978_v8 = vld [vmem:[#allocation2 + $0x2c8] sm:$0xf0] }
 0x6a0   :  { %v2807_v63 = vor.u32 %v2978_v8, %v2806_v60 }
 0x6a4   :  { %v2205_v12 = vpop.f32.mrf.mxu2  ;;  %v2289_v27 = vpop.f32.mrf.mxu3 }
 0x6a5   :  { %v2206_v30 = vadd.f32 %v2205_v12, %v2122_v19  ;;  %v4404_v41 = vpop.f32.mrf.mxu0  ;;  %v2124_v44 = vpop.f32.mrf.mxu1  ;;  %v2808_v19 = vld [vmem:[#allocation2 + $0x2cc] sm:$0xf0] }
 0x6a6   :  { %v2125_v0 = vadd.f32 %v2124_v44, %v2041_v1  ;;  %v2811_v26 = vor.u32 %v2975_v33, %v2808_v19 }
 0x6a7   :  { %v4406_v5 = vadd.f32 %v2289_v27, %v2206_v30  ;;  %2163 = vmatmul.bf16.gmra.mxu1 %v2779_v48 }
 0x6a8   :  { %2094 = vmatmul.bf16.gmra.mxu0 %v2859_v42 }
 0x6a9   :  { %2247 = vmatmul.bf16.gmra.mxu2 %v2783_v22  ;;  %2883 = vmatmul.msk.bf16.gmra.mxu3 %vm1714_vm6, %v2787_v39  ;;  %v2834_v39 = vld [vmem:[#allocation2 + $0x2e8] sm:$0xf] }
 0x6ac   :  { %v2208_v9 = vpop.f32.mrf.mxu2  ;;  %v2292_v23 = vpop.f32.mrf.mxu3 }
 0x6ad   :  { %v2209_v20 = vadd.f32 %v2208_v9, %v2125_v0  ;;  %v4411_v40 = vpop.f32.mrf.mxu0  ;;  %v2126_v2 = vpop.f32.mrf.mxu1  ;;  %v2985_v0 = vld [vmem:[#allocation2 + $0x300] sm:$0xf0]  ;;  %v2836_v9 = vld [vmem:[#allocation2 + $0x304] sm:$0xf0] }
 0x6ae   :  { %v2127_v34 = vadd.f32 %v2126_v2, %v2043_v7  ;;  %v2982_v7 = vld [vmem:[#allocation2 + $0x2ec] sm:$0xf] }
 0x6af   :  { %v4413_v57 = vadd.f32 %v2292_v23, %v2209_v20  ;;  %v2842_v23 = vld [vmem:[#allocation2 + $0x2f0] sm:$0xf]  ;;  %v2839_v33 = vor.u32 %v2982_v7, %v2836_v9 }
 0x6b4   :  { %v2210_v58 = vpop.f32.mrf.mxu2  ;;  %v2294_v36 = vpop.f32.mrf.mxu3 }
 0x6b5   :  { %v2211_v56 = vadd.f32 %v2210_v58, %v2127_v34  ;;  %v4415_v11 = vpop.f32.mrf.mxu0  ;;  %v2129_v18 = vpop.f32.mrf.mxu1  ;;  %v2835_v34 = vor.u32 %v2985_v0, %v2834_v39 }
 0x6b6   :  { %v2130_v1 = vadd.f32 %v2129_v18, %v4380_v62  ;;  %v2986_v62 = vld [vmem:[#allocation2 + $0x308] sm:$0xf0]  ;;  %v2862_v18 = vld [vmem:[#allocation2 + $0x320] sm:$0xf] }
 0x6b7   :  { %v4418_v12 = vadd.f32 %v2294_v36, %v2211_v56  ;;  %2168 = vmatmul.bf16.gmra.mxu1 %v2807_v63  ;;  %v2843_v19 = vor.u32 %v2986_v62, %v2842_v23 }
 0x6b9   :  { %2252 = vmatmul.bf16.gmra.mxu2 %v2811_v26  ;;  %2884 = vmatmul.msk.bf16.gmra.mxu3 %vm1714_vm6, %v2815_v16  ;;  %v2992_v26 = vld [vmem:[#allocation2 + $0x338] sm:$0xf0]  ;;  %v2989_v16 = vld [vmem:[#allocation2 + $0x324] sm:$0xf] }
 0x6ba   :  { %v2863_v39 = vor.u32 %v2992_v26, %v2862_v18 }
 0x6bc   :  { %v2213_v27 = vpop.f32.mrf.mxu2  ;;  %v2297_v42 = vpop.f32.mrf.mxu3 }
 0x6bd   :  { %v2214_v48 = vadd.f32 %v2213_v27, %v2130_v1  ;;  %v2062_v30 = vpop.f32.mrf.mxu0  ;;  %v4421_v44 = vpop.f32.mrf.mxu1  ;;  %v2864_v1 = vld [vmem:[#allocation2 + $0x33c] sm:$0xf0]  ;;  %v2870_v27 = vld [vmem:[#allocation2 + $0x328] sm:$0xf] }
 0x6be   :  { %v2867_v9 = vor.u32 %v2989_v16, %v2864_v1 }
 0x6bf   :  { %v4423_v22 = vadd.f32 %v2297_v42, %v2214_v48  ;;  %v2993_v42 = vld [vmem:[#allocation2 + $0x340] sm:$0xf0] }
 0x6c0   :  { %v2871_v23 = vor.u32 %v2993_v42, %v2870_v27 }
 0x6c4   :  { %v4425_v20 = vpop.f32.mrf.mxu2  ;;  %v4427_v2 = vpop.f32.mrf.mxu3 }
 0x6c5   :  { %v2065_v60 = vpop.f32.mrf.mxu0  ;;  %v4429_v8 = vpop.f32.mrf.mxu1 }
 0x6c6   :  { %v2066_v28 = vadd.f32 %v2065_v60, %v4300_v59 }
 0x6c7   :  { %2173 = vmatmul.bf16.gmra.mxu1 %v2835_v34 }
 0x6c9   :  { %2257 = vmatmul.bf16.gmra.mxu2 %v2839_v33  ;;  %2885 = vmatmul.msk.bf16.gmra.mxu3 %vm1714_vm6, %v2843_v19 }
 0x6cc   :  { %v4433_v51 = vpop.f32.mrf.mxu2  ;;  %v4435_v58 = vpop.f32.mrf.mxu3 }
 0x6cd   :  { %v2067_v36 = vpop.f32.mrf.mxu0  ;;  %v2136_v63 = vpop.f32.mrf.mxu1 }
 0x6ce   :  { %v4438_v56 = vadd.f32 %v2067_v36, %v4305_v61 }
 0x6d4   :  { %v2220_v59 = vpop.f32.mrf.mxu2  ;;  %v2304_v48 = vpop.f32.mrf.mxu3 }
 0x6d5   :  { %v2070_v0 = vpop.f32.mrf.mxu0  ;;  %v2139_v7 = vpop.f32.mrf.mxu1 }
 0x6d6   :  { %v4441_v62 = vadd.f32 %v2070_v0, %v4311_v31  ;;  %v2061_v0 = vadd.f32 %v4415_v11, %v4289_v53 }
 0x6d7   :  { %2178 = vmatmul.bf16.gmra.mxu1 %v2863_v39 }
 0x6d9   :  { %2262 = vmatmul.bf16.gmra.mxu2 %v2867_v9  ;;  %2886 = vmatmul.msk.bf16.gmra.mxu3 %vm1714_vm6, %v2871_v23  ;;  %v2063_v9 = vadd.f32 %v2062_v30, %v4294_v55 }
 0x6dc   :  { %v2223_v61 = vpop.f32.mrf.mxu2  ;;  %v2307_v34 = vpop.f32.mrf.mxu3 }
 0x6dd   :  { %v2072_v60 = vpop.f32.mrf.mxu0  ;;  %v2141_v33 = vpop.f32.mrf.mxu1 }
 0x6de   :  { %v4445_v19 = vadd.f32 %v2072_v60, %v4316_v50  ;;  %v2058_v50 = vadd.f32 %v4411_v40, %v4283_v21  ;;  %v2051_v21 = vadd.f32 %v4391_v13, %v4268_v49 }
 0x6e0   :  { %v2142_v60 = vadd.f32 %v2141_v33, %v2058_v50  ;;  %v2048_v33 = vadd.f32 %v4386_v37, %v4264_v47 }
 0x6e4   :  { %v2225_v36 = vpop.f32.mrf.mxu2  ;;  %v2309_v18 = vpop.f32.mrf.mxu3 }
 0x6e5   :  { %v2075_v26 = vpop.f32.mrf.mxu0  ;;  %v2144_v15 = vpop.f32.mrf.mxu1  ;;  %v2226_v32 = vadd.f32 %v2225_v36, %v2142_v60 }
 0x6e6   :  { %v4448_v16 = vadd.f32 %v2075_v26, %v4322_v10  ;;  %v2145_v23 = vadd.f32 %v2144_v15, %v2061_v0  ;;  %v2056_v10 = vadd.f32 %v4404_v41, %v4278_v24  ;;  %v2359_v0 = vmax.f32 %v4418_v12, 0.0 }
 0x6e7   :  { %v2355_v12 = vmax.f32 %v4394_v29, 0.0 }
 0x6ec   :  { %v2228_v31 = vpop.f32.mrf.mxu2  ;;  %v2312_v1 = vpop.f32.mrf.mxu3 }
 0x6ed   :  { %v2077_v27 = vpop.f32.mrf.mxu0  ;;  %v2146_v42 = vpop.f32.mrf.mxu1  ;;  %v2229_v26 = vadd.f32 %v2228_v31, %v2145_v23  ;;  %v2357_v23 = vmax.f32 %v4406_v5, 0.0  ;;  %v2353_v5 = vmax.f32 %v4383_v17, 0.0 }
 0x6ee   :  { %v4451_v39 = vadd.f32 %v2077_v27, %v4327_v3  ;;  %v2147_v6 = vadd.f32 %v2146_v42, %v2063_v9  ;;  %v2053_v3 = vadd.f32 %v4397_v43, %v4273_v38  ;;  %v2140_v27 = vadd.f32 %v2139_v7, %v2056_v10 }
 0x6ef   :  { %v2313_v40 = vadd.f32 %v2312_v1, %v2229_v26  ;;  %v2135_v38 = vadd.f32 %v4429_v8, %v2051_v21  ;;  %v2132_v7 = vadd.f32 %v4421_v44, %v2048_v33 }
 0x6f0   :  { %v2137_v15 = vadd.f32 %v2136_v63, %v2053_v3  ;;  %v2224_v41 = vadd.f32 %v2223_v61, %v2140_v27 }
 0x6f1   :  { %v2219_v49 = vadd.f32 %v4433_v51, %v2135_v38  ;;  %v2216_v63 = vadd.f32 %v4425_v20, %v2132_v7 }
 0x6f2   :  { %v2221_v43 = vadd.f32 %v2220_v59, %v2137_v15  ;;  %v2308_v13 = vadd.f32 %v2307_v34, %v2224_v41 }
 0x6f3   :  { %v2300_v51 = vadd.f32 %v4427_v2, %v2216_v63  ;;  %v2358_v2 = vmax.f32 %v4413_v57, 0.0  ;;  %v2354_v57 = vmax.f32 %v4389_v14, 0.0 }
 0x6f4   :  { %v2230_v4 = vpop.f32.mrf.mxu2  ;;  %v2314_v25 = vpop.f32.mrf.mxu3  ;;  %v2364_v8 = vmax.f32 %v2308_v13, 0.0 }
 0x6f5   :  { %v2231_v53 = vadd.f32 %v2230_v4, %v2147_v6  ;;  %v2080_v11 = vpop.f32.mrf.mxu0  ;;  %v2149_v46 = vpop.f32.mrf.mxu1  ;;  %v2310_v6 = vadd.f32 %v2309_v18, %v2226_v32  ;;  %v2303_v32 = vadd.f32 %v4435_v58, %v2219_v49  ;;  %v2361_v18 = vmax.f32 %v2300_v51, 0.0 }
 0x6f6   :  { %v4465_v55 = vadd.f32 %v2080_v11, %v4333_v35  ;;  %v2150_v24 = vadd.f32 %v2149_v46, %v2066_v28  ;;  %v2366_v35 = vmax.f32 %v2313_v40, 0.0  ;;  %v2360_v58 = vmax.f32 %v4423_v22, 0.0 }
 0x6f7   :  { %v2315_v30 = vadd.f32 %v2314_v25, %v2231_v53  ;;  %v2305_v25 = vadd.f32 %v2304_v48, %v2221_v43  ;;  %v2365_v61 = vmax.f32 %v2310_v6, 0.0  ;;  %v2362_v34 = vmax.f32 %v2303_v32, 0.0 }
 0x6f8   :  { %v2356_v22 = vmax.f32 %v4400_v54, 0.0  ;;  %v2352_v54 = vmax.f32 %v4377_v45, 0.0  ;;  %v3139_v51 = vmov 1.0  }
 0x6f9   :  { %v2367_v4 = vmax.f32 %v2315_v30, 0.0  ;;  %v2363_v59 = vmax.f32 %v2305_v25, 0.0 }
 0x6fb   :  { %2391 = vmatpush.msrb.mxu0 %v2367_v4 }
 0x6fc   :  { %v2233_v46 = vpop.f32.mrf.mxu2  ;;  %v2317_v28 = vpop.f32.mrf.mxu3 }
 0x6fd   :  { %v2234_v36 = vadd.f32 %v2233_v46, %v2150_v24  ;;  %2392 = vmatpush.msrb.mxu0 %v2366_v35  ;;  %v2151_v47 = vpop.f32.mrf.mxu1  ;;  %v2082_v17 = vpop.f32.mrf.mxu0 }
 0x6fe   :  { %v2152_v37 = vadd.f32 %v2151_v47, %v4438_v56 }
 0x6ff   :  { %v4475_v44 = vadd.f32 %v2317_v28, %v2234_v36  ;;  %2393 = vmatpush.msrb.mxu0 %v2365_v61 }
 0x701   :  { %2394 = vmatpush.msrb.mxu0 %v2364_v8 }
 0x703   :  { %2395 = vmatpush.msrb.mxu0 %v2363_v59 }
 0x704   :  { %v2235_v20 = vpop.f32.mrf.mxu2  ;;  %v2319_v48 = vpop.f32.mrf.mxu3 }
 0x705   :  { %v2236_v31 = vadd.f32 %v2235_v20, %v2152_v37  ;;  %2396 = vmatpush.msrb.mxu0 %v2362_v34  ;;  %v2154_v1 = vpop.f32.mrf.mxu1  ;;  %v2085_v6 = vpop.f32.mrf.mxu0 }
 0x706   :  { %v2155_v56 = vadd.f32 %v2154_v1, %v4441_v62  ;;  %v2382_v1 = vld [vmem:[%s4533_s6] sm:$0xff] }
 0x707   :  { %v4480_v42 = vadd.f32 %v2319_v48, %v2236_v31  ;;  %2397 = vmatpush.msrb.mxu0 %v2361_v18  ;;  %2384 = vst [vmem:[#allocation1] ss:$2 sm:$0xff] %v2382_v1 }
 0x709   :  { %2398 = vmatpush.msrb.mxu0 %v2360_v58 }
 0x70b   :  { %2399 = vmatpush.msrb.mxu0 %v2359_v0 }
 0x70c   :  { %v2238_v50 = vpop.f32.mrf.mxu2  ;;  %v2322_v9 = vpop.f32.mrf.mxu3 }
 0x70d   :  { %v2239_v10 = vadd.f32 %v2238_v50, %v2155_v56  ;;  %2400 = vmatpush.msrb.mxu0 %v2358_v2  ;;  %v2156_v60 = vpop.f32.mrf.mxu1  ;;  %v2087_v28 = vpop.f32.mrf.mxu0 }
 0x70e   :  { %v2157_v62 = vadd.f32 %v2156_v60, %v4445_v19  ;;  %v2385_v2 = vld.sshfl [vmem:[#allocation1] sm:$0xff pattern:$0x75316420] }
 0x70f   :  { %v4487_v26 = vadd.f32 %v2322_v9, %v2239_v10  ;;  %2401 = vmatpush.msrb.mxu0 %v2357_v23  ;;  %v4541_v10 = vld [vmem:[#allocation10_spill] sm:$0xff] }
 0x711   :  { %2402 = vmatpush.msrb.mxu0 %v2356_v22 }
 0x713   :  { %2403 = vmatpush.msrb.mxu0 %v2355_v12 }
 0x714   :  { %v2240_v3 = vpop.f32.mrf.mxu2  ;;  %v2324_v27 = vpop.f32.mrf.mxu3 }
 0x715   :  { %v2241_v53 = vadd.f32 %v2240_v3, %v2157_v62  ;;  %2404 = vmatpush.msrb.mxu0 %v2354_v57  ;;  %v2159_v11 = vpop.f32.mrf.mxu1  ;;  %v2090_v47 = vpop.f32.mrf.mxu0  ;;  %v4542_v62 = vld [vmem:[#allocation11_spill] sm:$0xff]  ;;  %v4543_v57 = vld [vmem:[#allocation9_spill] sm:$0xff] }
 0x716   :  { %v2160_v19 = vadd.f32 %v2159_v11, %v4448_v16  ;;  %v2091_v3 = vadd.f32 %v2090_v47, %v4543_v57 }
 0x717   :  { %v4494_v21 = vadd.f32 %v2324_v27, %v2241_v53  ;;  %2405 = vmatpush.msrb.mxu0 %v2353_v5 }
 0x719   :  { %2406 = vmatpush.msrb.mxu0 %v2352_v54 }
 0x71a   :  { %2407 = vmatmul.f32.vlgmr.msrb.gmra.mxu0 %v2385_v2 }
 0x71b   :  { %2412 = vmatpush.msra.mxu0 %v3139_v51 }
 0x71c   :  { %v2243_v29 = vpop.f32.mrf.mxu2  ;;  %v2327_v24 = vpop.f32.mrf.mxu3 }
 0x71d   :  { %v2244_v15 = vadd.f32 %v2243_v29, %v2160_v19  ;;  %v2161_v14 = vpop.f32.mrf.mxu1  ;;  %v2092_v8 = vpop.f32.mrf.mxu0  ;;  %v4544_v19 = vld [vmem:[#allocation8_spill] sm:$0xff] }
 0x71e   :  { %v2162_v41 = vadd.f32 %v2161_v14, %v4451_v39  ;;  %v2093_v60 = vadd.f32 %v2092_v8, %v4541_v10  ;;  %v2088_v54 = vadd.f32 %v2087_v28, %v4544_v19  ;;  %v4545_v14 = vld [vmem:[#allocation7_spill] sm:$0xff] }
 0x71f   :  { %v4497_v40 = vadd.f32 %v2327_v24, %v2244_v15 }
 0x724   :  { %v2245_v30 = vpop.f32.mrf.mxu2  ;;  %v2329_v33 = vpop.f32.mrf.mxu3 }
 0x725   :  { %v2246_v38 = vadd.f32 %v2245_v30, %v2162_v41  ;;  %v2164_v43 = vpop.f32.mrf.mxu1  ;;  %v2095_v48 = vpop.f32.mrf.mxu0  ;;  %v2086_v41 = vadd.f32 %v2085_v6, %v4545_v14 }
 0x726   :  { %v2165_v16 = vadd.f32 %v2164_v43, %v4465_v55  ;;  %v2096_v9 = vadd.f32 %v2095_v48, %v4366_v52 }
 0x727   :  { %v4500_v45 = vadd.f32 %v2329_v33, %v2246_v38 }
 0x72c   :  { %v2248_v4 = vpop.f32.mrf.mxu2  ;;  %v2332_v7 = vpop.f32.mrf.mxu3 }
 0x72d   :  { %v2249_v49 = vadd.f32 %v2248_v4, %v2165_v16  ;;  %v2166_v13 = vpop.f32.mrf.mxu1  ;;  %v2097_v50 = vpop.f32.mrf.mxu0  ;;  %v4546_v16 = vld [vmem:[#allocation6_spill] sm:$0xff] }
 0x72e   :  { %v2098_v22 = vadd.f32 %v2097_v50, %v4542_v62  ;;  %v2083_v4 = vadd.f32 %v2082_v17, %v4546_v16 }
 0x72f   :  { %v4502_v35 = vadd.f32 %v2332_v7, %v2249_v49 }
 0x730   :  { %v2167_v51 = vadd.f32 %v2166_v13, %v2083_v4 }
 0x731   :  { %v2374_v13 = vmax.f32 %v4502_v35, 0.0  ;;  %v2386_v35 = vld.sshfl [vmem:[#allocation1 + $0x8] sm:$0xff pattern:$0x75316420] }
 0x734   :  { %v2250_v46 = vpop.f32.mrf.mxu2  ;;  %v4504_v39 = vpop.f32.mrf.mxu3 }
 0x735   :  { %v2169_v63 = vpop.f32.mrf.mxu1 }
 0x736   :  { %v2170_v7 = vadd.f32 %v2169_v63, %v2086_v41 }
 0x73c   :  { %v2253_v25 = vpop.f32.mrf.mxu2  ;;  %v2337_v61 = vpop.f32.mrf.mxu3 }
 0x73d   :  { %v2171_v36 = vpop.f32.mrf.mxu1 }
 0x73e   :  { %v2172_v30 = vadd.f32 %v2171_v36, %v2088_v54 }
 0x744   :  { %v2255_v37 = vpop.f32.mrf.mxu2  ;;  %v2339_v55 = vpop.f32.mrf.mxu3 }
 0x745   :  { %v2174_v32 = vpop.f32.mrf.mxu1  ;;  %v2256_v49 = vadd.f32 %v2255_v37, %v2172_v30  ;;  %v2369_v37 = vmax.f32 %v4480_v42, 0.0 }
 0x746   :  { %v2175_v29 = vadd.f32 %v2174_v32, %v2091_v3  ;;  %v2251_v32 = vadd.f32 %v2250_v46, %v2167_v51  ;;  %v2372_v46 = vmax.f32 %v4497_v40, 0.0 }
 0x74c   :  { %v2258_v59 = vpop.f32.mrf.mxu2  ;;  %v2342_v34 = vpop.f32.mrf.mxu3 }
 0x74d   :  { %v2176_v20 = vpop.f32.mrf.mxu1  ;;  %v2259_v33 = vadd.f32 %v2258_v59, %v2175_v29  ;;  %v2335_v59 = vadd.f32 %v4504_v39, %v2251_v32  ;;  %v2370_v39 = vmax.f32 %v4487_v26, 0.0 }
 0x74e   :  { %v2177_v27 = vadd.f32 %v2176_v20, %v2093_v60  ;;  %v2254_v20 = vadd.f32 %v2253_v25, %v2170_v7  ;;  %v2373_v25 = vmax.f32 %v4500_v45, 0.0 }
 0x74f   :  { %v2343_v48 = vadd.f32 %v2342_v34, %v2259_v33  ;;  %v2375_v63 = vmax.f32 %v2335_v59, 0.0 }
 0x750   :  { %v2338_v6 = vadd.f32 %v2337_v61, %v2254_v20  ;;  %v2371_v61 = vmax.f32 %v4494_v21, 0.0 }
 0x751   :  { %v2378_v36 = vmax.f32 %v2343_v48, 0.0 }
 0x752   :  { %v2376_v17 = vmax.f32 %v2338_v6, 0.0 }
 0x754   :  { %v2260_v18 = vpop.f32.mrf.mxu2  ;;  %v2344_v31 = vpop.f32.mrf.mxu3 }
 0x755   :  { %v2179_v56 = vpop.f32.mrf.mxu1  ;;  %v2261_v24 = vadd.f32 %v2260_v18, %v2177_v27  ;;  %v2340_v18 = vadd.f32 %v2339_v55, %v2256_v49  ;;  %v2368_v55 = vmax.f32 %v4475_v44, 0.0 }
 0x756   :  { %v2180_v12 = vadd.f32 %v2179_v56, %v2096_v9 }
 0x757   :  { %v2345_v47 = vadd.f32 %v2344_v31, %v2261_v24  ;;  %v2377_v56 = vmax.f32 %v2340_v18, 0.0 }
 0x759   :  { %v2379_v1 = vmax.f32 %v2345_v47, 0.0 }
 0x75c   :  { %v2263_v58 = vpop.f32.mrf.mxu2  ;;  %v2347_v0 = vpop.f32.mrf.mxu3 }
 0x75d   :  { %v2181_v23 = vpop.f32.mrf.mxu1  ;;  %v2264_v5 = vadd.f32 %v2263_v58, %v2180_v12 }
 0x75e   :  { %v2182_v53 = vadd.f32 %v2181_v23, %v2098_v22 }
 0x75f   :  { %v2348_v38 = vadd.f32 %v2347_v0, %v2264_v5 }
 0x761   :  { %v2380_v28 = vmax.f32 %v2348_v38, 0.0 }
 0x764   :  { %v2265_v11 = vpop.f32.mrf.mxu2  ;;  %v2349_v52 = vpop.f32.mrf.mxu3 }
 0x765   :  { %v2266_v15 = vadd.f32 %v2265_v11, %v2182_v53 }
 0x767   :  { %v2350_v43 = vadd.f32 %v2349_v52, %v2266_v15 }
 0x769   :  { %v2381_v8 = vmax.f32 %v2350_v43, 0.0 }
 0x76b   :  { %2413 = vmatpush.msra.mxu0 %v2381_v8 }
 0x76d   :  { %2414 = vmatpush.msra.mxu0 %v2380_v28 }
 0x76f   :  { %2415 = vmatpush.msra.mxu0 %v2379_v1 }
 0x771   :  { %2416 = vmatpush.msra.mxu0 %v2378_v36 }
 0x773   :  { %2417 = vmatpush.msra.mxu0 %v2377_v56 }
 0x775   :  { %2418 = vmatpush.msra.mxu0 %v2376_v17 }
 0x777   :  { %2419 = vmatpush.msra.mxu0 %v2375_v63 }
 0x779   :  { %2420 = vmatpush.msra.mxu0 %v2374_v13 }
 0x77b   :  { %2421 = vmatpush.msra.mxu0 %v2373_v25 }
 0x77d   :  { %2422 = vmatpush.msra.mxu0 %v2372_v46 }
 0x77f   :  { %2423 = vmatpush.msra.mxu0 %v2371_v61 }
 0x781   :  { %2424 = vmatpush.msra.mxu0 %v2370_v39 }
 0x783   :  { %2425 = vmatpush.msra.mxu0 %v2369_v37 }
 0x785   :  { %2426 = vmatpush.msra.mxu0 %v2368_v55 }
 0x786   :  { %2887 = vmatmul.msk.f32.vlgmr.msra.gmra.mxu0 %vm2388_vm7, %v2386_v35 }
 0x797   :  { %v2408_v45 = vpop.f32.mrf.mxu0 }
 0x803   :  { %v2428_v34 = vpop.f32.mrf.mxu0 }
 0x804   :  { %v2429_v40 = vadd.f32 %v2428_v34, %v2408_v45 }
 0x806   :  { %2432 = vst.msk [vmem:[%s4534_s7] sm:$0xf] %vm2431_vm8, %v2429_v40 }
 0x807   :  { %2437 = vsyncmov [#allocation3] }
 0x80a   :  { %s2438_s23 = vpop.sfrf %2437 }
 0x80b   :  { %p2888_p0 = scmp.ne.s32.totalorder %s2438_s23, 0 }
 0x80d   :  { %2442 = shalt.err (%p2888_p0)  }

</bundles_post_ra>
